<compile_context>
chip_gen: v5e
topology: v5e:2x2
jax: 0.10.0
libtpu: 0.0.40
codegen_flags: <defaults>
</compile_context>

<pallas_src>
import functools
import math

import jax
import jax.numpy as jnp
from jax.experimental import pallas as pl
from jax.experimental.pallas import tpu as pltpu


# ---------------------------------------------------------------------------
# small helpers
# ---------------------------------------------------------------------------
def _round_up(v, m):
    return (v + m - 1) // m * m


@functools.lru_cache(maxsize=None)
def _vmem_limit_bytes():
    """Generation-aware scoped-VMEM cap (v7x: 64 MiB physical, v5e/v6e: 128 MiB)."""
    try:
        cap = int(pltpu.get_tpu_info().vmem_capacity_bytes)
    except Exception:
        cap = 64 * 1024 * 1024  # conservative fallback (v7x) if the query fails
    # leave headroom for compiler-internal scratch / pipeline bookkeeping
    return max(32 * 1024 * 1024, min(cap - 16 * 1024 * 1024, 100 * 1024 * 1024))


def _pick_tile_h(h, per_step_bytes, *, need_even):
    """Largest divisor of h whose estimated per-step VMEM fits the budget.

    Prefers divisors that leave >= 2 row tiles per image so the BlockSpec
    pipeline has steps to double-buffer and so the ("parallel","parallel")
    grid can split across v7x's two TensorCores even at batch=1.
    """
    budget = int(0.85 * _vmem_limit_bytes())
    divs = [d for d in range(1, h + 1)
            if h % d == 0 and (not need_even or d % 2 == 0)]
    if not divs:
        return h
    fitting = [d for d in divs if per_step_bytes(d) <= budget]
    if not fitting:
        return min(divs)
    multi = [d for d in fitting if h // d >= 2]
    return max(multi) if multi else max(fitting)


# ---------------------------------------------------------------------------
# in-kernel building blocks
# ---------------------------------------------------------------------------
def _fill_padded_slab(p_ref, top_ref, x_ref, bot_ref, th, w_valid, t, ntiles):
    """Fill the (th+2, Wp, Cin) bf16 slab for a 3x3 conv with padding=1.

    Rows: [top halo | th main rows | bottom halo]; halo rows are zeroed at the
    image borders.  Columns >= w_valid are zeroed; together with the
    result-shift handling of the dx taps this reproduces zero padding exactly.
    """
    wp = p_ref.shape[1]
    cin = p_ref.shape[2]
    dt = p_ref.dtype
    p_ref[:, w_valid:, :] = jnp.zeros((th + 2, wp - w_valid, cin), dt)
    top = (top_ref[0, 0] * (t > 0).astype(dt)).astype(dt)
    bot = (bot_ref[0, 0] * (t < ntiles - 1).astype(dt)).astype(dt)
    p_ref[0, :w_valid, :] = top
    p_ref[1:th + 1, :w_valid, :] = x_ref[0].astype(dt)
    p_ref[th + 1, :w_valid, :] = bot


def _conv3x3_lrelu_from_slab(p_ref, w_ref, b_ref, th):
    """3x3 conv + bias + leaky_relu(0.2) from a padded slab.

    p_ref: (th+2, wp, cin) bf16, image data in columns [0, w), columns >= w zero.
    w_ref: (3, 3*cin, cout) bf16 laid out (kx, ky*cin + c, cout).
    b_ref: (1, cout) f32.
    Returns (th, wp, cout) f32 (columns >= w are don't-care).
    """
    wp = p_ref.shape[1]
    cin = p_ref.shape[2]
    cout = w_ref.shape[2]
    nflat = th * wp
    # Three overlapping row windows (leading-dim slices: free), flattened so the
    # dx = +-1 taps below are plain sublane shifts of the matmul *results*.
    s = [p_ref[ky:ky + th, :, :].reshape(nflat, cin) for ky in range(3)]
    if cin % 128 == 0:
        # Lane-aligned K = 3*cin: a single matmul per kx tap.
        xcat = jnp.concatenate(s, axis=1)                            # (nflat, 3*cin)
        m = [jnp.dot(xcat, w_ref[kx], preferred_element_type=jnp.float32)
             for kx in range(3)]
    else:
        # cin not a multiple of 128: a K-concat would force a cross-lane
        # relayout of 2/3 of the slab every step, so issue 3 K=cin dots per kx
        # tap instead (same total MXU work, no relayout tax).
        m = []
        for kx in range(3):
            mk = jnp.dot(s[0], w_ref[kx, 0:cin, :],
                         preferred_element_type=jnp.float32)
            mk = mk + jnp.dot(s[1], w_ref[kx, cin:2 * cin, :],
                              preferred_element_type=jnp.float32)
            mk = mk + jnp.dot(s[2], w_ref[kx, 2 * cin:3 * cin, :],
                              preferred_element_type=jnp.float32)
            m.append(mk)
    # dx = -1 / +1 taps: shift the matmul *result* by one flat row instead of
    # re-laying-out the activation per tap.  Because slab columns >= w are
    # zero, the element entering at every row boundary is zero, which
    # reproduces the conv's zero padding exactly.
    # TODO(synk): move these shifts to pltpu.roll (XLU slot) once the roll
    # direction is validated on hardware.
    zrow = jnp.zeros((1, cout), jnp.float32)
    left = jnp.concatenate([zrow, m[0][:nflat - 1, :]], axis=0)      # out[i] += m0[i-1]
    right = jnp.concatenate([m[2][1:, :], zrow], axis=0)             # out[i] += m2[i+1]
    acc = b_ref[...].astype(jnp.float32) + m[1] + left + right
    acc = jnp.maximum(acc, 0.2 * acc)                                # leaky_relu(0.2)
    return acc.reshape(th, wp, cout)


def _halve_hw(v, hp_ref, w_valid, scale):
    """2x2 pool over the two spatial dims.

    scale=0.25 gives the mean (== bilinear 0.5x, align_corners=False, even
    sizes); scale=1.0 returns plain 2x2 sums (used when the 0.25 has been
    folded into a following linear op, e.g. the 1x1 skip weight).

    v: (2*th2, wv, c) with valid data in columns [0, w_valid).
    hp_ref: (th2, wv, c) f32 scratch for the H pair-sums / strided column reads.
    """
    th2 = v.shape[0] // 2
    v4 = v.reshape(th2, 2, v.shape[1], v.shape[2])       # leading-dim split: free
    hp_ref[...] = v4[:, 0].astype(hp_ref.dtype) + v4[:, 1].astype(hp_ref.dtype)
    w2 = w_valid // 2
    s = hp_ref[:, pl.ds(0, w2, stride=2), :] + hp_ref[:, pl.ds(1, w2, stride=2), :]
    return s * scale if scale != 1.0 else s


# ---------------------------------------------------------------------------
# pallas_call wrappers
# ---------------------------------------------------------------------------
def conv3x3_lrelu(x, w_packed, bias, *, pool_out, out_dtype=jnp.bfloat16, tile_h=None):
    """conv1: 3x3 conv (pad 1) + bias + leaky_relu(0.2), optionally fused 0.5x resize.

    x: (N, H, W, Cin), ingested as bf16.  w_packed: (3, 3*Cin, Cout) bf16.
    bias: (Cout,) f32.
    """
    x = x.astype(jnp.bfloat16)
    n, h, w, cin = x.shape
    assert w_packed.shape[0] == 3 and w_packed.shape[1] == 3 * cin
    cout = w_packed.shape[2]
    if pool_out:
        assert h % 2 == 0 and w % 2 == 0, "fused 0.5x resize needs even H and W"
    wp = _round_up(w + 2, 8)
    out_isz = jnp.dtype(out_dtype).itemsize

    def per_step_bytes(d):
        nflat = d * wp
        d_out = d // 2 if pool_out else d
        w_o = w // 2 if pool_out else w
        b = 2 * d * w * cin * 2                           # input tile (bf16, 2x buffered)
        b += 2 * 2 * w * cin * 2                          # halo rows (2x buffered)
        b += 2 * (9 * cin * cout * 2 + cout * 4)          # weights + bias
        b += 2 * d_out * w_o * cout * out_isz             # output tile (2x buffered)
        b += (d + 2) * wp * cin * 2                       # padded slab scratch (bf16)
        b += ((d // 2) * wp * cout * 4) if pool_out else 0  # pool scratch (f32)
        b += 6 * nflat * cout * 4                         # live f32 matmul temporaries
        b += (nflat * 3 * cin * 2) if cin % 128 == 0 else 0  # lane-aligned concat operand
        return b

    if tile_h is None:
        tile_h = _pick_tile_h(h, per_step_bytes, need_even=pool_out)
    assert h % tile_h == 0 and (not pool_out or tile_h % 2 == 0)
    nt = h // tile_h
    if pool_out:
        h_out, w_out, th_out = h // 2, w // 2, tile_h // 2
    else:
        h_out, w_out, th_out = h, w, tile_h
    b2 = bias.reshape(1, cout).astype(jnp.float32)

    def kernel(top_ref, x_ref, bot_ref, w_ref, b_ref, o_ref, p_ref, hp_ref=None):
        t = pl.program_id(1)
        ntiles = pl.num_programs(1)
        _fill_padded_slab(p_ref, top_ref, x_ref, bot_ref, tile_h, w, t, ntiles)
        act = _conv3x3_lrelu_from_slab(p_ref, w_ref, b_ref, tile_h)   # (tile_h, wp, cout)
        if pool_out:
            pooled = _halve_hw(act, hp_ref, w, 0.25)                  # (tile_h//2, w//2, cout)
            o_ref[0] = pooled.astype(o_ref.dtype)
        else:
            o_ref[0] = act[:, :w, :].astype(o_ref.dtype)

    scratch = [pltpu.VMEM((tile_h + 2, wp, cin), jnp.bfloat16)]
    if pool_out:
        scratch.append(pltpu.VMEM((tile_h // 2, wp, cout), jnp.float32))

    flops = 2 * n * h * w * 9 * cin * cout
    bytes_accessed = int(n * h * w * cin * 2
                         + w_packed.size * 2
                         + n * h_out * w_out * cout * out_isz)

    return pl.pallas_call(
        kernel,
        out_shape=jax.ShapeDtypeStruct((n, h_out, w_out, cout), out_dtype),
        grid_spec=pltpu.PrefetchScalarGridSpec(
            num_scalar_prefetch=0,
            grid=(n, nt),
            in_specs=[
                # top halo row (clamped; zeroed in-kernel at t == 0)
                pl.BlockSpec((1, 1, w, cin),
                             lambda i, t: (i, jnp.maximum(t * tile_h - 1, 0), 0, 0)),
                # main row tile
                pl.BlockSpec((1, tile_h, w, cin), lambda i, t: (i, t, 0, 0)),
                # bottom halo row (clamped; zeroed in-kernel at the last tile)
                pl.BlockSpec((1, 1, w, cin),
                             lambda i, t: (i, jnp.minimum(t * tile_h + tile_h, h - 1), 0, 0)),
                # invariant weights/bias (constant index_map -> fetched once).
                # TODO(synk): pipeline_mode=pl.Buffered(1) here would drop the
                # redundant second buffer on 512-channel layers once validated.
                pl.BlockSpec((3, 3 * cin, cout), lambda i, t: (0, 0, 0)),
                pl.BlockSpec((1, cout), lambda i, t: (0, 0)),
            ],
            out_specs=pl.BlockSpec((1, th_out, w_out, cout), lambda i, t: (i, t, 0, 0)),
            scratch_shapes=scratch,
        ),
        compiler_params=pltpu.CompilerParams(
            dimension_semantics=("parallel", "parallel"),
            vmem_limit_bytes=_vmem_limit_bytes()),
        cost_estimate=pl.CostEstimate(flops=flops, transcendentals=0,
                                      bytes_accessed=bytes_accessed),
    )(x, x, x, w_packed, b2)


def conv3x3_lrelu_skip(y, x_skip, w_packed, bias, w_skip, *, pool_skip,
                       out_dtype=jnp.float32, tile_h=None):
    """Fused tail: conv2(3x3)+bias+leaky_relu on `y`, + 1x1 skip conv on the
    residual input (optionally 0.5x-pooled inside the kernel), + add.

    y: (N, Hy, Wy, Cin).  x_skip: (N, 2Hy, 2Wy, Cin) if pool_skip else (N, Hy, Wy, Cin).
    """
    y = y.astype(jnp.bfloat16)
    x_skip = x_skip.astype(jnp.bfloat16)
    n, hy, wy, cin = y.shape
    cout = w_skip.shape[1]
    assert w_packed.shape == (3, 3 * cin, cout)
    assert w_skip.shape[0] == cin
    if pool_skip:
        assert x_skip.shape == (n, 2 * hy, 2 * wy, cin)
        # The 2x2 mean pool and the 1x1 conv are both linear with nothing in
        # between: fold the 0.25 into the skip weight (exact in bf16).
        w_skip = w_skip * 0.25
    else:
        assert x_skip.shape == (n, hy, wy, cin)
    wp = _round_up(wy + 2, 8)
    out_isz = jnp.dtype(out_dtype).itemsize

    def per_step_bytes(d):
        nflat = d * wp
        skip_rows = 2 * d if pool_skip else d
        skip_cols = 2 * wy if pool_skip else wy
        b = 2 * d * wy * cin * 2                          # conv input tile (bf16, 2x buffered)
        b += 2 * 2 * wy * cin * 2                         # halo rows
        b += 2 * skip_rows * skip_cols * cin * 2          # residual input tile
        b += 2 * (9 * cin * cout * 2 + cout * 4 + cin * cout * 2)   # weights/bias/skip w
        b += 2 * d * wy * cout * out_isz                  # output tile
        b += (d + 2) * wp * cin * 2                       # padded slab scratch (bf16)
        b += (d * 2 * wy * cin * 4) if pool_skip else 0   # skip-pool scratch (f32)
        b += 6 * nflat * cout * 4                         # live f32 conv temporaries
        b += d * wy * (cin * 2 + cout * 4)                # skip matmul operand/result
        b += (nflat * 3 * cin * 2) if cin % 128 == 0 else 0
        return b

    if tile_h is None:
        tile_h = _pick_tile_h(hy, per_step_bytes, need_even=False)
    assert hy % tile_h == 0
    nt = hy // tile_h
    b2 = bias.reshape(1, cout).astype(jnp.float32)

    def kernel(top_ref, y_ref, bot_ref, xs_ref, w_ref, b_ref, ws_ref, o_ref,
               p_ref, xp_ref=None):
        t = pl.program_id(1)
        ntiles = pl.num_programs(1)
        _fill_padded_slab(p_ref, top_ref, y_ref, bot_ref, tile_h, wy, t, ntiles)
        act = _conv3x3_lrelu_from_slab(p_ref, w_ref, b_ref, tile_h)   # (tile_h, wp, cout)
        if pool_skip:
            # 2x2 sums (the 0.25 is folded into ws_ref); accumulate in f32, feed
            # the MXU in bf16.
            xds = _halve_hw(xs_ref[0], xp_ref, 2 * wy, 1.0).astype(jnp.bfloat16)
        else:
            xds = xs_ref[0]
        skip = jnp.dot(xds.reshape(tile_h * wy, cin), ws_ref[...],
                       preferred_element_type=jnp.float32).reshape(tile_h, wy, cout)
        o_ref[0] = (act[:, :wy, :] + skip).astype(o_ref.dtype)

    scratch = [pltpu.VMEM((tile_h + 2, wp, cin), jnp.bfloat16)]
    if pool_skip:
        scratch.append(pltpu.VMEM((tile_h, 2 * wy, cin), jnp.float32))
        xs_spec = pl.BlockSpec((1, 2 * tile_h, 2 * wy, cin), lambda i, t: (i, t, 0, 0))
    else:
        xs_spec = pl.BlockSpec((1, tile_h, wy, cin), lambda i, t: (i, t, 0, 0))

    flops = 2 * n * hy * wy * cin * cout * 10  # 3x3 conv + 1x1 skip
    bytes_accessed = int(y.size * 2 + x_skip.size * 2 + w_packed.size * 2
                         + n * hy * wy * cout * out_isz)

    return pl.pallas_call(
        kernel,
        out_shape=jax.ShapeDtypeStruct((n, hy, wy, cout), out_dtype),
        grid_spec=pltpu.PrefetchScalarGridSpec(
            num_scalar_prefetch=0,
            grid=(n, nt),
            in_specs=[
                pl.BlockSpec((1, 1, wy, cin),
                             lambda i, t: (i, jnp.maximum(t * tile_h - 1, 0), 0, 0)),
                pl.BlockSpec((1, tile_h, wy, cin), lambda i, t: (i, t, 0, 0)),
                pl.BlockSpec((1, 1, wy, cin),
                             lambda i, t: (i, jnp.minimum(t * tile_h + tile_h, hy - 1), 0, 0)),
                xs_spec,
                pl.BlockSpec((3, 3 * cin, cout), lambda i, t: (0, 0, 0)),
                pl.BlockSpec((1, cout), lambda i, t: (0, 0)),
                pl.BlockSpec((cin, cout), lambda i, t: (0, 0)),
            ],
            out_specs=pl.BlockSpec((1, tile_h, wy, cout), lambda i, t: (i, t, 0, 0)),
            scratch_shapes=scratch,
        ),
        compiler_params=pltpu.CompilerParams(
            dimension_semantics=("parallel", "parallel"),
            vmem_limit_bytes=_vmem_limit_bytes()),
        cost_estimate=pl.CostEstimate(flops=flops, transcendentals=0,
                                      bytes_accessed=bytes_accessed),
    )(y, y, y, x_skip, w_packed, b2, w_skip)


# ---------------------------------------------------------------------------
# bilinear interpolation (align_corners=False), plain JAX — used for the "up"
# mode glue and the reference.
# ---------------------------------------------------------------------------
def _resize_coords(in_size, out_size, scale):
    out_idx = jnp.arange(out_size, dtype=jnp.float32)
    src = (out_idx + 0.5) / scale - 0.5
    src = jnp.maximum(src, 0.0)
    i0 = jnp.floor(src).astype(jnp.int32)
    i0 = jnp.minimum(i0, in_size - 1)
    i1 = jnp.minimum(i0 + 1, in_size - 1)
    w1 = jnp.clip(src - i0.astype(jnp.float32), 0.0, 1.0)
    return i0, i1, 1.0 - w1, w1


def bilinear_interp_nhwc(x, scale):
    n, h, w, c = x.shape
    ho = int(math.floor(h * scale))
    wo = int(math.floor(w * scale))
    i0h, i1h, w0h, w1h = _resize_coords(h, ho, scale)
    i0w, i1w, w0w, w1w = _resize_coords(w, wo, scale)
    xh = (jnp.take(x, i0h, axis=1) * w0h[None, :, None, None]
          + jnp.take(x, i1h, axis=1) * w1h[None, :, None, None])
    return (jnp.take(xh, i0w, axis=2) * w0w[None, None, :, None]
            + jnp.take(xh, i1w, axis=2) * w1w[None, None, :, None])


# ---------------------------------------------------------------------------
# parameters / forward / reference
# ---------------------------------------------------------------------------
def _pack_conv3x3(w_oihw):
    """(Cout, Cin, 3, 3) -> (kx, ky*Cin, Cout) bf16 for the per-kx MXU matmuls."""
    cout, cin, kh, kw = w_oihw.shape
    w = jnp.transpose(w_oihw, (3, 2, 1, 0)).reshape(kw, kh * cin, cout)
    return w.astype(jnp.bfloat16)


def init_resblock_params(key, in_channels, out_channels):
    k1, k2, k3, k4, k5 = jax.random.split(key, 5)
    w1 = jax.random.normal(k1, (in_channels, in_channels, 3, 3), jnp.float32) * 0.1
    b1 = jax.random.normal(k2, (in_channels,), jnp.float32) * 0.1
    w2 = jax.random.normal(k3, (out_channels, in_channels, 3, 3), jnp.float32) * 0.1
    b2 = jax.random.normal(k4, (out_channels,), jnp.float32) * 0.1
    ws = jax.random.normal(k5, (out_channels, in_channels, 1, 1), jnp.float32) * 0.1
    return dict(
        w1=_pack_conv3x3(w1), b1=b1,
        w2=_pack_conv3x3(w2), b2=b2,
        wskip=jnp.transpose(ws[:, :, 0, 0], (1, 0)).astype(jnp.bfloat16),
        raw=dict(w1=w1, b1=b1, w2=w2, b2=b2, ws=ws))


def resblock_forward(x_nchw, params, mode="down", tile_h1=None, tile_h2=None):
    """Matches ResBlock.forward. x_nchw: (N, Cin, H, W) -> (N, Cout, H', W') f32."""
    # Activations travel through HBM as bf16 (NHWC, channels on lanes); all
    # matmuls accumulate in f32 on the MXU.
    # TODO(synk): if this block sits inside a channels-last network, drop the
    # NCHW<->NHWC boundary transposes (each is an extra HBM pass).
    x = jnp.transpose(x_nchw.astype(jnp.bfloat16), (0, 2, 3, 1))
    if mode == "down":
        out = conv3x3_lrelu(x, params["w1"], params["b1"], pool_out=True,
                            out_dtype=jnp.bfloat16, tile_h=tile_h1)
        y = conv3x3_lrelu_skip(out, x, params["w2"], params["b2"], params["wskip"],
                               pool_skip=True, tile_h=tile_h2)
    elif mode == "up":
        out = conv3x3_lrelu(x, params["w1"], params["b1"], pool_out=False,
                            out_dtype=jnp.bfloat16, tile_h=tile_h1)
        # TODO(synk): fuse the fixed 4-tap 2x bilinear upsample into the kernels
        # too; today only the 0.5x (down) resize is fully fused and the 2x
        # intermediates round-trip HBM (now in bf16 instead of f32).
        out_up = bilinear_interp_nhwc(out.astype(jnp.float32), 2.0).astype(jnp.bfloat16)
        x_up = bilinear_interp_nhwc(x.astype(jnp.float32), 2.0).astype(jnp.bfloat16)
        y = conv3x3_lrelu_skip(out_up, x_up, params["w2"], params["b2"], params["wskip"],
                               pool_skip=False, tile_h=tile_h2)
    else:
        raise ValueError(f"unknown mode: {mode}")
    # TODO(synk): emit bf16 here (out_dtype of conv3x3_lrelu_skip) if the
    # consumer tolerates it; kept f32 to match the PyTorch module boundary.
    return jnp.transpose(y, (0, 3, 1, 2))


def _leaky(v):
    return jnp.where(v >= 0, v, 0.2 * v)


def _ref_conv3x3(x_nhwc, w_oihw, b):
    w_hwio = jnp.transpose(w_oihw, (2, 3, 1, 0))
    y = jax.lax.conv_general_dilated(
        x_nhwc, w_hwio, window_strides=(1, 1), padding=((1, 1), (1, 1)),
        dimension_numbers=("NHWC", "HWIO", "NHWC"),
        precision=jax.lax.Precision.HIGHEST)
    return y + b.reshape(1, 1, 1, -1)


def resblock_reference(x_nchw, raw, mode="down"):
    scale = 0.5 if mode == "down" else 2.0
    x = jnp.transpose(x_nchw, (0, 2, 3, 1)).astype(jnp.float32)
    out = _leaky(_ref_conv3x3(x, raw["w1"], raw["b1"]))
    out = bilinear_interp_nhwc(out, scale)
    out = _leaky(_ref_conv3x3(out, raw["w2"], raw["b2"]))
    xs = bilinear_interp_nhwc(x, scale)
    skip = jnp.einsum("nhwc,cd->nhwd", xs,
                      jnp.transpose(raw["ws"][:, :, 0, 0], (1, 0)),
                      precision=jax.lax.Precision.HIGHEST)
    return jnp.transpose(out + skip, (0, 3, 1, 2))


if __name__ == "__main__":
    key = jax.random.PRNGKey(0)
    kx, kp = jax.random.split(key)

    N, Cin, Cout, H, W = 2, 4, 8, 16, 16
    x = jax.random.normal(kx, (N, Cin, H, W), jnp.float32)
    params = init_resblock_params(kp, Cin, Cout)

    fwd = jax.jit(resblock_forward, static_argnames=("mode", "tile_h1", "tile_h2"))
    # Auto tile picking keeps >= 2 row tiles per image (tile_h=8 for kernel 1,
    # tile_h=4 for kernel 2 at these sizes), exercising the halo path.
    y = fwd(x, params, mode="down")
    y = jax.block_until_ready(y)

    assert y.shape == (N, Cout, H // 2, W // 2), y.shape
    assert bool(jnp.all(jnp.isfinite(y)))

    y_ref = resblock_reference(x, params["raw"], mode="down")
    err = float(jnp.max(jnp.abs(y - y_ref)))
    assert err < 5e-2, f"max abs error vs f32 reference: {err}"
    print("KERNEL_OK")
</pallas_src>

<mosaic_0001>
module attributes {stable_mosaic.version = 11 : i64} {
  func.func @kernel(%arg0: i32, %arg1: i32, %arg2: memref<1x1x16x4xbf16, #tpu.memory_space<vmem>>, %arg3: memref<1x8x16x4xbf16, #tpu.memory_space<vmem>>, %arg4: memref<1x1x16x4xbf16, #tpu.memory_space<vmem>>, %arg5: memref<3x12x4xbf16, #tpu.memory_space<vmem>>, %arg6: memref<1x4xf32, #tpu.memory_space<vmem>>, %arg7: memref<1x4x8x4xbf16, #tpu.memory_space<vmem>>, %arg8: memref<10x24x4xbf16, #tpu.memory_space<vmem>>, %arg9: memref<4x24x4xf32, #tpu.memory_space<vmem>>) attributes {dimension_semantics = [#tpu.dimension_semantics<parallel>, #tpu.dimension_semantics<parallel>], iteration_bounds = array<i64: 2, 2>, scalar_prefetch = 0 : i64, scratch_operands = 2 : i64, tpu.core_type = #tpu.core_type<tc>, window_params = [{transform_indices = @transform_0, window_bounds = array<i64: 1, 1, 16, 4>}, {transform_indices = @transform_1, window_bounds = array<i64: 1, 8, 16, 4>}, {transform_indices = @transform_2, window_bounds = array<i64: 1, 1, 16, 4>}, {pipeline_mode = #tpu.pipeline_mode<synchronous>, transform_indices = @transform_3, window_bounds = array<i64: 3, 12, 4>}, {pipeline_mode = #tpu.pipeline_mode<synchronous>, transform_indices = @transform_4, window_bounds = array<i64: 1, 4>}, {transform_indices = @transform_5, window_bounds = array<i64: 1, 4, 8, 4>}]} {
    %cst = arith.constant 0.000000e+00 : bf16
    %0 = vector.broadcast %cst : bf16 to vector<10x8x4xbf16>
    %c0 = arith.constant 0 : index
    %c16 = arith.constant 16 : index
    %c0_0 = arith.constant 0 : index
    %1 = vector.load %arg8[%c0, %c16, %c0_0] : memref<10x24x4xbf16, #tpu.memory_space<vmem>>, vector<10x8x4xbf16>
    tpu.vector_store %arg8[%c0, %c16, %c0_0], %0 {strides = array<i32>} : memref<10x24x4xbf16, #tpu.memory_space<vmem>>, vector<10x8x4xbf16>,
    %c0_1 = arith.constant 0 : index
    %c0_2 = arith.constant 0 : index
    %c0_3 = arith.constant 0 : index
    %c0_4 = arith.constant 0 : index
    %2 = vector.load %arg2[%c0_1, %c0_2, %c0_3, %c0_4] : memref<1x1x16x4xbf16, #tpu.memory_space<vmem>>, vector<1x1x16x4xbf16>
    %3 = vector.shape_cast %2 : vector<1x1x16x4xbf16> to vector<16x4xbf16>
    %c0_i32 = arith.constant 0 : i32
    %4 = arith.cmpi sgt, %arg1, %c0_i32 : i32
    %5 = arith.extui %4 : i1 to i32
    %6 = arith.sitofp %5 : i32 to f32
    %7 = arith.truncf %6 : f32 to bf16
    %8 = vector.broadcast %7 : bf16 to vector<16x4xbf16>
    %9 = arith.mulf %3, %8 : vector<16x4xbf16>
    %c0_5 = arith.constant 0 : index
    %c0_6 = arith.constant 0 : index
    %c0_7 = arith.constant 0 : index
    %c0_8 = arith.constant 0 : index
    %10 = vector.load %arg4[%c0_5, %c0_6, %c0_7, %c0_8] : memref<1x1x16x4xbf16, #tpu.memory_space<vmem>>, vector<1x1x16x4xbf16>
    %11 = vector.shape_cast %10 : vector<1x1x16x4xbf16> to vector<16x4xbf16>
    %c1_i32 = arith.constant 1 : i32
    %12 = arith.cmpi slt, %arg1, %c1_i32 : i32
    %13 = arith.extui %12 : i1 to i32
    %14 = arith.sitofp %13 : i32 to f32
    %15 = arith.truncf %14 : f32 to bf16
    %16 = vector.broadcast %15 : bf16 to vector<16x4xbf16>
    %17 = arith.mulf %11, %16 : vector<16x4xbf16>
    %c0_9 = arith.constant 0 : index
    %c0_10 = arith.constant 0 : index
    %c0_11 = arith.constant 0 : index
    %18 = vector.load %arg8[%c0_9, %c0_10, %c0_11] : memref<10x24x4xbf16, #tpu.memory_space<vmem>>, vector<1x16x4xbf16>
    %19 = vector.shape_cast %18 : vector<1x16x4xbf16> to vector<16x4xbf16>
    %20 = vector.shape_cast %9 : vector<16x4xbf16> to vector<1x16x4xbf16>
    tpu.vector_store %arg8[%c0_9, %c0_10, %c0_11], %20 {strides = array<i32>} : memref<10x24x4xbf16, #tpu.memory_space<vmem>>, vector<1x16x4xbf16>,
    %c0_12 = arith.constant 0 : index
    %c0_13 = arith.constant 0 : index
    %c0_14 = arith.constant 0 : index
    %c0_15 = arith.constant 0 : index
    %21 = vector.load %arg3[%c0_12, %c0_13, %c0_14, %c0_15] : memref<1x8x16x4xbf16, #tpu.memory_space<vmem>>, vector<1x8x16x4xbf16>
    %22 = vector.shape_cast %21 : vector<1x8x16x4xbf16> to vector<8x16x4xbf16>
    %c1 = arith.constant 1 : index
    %c0_16 = arith.constant 0 : index
    %c0_17 = arith.constant 0 : index
    %23 = vector.load %arg8[%c1, %c0_16, %c0_17] : memref<10x24x4xbf16, #tpu.memory_space<vmem>>, vector<8x16x4xbf16>
    tpu.vector_store %arg8[%c1, %c0_16, %c0_17], %22 {strides = array<i32>} : memref<10x24x4xbf16, #tpu.memory_space<vmem>>, vector<8x16x4xbf16>,
    %c9 = arith.constant 9 : index
    %c0_18 = arith.constant 0 : index
    %c0_19 = arith.constant 0 : index
    %24 = vector.load %arg8[%c9, %c0_18, %c0_19] : memref<10x24x4xbf16, #tpu.memory_space<vmem>>, vector<1x16x4xbf16>
    %25 = vector.shape_cast %24 : vector<1x16x4xbf16> to vector<16x4xbf16>
    %26 = vector.shape_cast %17 : vector<16x4xbf16> to vector<1x16x4xbf16>
    tpu.vector_store %arg8[%c9, %c0_18, %c0_19], %26 {strides = array<i32>} : memref<10x24x4xbf16, #tpu.memory_space<vmem>>, vector<1x16x4xbf16>,
    %c0_20 = arith.constant 0 : index
    %c0_21 = arith.constant 0 : index
    %c0_22 = arith.constant 0 : index
    %27 = vector.load %arg8[%c0_20, %c0_21, %c0_22] : memref<10x24x4xbf16, #tpu.memory_space<vmem>>, vector<8x24x4xbf16>
    %28 = vector.shape_cast %27 : vector<8x24x4xbf16> to vector<192x4xbf16>
    %c1_23 = arith.constant 1 : index
    %c0_24 = arith.constant 0 : index
    %c0_25 = arith.constant 0 : index
    %29 = vector.load %arg8[%c1_23, %c0_24, %c0_25] : memref<10x24x4xbf16, #tpu.memory_space<vmem>>, vector<8x24x4xbf16>
    %30 = vector.shape_cast %29 : vector<8x24x4xbf16> to vector<192x4xbf16>
    %c2 = arith.constant 2 : index
    %c0_26 = arith.constant 0 : index
    %c0_27 = arith.constant 0 : index
    %31 = vector.load %arg8[%c2, %c0_26, %c0_27] : memref<10x24x4xbf16, #tpu.memory_space<vmem>>, vector<8x24x4xbf16>
    %32 = vector.shape_cast %31 : vector<8x24x4xbf16> to vector<192x4xbf16>
    %c0_28 = arith.constant 0 : index
    %c0_29 = arith.constant 0 : index
    %c0_30 = arith.constant 0 : index
    %33 = vector.load %arg5[%c0_28, %c0_29, %c0_30] : memref<3x12x4xbf16, #tpu.memory_space<vmem>>, vector<1x4x4xbf16>
    %34 = vector.shape_cast %33 : vector<1x4x4xbf16> to vector<4x4xbf16>
    %cst_31 = arith.constant dense<0.000000e+00> : vector<192x4xf32>
    %35 = tpu.matmul %28, %34, %cst_31 {dimension_numbers = #tpu.dot_dimension_numbers<[1], [0], [0], [1], [0, 0, 1, 1], [], []>} : vector<192x4xbf16>, vector<4x4xbf16>, vector<192x4xf32> -> vector<192x4xf32>
    %c0_32 = arith.constant 0 : index
    %c4 = arith.constant 4 : index
    %c0_33 = arith.constant 0 : index
    %36 = vector.load %arg5[%c0_32, %c4, %c0_33] : memref<3x12x4xbf16, #tpu.memory_space<vmem>>, vector<1x4x4xbf16>
    %37 = vector.shape_cast %36 : vector<1x4x4xbf16> to vector<4x4xbf16>
    %cst_34 = arith.constant dense<0.000000e+00> : vector<192x4xf32>
    %38 = tpu.matmul %30, %37, %cst_34 {dimension_numbers = #tpu.dot_dimension_numbers<[1], [0], [0], [1], [0, 0, 1, 1], [], []>} : vector<192x4xbf16>, vector<4x4xbf16>, vector<192x4xf32> -> vector<192x4xf32>
    %39 = arith.addf %35, %38 : vector<192x4xf32>
    %c0_35 = arith.constant 0 : index
    %c8 = arith.constant 8 : index
    %c0_36 = arith.constant 0 : index
    %40 = vector.load %arg5[%c0_35, %c8, %c0_36] : memref<3x12x4xbf16, #tpu.memory_space<vmem>>, vector<1x4x4xbf16>
    %41 = vector.shape_cast %40 : vector<1x4x4xbf16> to vector<4x4xbf16>
    %cst_37 = arith.constant dense<0.000000e+00> : vector<192x4xf32>
    %42 = tpu.matmul %32, %41, %cst_37 {dimension_numbers = #tpu.dot_dimension_numbers<[1], [0], [0], [1], [0, 0, 1, 1], [], []>} : vector<192x4xbf16>, vector<4x4xbf16>, vector<192x4xf32> -> vector<192x4xf32>
    %43 = arith.addf %39, %42 : vector<192x4xf32>
    %c1_38 = arith.constant 1 : index
    %c0_39 = arith.constant 0 : index
    %c0_40 = arith.constant 0 : index
    %44 = vector.load %arg5[%c1_38, %c0_39, %c0_40] : memref<3x12x4xbf16, #tpu.memory_space<vmem>>, vector<1x4x4xbf16>
    %45 = vector.shape_cast %44 : vector<1x4x4xbf16> to vector<4x4xbf16>
    %cst_41 = arith.constant dense<0.000000e+00> : vector<192x4xf32>
    %46 = tpu.matmul %28, %45, %cst_41 {dimension_numbers = #tpu.dot_dimension_numbers<[1], [0], [0], [1], [0, 0, 1, 1], [], []>} : vector<192x4xbf16>, vector<4x4xbf16>, vector<192x4xf32> -> vector<192x4xf32>
    %c1_42 = arith.constant 1 : index
    %c4_43 = arith.constant 4 : index
    %c0_44 = arith.constant 0 : index
    %47 = vector.load %arg5[%c1_42, %c4_43, %c0_44] : memref<3x12x4xbf16, #tpu.memory_space<vmem>>, vector<1x4x4xbf16>
    %48 = vector.shape_cast %47 : vector<1x4x4xbf16> to vector<4x4xbf16>
    %cst_45 = arith.constant dense<0.000000e+00> : vector<192x4xf32>
    %49 = tpu.matmul %30, %48, %cst_45 {dimension_numbers = #tpu.dot_dimension_numbers<[1], [0], [0], [1], [0, 0, 1, 1], [], []>} : vector<192x4xbf16>, vector<4x4xbf16>, vector<192x4xf32> -> vector<192x4xf32>
    %50 = arith.addf %46, %49 : vector<192x4xf32>
    %c1_46 = arith.constant 1 : index
    %c8_47 = arith.constant 8 : index
    %c0_48 = arith.constant 0 : index
    %51 = vector.load %arg5[%c1_46, %c8_47, %c0_48] : memref<3x12x4xbf16, #tpu.memory_space<vmem>>, vector<1x4x4xbf16>
    %52 = vector.shape_cast %51 : vector<1x4x4xbf16> to vector<4x4xbf16>
    %cst_49 = arith.constant dense<0.000000e+00> : vector<192x4xf32>
    %53 = tpu.matmul %32, %52, %cst_49 {dimension_numbers = #tpu.dot_dimension_numbers<[1], [0], [0], [1], [0, 0, 1, 1], [], []>} : vector<192x4xbf16>, vector<4x4xbf16>, vector<192x4xf32> -> vector<192x4xf32>
    %54 = arith.addf %50, %53 : vector<192x4xf32>
    %c2_50 = arith.constant 2 : index
    %c0_51 = arith.constant 0 : index
    %c0_52 = arith.constant 0 : index
    %55 = vector.load %arg5[%c2_50, %c0_51, %c0_52] : memref<3x12x4xbf16, #tpu.memory_space<vmem>>, vector<1x4x4xbf16>
    %56 = vector.shape_cast %55 : vector<1x4x4xbf16> to vector<4x4xbf16>
    %cst_53 = arith.constant dense<0.000000e+00> : vector<192x4xf32>
    %57 = tpu.matmul %28, %56, %cst_53 {dimension_numbers = #tpu.dot_dimension_numbers<[1], [0], [0], [1], [0, 0, 1, 1], [], []>} : vector<192x4xbf16>, vector<4x4xbf16>, vector<192x4xf32> -> vector<192x4xf32>
    %c2_54 = arith.constant 2 : index
    %c4_55 = arith.constant 4 : index
    %c0_56 = arith.constant 0 : index
    %58 = vector.load %arg5[%c2_54, %c4_55, %c0_56] : memref<3x12x4xbf16, #tpu.memory_space<vmem>>, vector<1x4x4xbf16>
    %59 = vector.shape_cast %58 : vector<1x4x4xbf16> to vector<4x4xbf16>
    %cst_57 = arith.constant dense<0.000000e+00> : vector<192x4xf32>
    %60 = tpu.matmul %30, %59, %cst_57 {dimension_numbers = #tpu.dot_dimension_numbers<[1], [0], [0], [1], [0, 0, 1, 1], [], []>} : vector<192x4xbf16>, vector<4x4xbf16>, vector<192x4xf32> -> vector<192x4xf32>
    %61 = arith.addf %57, %60 : vector<192x4xf32>
    %c2_58 = arith.constant 2 : index
    %c8_59 = arith.constant 8 : index
    %c0_60 = arith.constant 0 : index
    %62 = vector.load %arg5[%c2_58, %c8_59, %c0_60] : memref<3x12x4xbf16, #tpu.memory_space<vmem>>, vector<1x4x4xbf16>
    %63 = vector.shape_cast %62 : vector<1x4x4xbf16> to vector<4x4xbf16>
    %cst_61 = arith.constant dense<0.000000e+00> : vector<192x4xf32>
    %64 = tpu.matmul %32, %63, %cst_61 {dimension_numbers = #tpu.dot_dimension_numbers<[1], [0], [0], [1], [0, 0, 1, 1], [], []>} : vector<192x4xbf16>, vector<4x4xbf16>, vector<192x4xf32> -> vector<192x4xf32>
    %65 = arith.addf %61, %64 : vector<192x4xf32>
    %cst_62 = arith.constant 0.000000e+00 : f32
    %66 = vector.broadcast %cst_62 : f32 to vector<1x4xf32>
    %67 = vector.extract_strided_slice %43 {offsets = [0, 0], sizes = [191, 4], strides = [1, 1]} : vector<192x4xf32> to vector<191x4xf32>
    %68 = tpu.concatenate %66, %67 in 0 : vector<1x4xf32>, vector<191x4xf32> -> vector<192x4xf32>
    %69 = vector.extract_strided_slice %65 {offsets = [1, 0], sizes = [191, 4], strides = [1, 1]} : vector<192x4xf32> to vector<191x4xf32>
    %70 = tpu.concatenate %69, %66 in 0 : vector<191x4xf32>, vector<1x4xf32> -> vector<192x4xf32>
    %c0_63 = arith.constant 0 : index
    %c0_64 = arith.constant 0 : index
    %71 = vector.load %arg6[%c0_63, %c0_64] : memref<1x4xf32, #tpu.memory_space<vmem>>, vector<1x4xf32>
    %72 = vector.broadcast %71 : vector<1x4xf32> to vector<192x4xf32>
    %73 = arith.addf %72, %54 : vector<192x4xf32>
    %74 = arith.addf %73, %68 : vector<192x4xf32>
    %75 = arith.addf %74, %70 : vector<192x4xf32>
    %cst_65 = arith.constant 2.000000e-01 : f32
    %76 = vector.broadcast %cst_65 : f32 to vector<192x4xf32>
    %77 = arith.mulf %76, %75 : vector<192x4xf32>
    %78 = arith.maximumf %75, %77 : vector<192x4xf32>
    %79 = vector.shape_cast %78 : vector<192x4xf32> to vector<8x24x4xf32>
    %80 = vector.shape_cast %79 : vector<8x24x4xf32> to vector<4x2x24x4xf32>
    %81 = vector.extract_strided_slice %80 {offsets = [0, 0, 0, 0], sizes = [4, 1, 24, 4], strides = [1, 1, 1, 1]} : vector<4x2x24x4xf32> to vector<4x1x24x4xf32>
    %82 = vector.shape_cast %81 : vector<4x1x24x4xf32> to vector<4x24x4xf32>
    %83 = vector.extract_strided_slice %80 {offsets = [0, 1, 0, 0], sizes = [4, 1, 24, 4], strides = [1, 1, 1, 1]} : vector<4x2x24x4xf32> to vector<4x1x24x4xf32>
    %84 = vector.shape_cast %83 : vector<4x1x24x4xf32> to vector<4x24x4xf32>
    %85 = arith.addf %82, %84 : vector<4x24x4xf32>
    %c0_66 = arith.constant 0 : index
    %c0_67 = arith.constant 0 : index
    %c0_68 = arith.constant 0 : index
    %86 = vector.load %arg9[%c0_66, %c0_67, %c0_68] : memref<4x24x4xf32, #tpu.memory_space<vmem>>, vector<4x24x4xf32>
    tpu.vector_store %arg9[%c0_66, %c0_67, %c0_68], %85 {strides = array<i32>} : memref<4x24x4xf32, #tpu.memory_space<vmem>>, vector<4x24x4xf32>,
    %c0_69 = arith.constant 0 : index
    %c0_70 = arith.constant 0 : index
    %c0_71 = arith.constant 0 : index
    %87 = tpu.strided_load %arg9[%c0_69, %c0_70, %c0_71] {strides = array<i32: 1, 2, 1>} : memref<4x24x4xf32, #tpu.memory_space<vmem>>, vector<4x8x4xf32>
    %c0_72 = arith.constant 0 : index
    %c1_73 = arith.constant 1 : index
    %c0_74 = arith.constant 0 : index
    %88 = tpu.strided_load %arg9[%c0_72, %c1_73, %c0_74] {strides = array<i32: 1, 2, 1>} : memref<4x24x4xf32, #tpu.memory_space<vmem>>, vector<4x8x4xf32>
    %89 = arith.addf %87, %88 : vector<4x8x4xf32>
    %cst_75 = arith.constant 2.500000e-01 : f32
    %90 = vector.broadcast %cst_75 : f32 to vector<4x8x4xf32>
    %91 = arith.mulf %89, %90 : vector<4x8x4xf32>
    %92 = arith.truncf %91 : vector<4x8x4xf32> to vector<4x8x4xbf16>
    %c0_76 = arith.constant 0 : index
    %c0_77 = arith.constant 0 : index
    %c0_78 = arith.constant 0 : index
    %c0_79 = arith.constant 0 : index
    %93 = vector.load %arg7[%c0_76, %c0_77, %c0_78, %c0_79] : memref<1x4x8x4xbf16, #tpu.memory_space<vmem>>, vector<1x4x8x4xbf16>
    %94 = vector.shape_cast %93 : vector<1x4x8x4xbf16> to vector<4x8x4xbf16>
    %95 = vector.shape_cast %92 : vector<4x8x4xbf16> to vector<1x4x8x4xbf16>
    tpu.vector_store %arg7[%c0_76, %c0_77, %c0_78, %c0_79], %95 {strides = array<i32>} : memref<1x4x8x4xbf16, #tpu.memory_space<vmem>>, vector<1x4x8x4xbf16>,
    return
  }
  func.func @transform_0(%arg0: i32, %arg1: i32) -> (i32, i32, i32, i32) {
    %c8_i32 = arith.constant 8 : i32
    %0 = arith.muli %arg1, %c8_i32 : i32
    %c1_i32 = arith.constant 1 : i32
    %1 = arith.subi %0, %c1_i32 : i32
    %c0_i32 = arith.constant 0 : i32
    %2 = arith.maxsi %1, %c0_i32 : i32
    %c0_i32_0 = arith.constant 0 : i32
    %c0_i32_1 = arith.constant 0 : i32
    %c0_i32_2 = arith.constant 0 : i32
    return %arg0, %2, %c0_i32_0, %c0_i32_1 : i32, i32, i32, i32
  }
  func.func @transform_1(%arg0: i32, %arg1: i32) -> (i32, i32, i32, i32) {
    %c0_i32 = arith.constant 0 : i32
    %c0_i32_0 = arith.constant 0 : i32
    %c0_i32_1 = arith.constant 0 : i32
    return %arg0, %arg1, %c0_i32, %c0_i32_0 : i32, i32, i32, i32
  }
  func.func @transform_2(%arg0: i32, %arg1: i32) -> (i32, i32, i32, i32) {
    %c8_i32 = arith.constant 8 : i32
    %0 = arith.muli %arg1, %c8_i32 : i32
    %c8_i32_0 = arith.constant 8 : i32
    %1 = arith.addi %0, %c8_i32_0 : i32
    %c15_i32 = arith.constant 15 : i32
    %2 = arith.minsi %1, %c15_i32 : i32
    %c0_i32 = arith.constant 0 : i32
    %c0_i32_1 = arith.constant 0 : i32
    %c0_i32_2 = arith.constant 0 : i32
    return %arg0, %2, %c0_i32, %c0_i32_1 : i32, i32, i32, i32
  }
  func.func @transform_3(%arg0: i32, %arg1: i32) -> (i32, i32, i32) {
    %c0_i32 = arith.constant 0 : i32
    %c0_i32_0 = arith.constant 0 : i32
    %c0_i32_1 = arith.constant 0 : i32
    %c0_i32_2 = arith.constant 0 : i32
    return %c0_i32, %c0_i32_0, %c0_i32_1 : i32, i32, i32
  }
  func.func @transform_4(%arg0: i32, %arg1: i32) -> (i32, i32) {
    %c0_i32 = arith.constant 0 : i32
    %c0_i32_0 = arith.constant 0 : i32
    %c0_i32_1 = arith.constant 0 : i32
    return %c0_i32, %c0_i32_0 : i32, i32
  }
  func.func @transform_5(%arg0: i32, %arg1: i32) -> (i32, i32, i32, i32) {
    %c0_i32 = arith.constant 0 : i32
    %c0_i32_0 = arith.constant 0 : i32
    %c0_i32_1 = arith.constant 0 : i32
    return %arg0, %arg1, %c0_i32, %c0_i32_0 : i32, i32, i32, i32
  }
}

module attributes {stable_mosaic.version = 11 : i64} {
  func.func @kernel(%arg0: i32, %arg1: i32, %arg2: memref<1x1x8x4xbf16, #tpu.memory_space<vmem>>, %arg3: memref<1x4x8x4xbf16, #tpu.memory_space<vmem>>, %arg4: memref<1x1x8x4xbf16, #tpu.memory_space<vmem>>, %arg5: memref<1x8x16x4xbf16, #tpu.memory_space<vmem>>, %arg6: memref<3x12x8xbf16, #tpu.memory_space<vmem>>, %arg7: memref<1x8xf32, #tpu.memory_space<vmem>>, %arg8: memref<4x8xbf16, #tpu.memory_space<vmem>>, %arg9: memref<1x4x8x8xf32, #tpu.memory_space<vmem>>, %arg10: memref<6x16x4xbf16, #tpu.memory_space<vmem>>, %arg11: memref<4x16x4xf32, #tpu.memory_space<vmem>>) attributes {dimension_semantics = [#tpu.dimension_semantics<parallel>, #tpu.dimension_semantics<parallel>], iteration_bounds = array<i64: 2, 2>, scalar_prefetch = 0 : i64, scratch_operands = 2 : i64, tpu.core_type = #tpu.core_type<tc>, window_params = [{transform_indices = @transform_0, window_bounds = array<i64: 1, 1, 8, 4>}, {transform_indices = @transform_1, window_bounds = array<i64: 1, 4, 8, 4>}, {transform_indices = @transform_2, window_bounds = array<i64: 1, 1, 8, 4>}, {transform_indices = @transform_3, window_bounds = array<i64: 1, 8, 16, 4>}, {pipeline_mode = #tpu.pipeline_mode<synchronous>, transform_indices = @transform_4, window_bounds = array<i64: 3, 12, 8>}, {pipeline_mode = #tpu.pipeline_mode<synchronous>, transform_indices = @transform_5, window_bounds = array<i64: 1, 8>}, {pipeline_mode = #tpu.pipeline_mode<synchronous>, transform_indices = @transform_6, window_bounds = array<i64: 4, 8>}, {transform_indices = @transform_7, window_bounds = array<i64: 1, 4, 8, 8>}]} {
    %cst = arith.constant 0.000000e+00 : bf16
    %0 = vector.broadcast %cst : bf16 to vector<6x8x4xbf16>
    %c0 = arith.constant 0 : index
    %c8 = arith.constant 8 : index
    %c0_0 = arith.constant 0 : index
    %1 = vector.load %arg10[%c0, %c8, %c0_0] : memref<6x16x4xbf16, #tpu.memory_space<vmem>>, vector<6x8x4xbf16>
    tpu.vector_store %arg10[%c0, %c8, %c0_0], %0 {strides = array<i32>} : memref<6x16x4xbf16, #tpu.memory_space<vmem>>, vector<6x8x4xbf16>,
    %c0_1 = arith.constant 0 : index
    %c0_2 = arith.constant 0 : index
    %c0_3 = arith.constant 0 : index
    %c0_4 = arith.constant 0 : index
    %2 = vector.load %arg2[%c0_1, %c0_2, %c0_3, %c0_4] : memref<1x1x8x4xbf16, #tpu.memory_space<vmem>>, vector<1x1x8x4xbf16>
    %3 = vector.shape_cast %2 : vector<1x1x8x4xbf16> to vector<8x4xbf16>
    %c0_i32 = arith.constant 0 : i32
    %4 = arith.cmpi sgt, %arg1, %c0_i32 : i32
    %5 = arith.extui %4 : i1 to i32
    %6 = arith.sitofp %5 : i32 to f32
    %7 = arith.truncf %6 : f32 to bf16
    %8 = vector.broadcast %7 : bf16 to vector<8x4xbf16>
    %9 = arith.mulf %3, %8 : vector<8x4xbf16>
    %c0_5 = arith.constant 0 : index
    %c0_6 = arith.constant 0 : index
    %c0_7 = arith.constant 0 : index
    %c0_8 = arith.constant 0 : index
    %10 = vector.load %arg4[%c0_5, %c0_6, %c0_7, %c0_8] : memref<1x1x8x4xbf16, #tpu.memory_space<vmem>>, vector<1x1x8x4xbf16>
    %11 = vector.shape_cast %10 : vector<1x1x8x4xbf16> to vector<8x4xbf16>
    %c1_i32 = arith.constant 1 : i32
    %12 = arith.cmpi slt, %arg1, %c1_i32 : i32
    %13 = arith.extui %12 : i1 to i32
    %14 = arith.sitofp %13 : i32 to f32
    %15 = arith.truncf %14 : f32 to bf16
    %16 = vector.broadcast %15 : bf16 to vector<8x4xbf16>
    %17 = arith.mulf %11, %16 : vector<8x4xbf16>
    %c0_9 = arith.constant 0 : index
    %c0_10 = arith.constant 0 : index
    %c0_11 = arith.constant 0 : index
    %18 = vector.load %arg10[%c0_9, %c0_10, %c0_11] : memref<6x16x4xbf16, #tpu.memory_space<vmem>>, vector<1x8x4xbf16>
    %19 = vector.shape_cast %18 : vector<1x8x4xbf16> to vector<8x4xbf16>
    %20 = vector.shape_cast %9 : vector<8x4xbf16> to vector<1x8x4xbf16>
    tpu.vector_store %arg10[%c0_9, %c0_10, %c0_11], %20 {strides = array<i32>} : memref<6x16x4xbf16, #tpu.memory_space<vmem>>, vector<1x8x4xbf16>,
    %c0_12 = arith.constant 0 : index
    %c0_13 = arith.constant 0 : index
    %c0_14 = arith.constant 0 : index
    %c0_15 = arith.constant 0 : index
    %21 = vector.load %arg3[%c0_12, %c0_13, %c0_14, %c0_15] : memref<1x4x8x4xbf16, #tpu.memory_space<vmem>>, vector<1x4x8x4xbf16>
    %22 = vector.shape_cast %21 : vector<1x4x8x4xbf16> to vector<4x8x4xbf16>
    %c1 = arith.constant 1 : index
    %c0_16 = arith.constant 0 : index
    %c0_17 = arith.constant 0 : index
    %23 = vector.load %arg10[%c1, %c0_16, %c0_17] : memref<6x16x4xbf16, #tpu.memory_space<vmem>>, vector<4x8x4xbf16>
    tpu.vector_store %arg10[%c1, %c0_16, %c0_17], %22 {strides = array<i32>} : memref<6x16x4xbf16, #tpu.memory_space<vmem>>, vector<4x8x4xbf16>,
    %c5 = arith.constant 5 : index
    %c0_18 = arith.constant 0 : index
    %c0_19 = arith.constant 0 : index
    %24 = vector.load %arg10[%c5, %c0_18, %c0_19] : memref<6x16x4xbf16, #tpu.memory_space<vmem>>, vector<1x8x4xbf16>
    %25 = vector.shape_cast %24 : vector<1x8x4xbf16> to vector<8x4xbf16>
    %26 = vector.shape_cast %17 : vector<8x4xbf16> to vector<1x8x4xbf16>
    tpu.vector_store %arg10[%c5, %c0_18, %c0_19], %26 {strides = array<i32>} : memref<6x16x4xbf16, #tpu.memory_space<vmem>>, vector<1x8x4xbf16>,
    %c0_20 = arith.constant 0 : index
    %c0_21 = arith.constant 0 : index
    %c0_22 = arith.constant 0 : index
    %27 = vector.load %arg10[%c0_20, %c0_21, %c0_22] : memref<6x16x4xbf16, #tpu.memory_space<vmem>>, vector<4x16x4xbf16>
    %28 = vector.shape_cast %27 : vector<4x16x4xbf16> to vector<64x4xbf16>
    %c1_23 = arith.constant 1 : index
    %c0_24 = arith.constant 0 : index
    %c0_25 = arith.constant 0 : index
    %29 = vector.load %arg10[%c1_23, %c0_24, %c0_25] : memref<6x16x4xbf16, #tpu.memory_space<vmem>>, vector<4x16x4xbf16>
    %30 = vector.shape_cast %29 : vector<4x16x4xbf16> to vector<64x4xbf16>
    %c2 = arith.constant 2 : index
    %c0_26 = arith.constant 0 : index
    %c0_27 = arith.constant 0 : index
    %31 = vector.load %arg10[%c2, %c0_26, %c0_27] : memref<6x16x4xbf16, #tpu.memory_space<vmem>>, vector<4x16x4xbf16>
    %32 = vector.shape_cast %31 : vector<4x16x4xbf16> to vector<64x4xbf16>
    %c0_28 = arith.constant 0 : index
    %c0_29 = arith.constant 0 : index
    %c0_30 = arith.constant 0 : index
    %33 = vector.load %arg6[%c0_28, %c0_29, %c0_30] : memref<3x12x8xbf16, #tpu.memory_space<vmem>>, vector<1x4x8xbf16>
    %34 = vector.shape_cast %33 : vector<1x4x8xbf16> to vector<4x8xbf16>
    %cst_31 = arith.constant dense<0.000000e+00> : vector<64x8xf32>
    %35 = tpu.matmul %28, %34, %cst_31 {dimension_numbers = #tpu.dot_dimension_numbers<[1], [0], [0], [1], [0, 0, 1, 1], [], []>} : vector<64x4xbf16>, vector<4x8xbf16>, vector<64x8xf32> -> vector<64x8xf32>
    %c0_32 = arith.constant 0 : index
    %c4 = arith.constant 4 : index
    %c0_33 = arith.constant 0 : index
    %36 = vector.load %arg6[%c0_32, %c4, %c0_33] : memref<3x12x8xbf16, #tpu.memory_space<vmem>>, vector<1x4x8xbf16>
    %37 = vector.shape_cast %36 : vector<1x4x8xbf16> to vector<4x8xbf16>
    %cst_34 = arith.constant dense<0.000000e+00> : vector<64x8xf32>
    %38 = tpu.matmul %30, %37, %cst_34 {dimension_numbers = #tpu.dot_dimension_numbers<[1], [0], [0], [1], [0, 0, 1, 1], [], []>} : vector<64x4xbf16>, vector<4x8xbf16>, vector<64x8xf32> -> vector<64x8xf32>
    %39 = arith.addf %35, %38 : vector<64x8xf32>
    %c0_35 = arith.constant 0 : index
    %c8_36 = arith.constant 8 : index
    %c0_37 = arith.constant 0 : index
    %40 = vector.load %arg6[%c0_35, %c8_36, %c0_37] : memref<3x12x8xbf16, #tpu.memory_space<vmem>>, vector<1x4x8xbf16>
    %41 = vector.shape_cast %40 : vector<1x4x8xbf16> to vector<4x8xbf16>
    %cst_38 = arith.constant dense<0.000000e+00> : vector<64x8xf32>
    %42 = tpu.matmul %32, %41, %cst_38 {dimension_numbers = #tpu.dot_dimension_numbers<[1], [0], [0], [1], [0, 0, 1, 1], [], []>} : vector<64x4xbf16>, vector<4x8xbf16>, vector<64x8xf32> -> vector<64x8xf32>
    %43 = arith.addf %39, %42 : vector<64x8xf32>
    %c1_39 = arith.constant 1 : index
    %c0_40 = arith.constant 0 : index
    %c0_41 = arith.constant 0 : index
    %44 = vector.load %arg6[%c1_39, %c0_40, %c0_41] : memref<3x12x8xbf16, #tpu.memory_space<vmem>>, vector<1x4x8xbf16>
    %45 = vector.shape_cast %44 : vector<1x4x8xbf16> to vector<4x8xbf16>
    %cst_42 = arith.constant dense<0.000000e+00> : vector<64x8xf32>
    %46 = tpu.matmul %28, %45, %cst_42 {dimension_numbers = #tpu.dot_dimension_numbers<[1], [0], [0], [1], [0, 0, 1, 1], [], []>} : vector<64x4xbf16>, vector<4x8xbf16>, vector<64x8xf32> -> vector<64x8xf32>
    %c1_43 = arith.constant 1 : index
    %c4_44 = arith.constant 4 : index
    %c0_45 = arith.constant 0 : index
    %47 = vector.load %arg6[%c1_43, %c4_44, %c0_45] : memref<3x12x8xbf16, #tpu.memory_space<vmem>>, vector<1x4x8xbf16>
    %48 = vector.shape_cast %47 : vector<1x4x8xbf16> to vector<4x8xbf16>
    %cst_46 = arith.constant dense<0.000000e+00> : vector<64x8xf32>
    %49 = tpu.matmul %30, %48, %cst_46 {dimension_numbers = #tpu.dot_dimension_numbers<[1], [0], [0], [1], [0, 0, 1, 1], [], []>} : vector<64x4xbf16>, vector<4x8xbf16>, vector<64x8xf32> -> vector<64x8xf32>
    %50 = arith.addf %46, %49 : vector<64x8xf32>
    %c1_47 = arith.constant 1 : index
    %c8_48 = arith.constant 8 : index
    %c0_49 = arith.constant 0 : index
    %51 = vector.load %arg6[%c1_47, %c8_48, %c0_49] : memref<3x12x8xbf16, #tpu.memory_space<vmem>>, vector<1x4x8xbf16>
    %52 = vector.shape_cast %51 : vector<1x4x8xbf16> to vector<4x8xbf16>
    %cst_50 = arith.constant dense<0.000000e+00> : vector<64x8xf32>
    %53 = tpu.matmul %32, %52, %cst_50 {dimension_numbers = #tpu.dot_dimension_numbers<[1], [0], [0], [1], [0, 0, 1, 1], [], []>} : vector<64x4xbf16>, vector<4x8xbf16>, vector<64x8xf32> -> vector<64x8xf32>
    %54 = arith.addf %50, %53 : vector<64x8xf32>
    %c2_51 = arith.constant 2 : index
    %c0_52 = arith.constant 0 : index
    %c0_53 = arith.constant 0 : index
    %55 = vector.load %arg6[%c2_51, %c0_52, %c0_53] : memref<3x12x8xbf16, #tpu.memory_space<vmem>>, vector<1x4x8xbf16>
    %56 = vector.shape_cast %55 : vector<1x4x8xbf16> to vector<4x8xbf16>
    %cst_54 = arith.constant dense<0.000000e+00> : vector<64x8xf32>
    %57 = tpu.matmul %28, %56, %cst_54 {dimension_numbers = #tpu.dot_dimension_numbers<[1], [0], [0], [1], [0, 0, 1, 1], [], []>} : vector<64x4xbf16>, vector<4x8xbf16>, vector<64x8xf32> -> vector<64x8xf32>
    %c2_55 = arith.constant 2 : index
    %c4_56 = arith.constant 4 : index
    %c0_57 = arith.constant 0 : index
    %58 = vector.load %arg6[%c2_55, %c4_56, %c0_57] : memref<3x12x8xbf16, #tpu.memory_space<vmem>>, vector<1x4x8xbf16>
    %59 = vector.shape_cast %58 : vector<1x4x8xbf16> to vector<4x8xbf16>
    %cst_58 = arith.constant dense<0.000000e+00> : vector<64x8xf32>
    %60 = tpu.matmul %30, %59, %cst_58 {dimension_numbers = #tpu.dot_dimension_numbers<[1], [0], [0], [1], [0, 0, 1, 1], [], []>} : vector<64x4xbf16>, vector<4x8xbf16>, vector<64x8xf32> -> vector<64x8xf32>
    %61 = arith.addf %57, %60 : vector<64x8xf32>
    %c2_59 = arith.constant 2 : index
    %c8_60 = arith.constant 8 : index
    %c0_61 = arith.constant 0 : index
    %62 = vector.load %arg6[%c2_59, %c8_60, %c0_61] : memref<3x12x8xbf16, #tpu.memory_space<vmem>>, vector<1x4x8xbf16>
    %63 = vector.shape_cast %62 : vector<1x4x8xbf16> to vector<4x8xbf16>
    %cst_62 = arith.constant dense<0.000000e+00> : vector<64x8xf32>
    %64 = tpu.matmul %32, %63, %cst_62 {dimension_numbers = #tpu.dot_dimension_numbers<[1], [0], [0], [1], [0, 0, 1, 1], [], []>} : vector<64x4xbf16>, vector<4x8xbf16>, vector<64x8xf32> -> vector<64x8xf32>
    %65 = arith.addf %61, %64 : vector<64x8xf32>
    %cst_63 = arith.constant 0.000000e+00 : f32
    %66 = vector.broadcast %cst_63 : f32 to vector<1x8xf32>
    %67 = vector.extract_strided_slice %43 {offsets = [0, 0], sizes = [63, 8], strides = [1, 1]} : vector<64x8xf32> to vector<63x8xf32>
    %68 = tpu.concatenate %66, %67 in 0 : vector<1x8xf32>, vector<63x8xf32> -> vector<64x8xf32>
    %69 = vector.extract_strided_slice %65 {offsets = [1, 0], sizes = [63, 8], strides = [1, 1]} : vector<64x8xf32> to vector<63x8xf32>
    %70 = tpu.concatenate %69, %66 in 0 : vector<63x8xf32>, vector<1x8xf32> -> vector<64x8xf32>
    %c0_64 = arith.constant 0 : index
    %c0_65 = arith.constant 0 : index
    %71 = vector.load %arg7[%c0_64, %c0_65] : memref<1x8xf32, #tpu.memory_space<vmem>>, vector<1x8xf32>
    %72 = vector.broadcast %71 : vector<1x8xf32> to vector<64x8xf32>
    %73 = arith.addf %72, %54 : vector<64x8xf32>
    %74 = arith.addf %73, %68 : vector<64x8xf32>
    %75 = arith.addf %74, %70 : vector<64x8xf32>
    %cst_66 = arith.constant 2.000000e-01 : f32
    %76 = vector.broadcast %cst_66 : f32 to vector<64x8xf32>
    %77 = arith.mulf %76, %75 : vector<64x8xf32>
    %78 = arith.maximumf %75, %77 : vector<64x8xf32>
    %79 = vector.shape_cast %78 : vector<64x8xf32> to vector<4x16x8xf32>
    %c0_67 = arith.constant 0 : index
    %c0_68 = arith.constant 0 : index
    %c0_69 = arith.constant 0 : index
    %c0_70 = arith.constant 0 : index
    %80 = vector.load %arg5[%c0_67, %c0_68, %c0_69, %c0_70] : memref<1x8x16x4xbf16, #tpu.memory_space<vmem>>, vector<1x8x16x4xbf16>
    %81 = vector.shape_cast %80 : vector<1x8x16x4xbf16> to vector<8x16x4xbf16>
    %82 = vector.shape_cast %81 : vector<8x16x4xbf16> to vector<4x2x16x4xbf16>
    %83 = vector.extract_strided_slice %82 {offsets = [0, 0, 0, 0], sizes = [4, 1, 16, 4], strides = [1, 1, 1, 1]} : vector<4x2x16x4xbf16> to vector<4x1x16x4xbf16>
    %84 = vector.shape_cast %83 : vector<4x1x16x4xbf16> to vector<4x16x4xbf16>
    %85 = arith.extf %84 : vector<4x16x4xbf16> to vector<4x16x4xf32>
    %86 = vector.extract_strided_slice %82 {offsets = [0, 1, 0, 0], sizes = [4, 1, 16, 4], strides = [1, 1, 1, 1]} : vector<4x2x16x4xbf16> to vector<4x1x16x4xbf16>
    %87 = vector.shape_cast %86 : vector<4x1x16x4xbf16> to vector<4x16x4xbf16>
    %88 = arith.extf %87 : vector<4x16x4xbf16> to vector<4x16x4xf32>
    %89 = arith.addf %85, %88 : vector<4x16x4xf32>
    %c0_71 = arith.constant 0 : index
    %c0_72 = arith.constant 0 : index
    %c0_73 = arith.constant 0 : index
    %90 = vector.load %arg11[%c0_71, %c0_72, %c0_73] : memref<4x16x4xf32, #tpu.memory_space<vmem>>, vector<4x16x4xf32>
    tpu.vector_store %arg11[%c0_71, %c0_72, %c0_73], %89 {strides = array<i32>} : memref<4x16x4xf32, #tpu.memory_space<vmem>>, vector<4x16x4xf32>,
    %c0_74 = arith.constant 0 : index
    %c0_75 = arith.constant 0 : index
    %c0_76 = arith.constant 0 : index
    %91 = tpu.strided_load %arg11[%c0_74, %c0_75, %c0_76] {strides = array<i32: 1, 2, 1>} : memref<4x16x4xf32, #tpu.memory_space<vmem>>, vector<4x8x4xf32>
    %c0_77 = arith.constant 0 : index
    %c1_78 = arith.constant 1 : index
    %c0_79 = arith.constant 0 : index
    %92 = tpu.strided_load %arg11[%c0_77, %c1_78, %c0_79] {strides = array<i32: 1, 2, 1>} : memref<4x16x4xf32, #tpu.memory_space<vmem>>, vector<4x8x4xf32>
    %93 = arith.addf %91, %92 : vector<4x8x4xf32>
    %94 = arith.truncf %93 : vector<4x8x4xf32> to vector<4x8x4xbf16>
    %95 = vector.shape_cast %94 : vector<4x8x4xbf16> to vector<32x4xbf16>
    %c0_80 = arith.constant 0 : index
    %c0_81 = arith.constant 0 : index
    %96 = vector.load %arg8[%c0_80, %c0_81] : memref<4x8xbf16, #tpu.memory_space<vmem>>, vector<4x8xbf16>
    %cst_82 = arith.constant dense<0.000000e+00> : vector<32x8xf32>
    %97 = tpu.matmul %95, %96, %cst_82 {dimension_numbers = #tpu.dot_dimension_numbers<[1], [0], [0], [1], [0, 0, 1, 1], [], []>} : vector<32x4xbf16>, vector<4x8xbf16>, vector<32x8xf32> -> vector<32x8xf32>
    %98 = vector.shape_cast %97 : vector<32x8xf32> to vector<4x8x8xf32>
    %99 = vector.extract_strided_slice %79 {offsets = [0, 0, 0], sizes = [4, 8, 8], strides = [1, 1, 1]} : vector<4x16x8xf32> to vector<4x8x8xf32>
    %100 = arith.addf %99, %98 : vector<4x8x8xf32>
    %c0_83 = arith.constant 0 : index
    %c0_84 = arith.constant 0 : index
    %c0_85 = arith.constant 0 : index
    %c0_86 = arith.constant 0 : index
    %101 = vector.load %arg9[%c0_83, %c0_84, %c0_85, %c0_86] : memref<1x4x8x8xf32, #tpu.memory_space<vmem>>, vector<1x4x8x8xf32>
    %102 = vector.shape_cast %101 : vector<1x4x8x8xf32> to vector<4x8x8xf32>
    %103 = vector.shape_cast %100 : vector<4x8x8xf32> to vector<1x4x8x8xf32>
    tpu.vector_store %arg9[%c0_83, %c0_84, %c0_85, %c0_86], %103 {strides = array<i32>} : memref<1x4x8x8xf32, #tpu.memory_space<vmem>>, vector<1x4x8x8xf32>,
    return
  }
  func.func @transform_0(%arg0: i32, %arg1: i32) -> (i32, i32, i32, i32) {
    %c4_i32 = arith.constant 4 : i32
    %0 = arith.muli %arg1, %c4_i32 : i32
    %c1_i32 = arith.constant 1 : i32
    %1 = arith.subi %0, %c1_i32 : i32
    %c0_i32 = arith.constant 0 : i32
    %2 = arith.maxsi %1, %c0_i32 : i32
    %c0_i32_0 = arith.constant 0 : i32
    %c0_i32_1 = arith.constant 0 : i32
    %c0_i32_2 = arith.constant 0 : i32
    return %arg0, %2, %c0_i32_0, %c0_i32_1 : i32, i32, i32, i32
  }
  func.func @transform_1(%arg0: i32, %arg1: i32) -> (i32, i32, i32, i32) {
    %c0_i32 = arith.constant 0 : i32
    %c0_i32_0 = arith.constant 0 : i32
    %c0_i32_1 = arith.constant 0 : i32
    return %arg0, %arg1, %c0_i32, %c0_i32_0 : i32, i32, i32, i32
  }
  func.func @transform_2(%arg0: i32, %arg1: i32) -> (i32, i32, i32, i32) {
    %c4_i32 = arith.constant 4 : i32
    %0 = arith.muli %arg1, %c4_i32 : i32
    %c4_i32_0 = arith.constant 4 : i32
    %1 = arith.addi %0, %c4_i32_0 : i32
    %c7_i32 = arith.constant 7 : i32
    %2 = arith.minsi %1, %c7_i32 : i32
    %c0_i32 = arith.constant 0 : i32
    %c0_i32_1 = arith.constant 0 : i32
    %c0_i32_2 = arith.constant 0 : i32
    return %arg0, %2, %c0_i32, %c0_i32_1 : i32, i32, i32, i32
  }
  func.func @transform_3(%arg0: i32, %arg1: i32) -> (i32, i32, i32, i32) {
    %c0_i32 = arith.constant 0 : i32
    %c0_i32_0 = arith.constant 0 : i32
    %c0_i32_1 = arith.constant 0 : i32
    return %arg0, %arg1, %c0_i32, %c0_i32_0 : i32, i32, i32, i32
  }
  func.func @transform_4(%arg0: i32, %arg1: i32) -> (i32, i32, i32) {
    %c0_i32 = arith.constant 0 : i32
    %c0_i32_0 = arith.constant 0 : i32
    %c0_i32_1 = arith.constant 0 : i32
    %c0_i32_2 = arith.constant 0 : i32
    return %c0_i32, %c0_i32_0, %c0_i32_1 : i32, i32, i32
  }
  func.func @transform_5(%arg0: i32, %arg1: i32) -> (i32, i32) {
    %c0_i32 = arith.constant 0 : i32
    %c0_i32_0 = arith.constant 0 : i32
    %c0_i32_1 = arith.constant 0 : i32
    return %c0_i32, %c0_i32_0 : i32, i32
  }
  func.func @transform_6(%arg0: i32, %arg1: i32) -> (i32, i32) {
    %c0_i32 = arith.constant 0 : i32
    %c0_i32_0 = arith.constant 0 : i32
    %c0_i32_1 = arith.constant 0 : i32
    return %c0_i32, %c0_i32_0 : i32, i32
  }
  func.func @transform_7(%arg0: i32, %arg1: i32) -> (i32, i32, i32, i32) {
    %c0_i32 = arith.constant 0 : i32
    %c0_i32_0 = arith.constant 0 : i32
    %c0_i32_1 = arith.constant 0 : i32
    return %arg0, %arg1, %c0_i32, %c0_i32_0 : i32, i32, i32, i32
  }
}

</mosaic_0001>

<bundles_post_ra>
// kernel: resblock_forward.3
= control target key start
LH: loop header
LB: loop body
LE: loop exit
PB: predicated region body
PF: predicated region fallthrough
CT: control target
= control target key end

     0   :  { %s1623_s24 = smov 0   ;;  %s1625_s25 = smov 0   ;;  %s1881_s0 = inlined_call_operand.vmem [shape: bf16[2,8,8,4], index: 0, kind: input, shape index: {}, may-alias: {0,1,2}]   ;;  %s1882_s1 = inlined_call_operand.vmem [shape: bf16[2,8,8,4], index: 1, kind: input, shape index: {}, may-alias: {0,1,2}]   ;;  %s1883_s2 = inlined_call_operand.vmem [shape: bf16[2,8,8,4], index: 2, kind: input, shape index: {}, may-alias: {0,1,2}]   ;;  %s1884_s3 = inlined_call_operand.vmem [shape: bf16[2,16,16,4], index: 3, kind: input, shape index: {}]   ;;  %s1885_s4 = inlined_call_operand.vmem [shape: bf16[3,12,8], index: 4, kind: input, shape index: {}]   ;;  %s1886_s5 = inlined_call_operand.vmem [shape: f32[1,8], index: 5, kind: input, shape index: {}]   ;;  %s1887_s6 = inlined_call_operand.vmem [shape: bf16[4,8], index: 6, kind: input, shape index: {}]   ;;  %s1888_s7 = inlined_call_operand.vmem [shape: f32[2,8,8,8], index: 7, kind: output, shape index: {}]  }
   0x1   :  { %1889 = sst [smem:[#allocation5_spill]] %s1882_s1  ;;  %s1627_s26 = smov 0  }
   0x2   :  { %s1629_s27 = smov 0   ;;  %s1631_s28 = smov 0  }
   0x3 LB: > { %s26_s29 = sadd.s32 1, %s1572_s26  ;;  %s29_s30 = sadd.s32 1, %s1576_s27  ;;  %s1580_s28 = sphi %s1631_s28, %s17_s28   ;;  %s1576_s27 = sphi %s1629_s27, %s1897_s27   ;;  %s1572_s26 = sphi %s1627_s26, %s1896_s26   ;;  %s1568_s25 = sphi %s1625_s25, %s1895_s25   ;;  %s1564_s24 = sphi %s1623_s24, %s1894_s24  }
   0x4   : > { %p27_p0 = scmp.ge.s32.totalorder %s26_s29, 2  ;;  %p1325_p1 = scmp.ge.s32.totalorder %s1580_s28, 1 }
   0x5   : > { %p338_p2 = scmp.lt.s32.totalorder %s1580_s28, 5 }
   0x6   : > { %s1899_s29 = smov (%p27_p0, %s26_s29), 0  ;;  %s1901_s30 = smov (!%p27_p0, %s29_s30), %s1576_s27 }
   0x7   : > { %p339_p3 = pnand %p1325_p1, %p338_p2  ;;  %p31_p4 = scmp.ge.s32.totalorder %s1901_s30, 2 }
   0x8   : > { %s1659_s10 = sshll.u32 (!%p339_p3), %s1564_s24, 2  ;;  %p416_p5 = scmp.lt.s32.totalorder (!%p339_p3), %s1568_s25, 1 }
   0x9   : > { %s1903_s30 = smov (%p31_p4, %s1901_s30), 0  ;;  %342 = sbr.rel (%p339_p3) target bundleno = 333 (0x14d), region = 48 }
   0xa   : > { %1890 = sst [smem:[#allocation4_spill]] %s1903_s30  ;;  %p431_p6 = scmp.lt.s32.totalorder (!%p339_p3), %s1659_s10, 7 }
   0xb   : > { %s1327_s19 = sadd.s32 (!%p339_p3), 4294967295, %s1659_s10  ;;  %s1891_s1 = sld [smem:[#allocation5_spill]] (!%p339_p3) }
   0xc   : > { %p414_p7 = scmp.gt.s32.totalorder (!%p339_p3), %s1327_s19, 0  ;;  %p1328_p8 = scmp.lt.s32.totalorder (!%p339_p3), %s1327_s19, 7 }
   0xd   : > { %p484_p9 = scmp.gt.s32.totalorder (!%p339_p3), %s1564_s24, 0  ;;  %p506_p11 = scmp.lt.s32.totalorder (!%p339_p3), %s1564_s24, 1 }
   0xe   : > { %v565_v0 = vld [vmem:[%s1885_s4] sm:$0xc]  ;;  %vm476_vm0 = vcmask 27648   ;;  %v698_v2 = vld [vmem:[%s1885_s4 + $0x4] sm:$0x3]  ;;  %vm603_vm1 = vcmask 1041408  }
   0xf   : > { %v587_v1 = vunpack.c.l.b16 %v565_v0  ;;  %s1905_s25 = smov (!%p416_p5, %s1568_s25), 1  ;;  %v1582_v3 = vmov 0   ;;  %v564_v4 = vld [vmem:[%s1885_s4] sm:$0x3]  ;;  %v732_v8 = vsel %vm603_vm1, %v698_v2, 0  ;;  %vm590_vm2 = vcmask 31744  }
  0x10   : > { %479 = vst.msk [vmem:[#allocation2 + $0x14] sm:$0xf] %vm476_vm0, %v1582_v3  ;;  %s432_s15 = scalar_select %p431_p6, %s1659_s10, 7  ;;  %v668_v6 = vsel %vm603_vm1, %v564_v4, 0  ;;  %v1412_v14 = vld [vmem:[%s1885_s4 + $0x8] sm:$0xc] }
  0x11   : > { %v588_v5 = vpack.c.b16 %v587_v1, %v587_v1  ;;  %477 = vst.msk [vmem:[#allocation2 + $0x4] sm:$0xf] %vm476_vm0, %v1582_v3  ;;  %s1675_s16 = sshll.u32 %s1905_s25, 3  ;;  %677 = vmatpush.bf16.msra.mxu1 %v668_v6  ;;  %v773_v15 = vunpack.c.l.b16 %v1412_v14  ;;  %v1421_v16 = vld [vmem:[%s1885_s4 + $0xc] sm:$0x3]  ;;  %s439_s8 = sadd.s32 4, %s1659_s10 }
  0x12   : > { %478 = vst.msk [vmem:[#allocation2 + $0xc] sm:$0xf] %vm476_vm0, %v1582_v3  ;;  %s1679_s17 = sadd.s32 %s1675_s16, %s432_s15  ;;  %v1411_v17 = vld [vmem:[%s1885_s4 + $0x8] sm:$0x3]  ;;  %v834_v18 = vsel %vm603_vm1, %v1421_v16, 0  ;;  %p1745_p12 = scmp.lt.s32.totalorder %s439_s8, 7 }
  0x13   : > { %v589_v7 = vrot.slane %v588_v5, 2  ;;  %480 = vst.msk [vmem:[#allocation2 + $0x1c] sm:$0xf] %vm476_vm0, %v1582_v3  ;;  %s1337_s18 = sshll.u32 %s1679_s17, 2  ;;  %v805_v19 = vsel %vm603_vm1, %v1411_v17, 0  ;;  %v774_v20 = vpack.c.b16 %v773_v15, %v773_v15  ;;  %vm984_vm3 = vcmask 1040384  }
  0x14   : > { %481 = vst.msk [vmem:[#allocation2 + $0x24] sm:$0xf] %vm476_vm0, %v1582_v3  ;;  %s436_s22 = scalar_lea.vmem %s1891_s1, %s1337_s18  ;;  %v1427_v29 = vld [vmem:[%s1885_s4 + $0x10] sm:$0xc]  ;;  %v1426_v30 = vld [vmem:[%s1885_s4 + $0x10] sm:$0x3] }
  0x15   : > { %v605_v9 = vsel %vm603_vm1, %v589_v7, 0  ;;  %482 = vst.msk [vmem:[#allocation2 + $0x2c] sm:$0xf] %vm476_vm0, %v1582_v3  ;;  %v529_v10 = vld [vmem:[%s436_s22 + $0x4] sm:$0xf]  ;;  %s415_s23 = scalar_select %p414_p7, %s1327_s19, 0  ;;  %843 = vmatpush.bf16.msrb.mxu1 %v834_v18  ;;  %v869_v33 = vunpack.c.l.b16 %v1427_v29 }
  0x16   : > { %1498 = vmatpush.bf16.msra.mxu2 %v605_v9  ;;  %1499 = vmatpush.bf16.msra.mxu3 %v605_v9  ;;  %v531_v11 = vld [vmem:[%s436_s22 + $0xc] sm:$0xf]  ;;  %534 = vst.msk [vmem:[#allocation2 + $0x10] sm:$0xf] %vm476_vm0, %v529_v10  ;;  %v528_v12 = vld [vmem:[%s436_s22] sm:$0xf] }
  0x17   : > { %614 = vmatpush.bf16.msra.mxu0 %v605_v9  ;;  %536 = vst.msk [vmem:[#allocation2 + $0x20] sm:$0xf] %vm476_vm0, %v531_v11  ;;  %v530_v13 = vld [vmem:[%s436_s22 + $0x8] sm:$0xf]  ;;  %s1907_s23 = smov (!%p1328_p8, %s415_s23), 7  ;;  %v775_v23 = vrot.slane %v774_v20, 2  ;;  %v870_v38 = vpack.c.b16 %v869_v33, %v869_v33 }
  0x18   : > { %533 = vst.msk [vmem:[#allocation2 + $0x8] sm:$0xf] %vm476_vm0, %v528_v12  ;;  %s485_s15 = scalar_select %p484_p9, 1, 0  ;;  %v905_v34 = vsel %vm603_vm1, %v1426_v30, 0  ;;  %vm1008_vm4 = vcmask 1046528  }
  0x19   : > { %535 = vst.msk [vmem:[#allocation2 + $0x18] sm:$0xf] %vm476_vm0, %v530_v13  ;;  %s421_s18 = sadd.s32 %s1907_s23, %s1675_s16  ;;  %v777_v25 = vsel %vm603_vm1, %v775_v23, 0  ;;  %v1436_v35 = vld [vmem:[%s1885_s4 + $0x14] sm:$0x3]  ;;  %v871_v40 = vrot.slane %v870_v38, 2 }
  0x1a   : > { %741 = vmatpush.bf16.msrb.mxu2 %v732_v8  ;;  %s486_s19 = scvt.s32.f32 %s485_s15  ;;  %s1334_s20 = sshll.u32 %s421_s18, 2  ;;  %786 = vmatpush.bf16.msrb.mxu3 %v777_v25  ;;  %v938_v36 = vsel %vm603_vm1, %v1436_v35, 0  ;;  %v1120_v53 = vld [vmem:[%s1887_s6] sm:$0x3]  ;;  %vm1163_vm5 = vcmask 64512  }
  0x1b   : > { %814 = vmatpush.bf16.msrb.mxu0 %v805_v19  ;;  %s423_s11 = scalar_lea.vmem %s1881_s0, %s1334_s20  ;;  %v873_v41 = vsel %vm603_vm1, %v871_v40, 0  ;;  %s1911_s8 = smov (!%p1745_p12, %s439_s8), 7  ;;  %v1138_v55 = vsel %vm603_vm1, %v1120_v53, 0 }
  0x1c   : > { %s489_s21 = sshrl.u32 %s486_s19, 16  ;;  %p488_p10 = scmp.ne.f32.partialorder %s486_s19, %s486_s19  ;;  %v483_v26 = vld [vmem:[%s423_s11] sm:$0xf] }
  0x1d   : > { %v1707_v21 = vld [vmem:[#allocation2 + $0x10] sm:$0xff]  ;;  %s490_s22 = sand.u32 1, %s489_s21  ;;  %v501_v27 = vunpack.c.l.bf16 %v483_v26  ;;  %s1913_s8 = smov (!%p1745_p12, %s1911_s8), 7 }
  0x1e   : > { %v1710_v22 = vld [vmem:[#allocation2 + $0x20] sm:$0xff]  ;;  %1368 = vmatmul.msk.bf16.vlgmr.msra.gmra.mxu2 %vm590_vm2, %v1707_v21  ;;  %s491_s23 = sadd.s32 32767, %s490_s22  ;;  %v1455_v43 = vld [vmem:[#allocation2 + $0x10] sm:$0xff] }
  0x1f   : > { %v1714_v24 = vld [vmem:[#allocation2 + $0x8] sm:$0xff]  ;;  %1370 = vmatmul.msk.bf16.vlgmr.msra.gmra.mxu3 %vm590_vm2, %v1710_v22  ;;  %s492_s12 = sadd.s32 %s491_s23, %s486_s19  ;;  %882 = vmatpush.bf16.msra.mxu2 %v873_v41  ;;  %v1449_v52 = vld [vmem:[#allocation2 + $0x10] sm:$0xff]  ;;  %v1457_v54 = vld [vmem:[#allocation2 + $0x20] sm:$0xff] }
  0x20   : > { %1367 = vmatmul.msk.bf16.vlgmr.msra.gmra.mxu0 %vm590_vm2, %v1714_v24  ;;  %s493_s13 = sand.u32 4294901760, %s492_s12  ;;  %v1731_v32 = vld [vmem:[#allocation2 + $0x18] sm:$0xff]  ;;  %914 = vmatpush.bf16.msra.mxu3 %v905_v34  ;;  %v1448_v44 = vld [vmem:[#allocation2 + $0x8] sm:$0xff] }
  0x21   : > { %s1909_s13 = smov (%p488_p10, %s493_s13), 2143289344  ;;  %947 = vmatpush.bf16.msra.mxu0 %v938_v36  ;;  %v1456_v45 = vld [vmem:[#allocation2 + $0x18] sm:$0xff] }
  0x22   : > { %s496_s14 = sshrl.u32 %s1909_s13, 16  ;;  %v1777_v56 = vld [vmem:[#allocation2 + $0x18] sm:$0xff] }
  0x23   : > { %s497_s15 = sshll.u32 %s496_s14, 16 }
  0x24   : > { %s498_s18 = sor.u32 %s497_s15, %s496_s14  ;;  %s447_s14 = sadd.s32 %s1675_s16, %s1913_s8 }
  0x25   : > { %v499_v28 = vstv %s498_s18  ;;  %s507_s23 = scalar_select %p506_p11, 1, 0 }
  0x26   : > { %v502_v31 = vunpack.c.l.bf16 %v499_v28  ;;  %s1343_s18 = sshll.u32 %s447_s14, 2 }
  0x27   : > { %s508_s1 = scvt.s32.f32 %s507_s23  ;;  %s449_s20 = scalar_lea.vmem %s1883_s2, %s1343_s18 }
  0x28   : > { %v503_v37 = vmul.f32 %v502_v31, %v501_v27  ;;  %v505_v46 = vld [vmem:[%s449_s20] sm:$0xf] }
  0x29   : > { %s511_s30 = sshrl.u32 %s508_s1, 16  ;;  %p510_p13 = scmp.ne.f32.partialorder %s508_s1, %s508_s1  ;;  %v523_v48 = vunpack.c.l.bf16 %v505_v46 }
  0x2a   : > { %v504_v39 = vpack.c.bf16 %v503_v37, %v503_v37  ;;  %s512_s9 = sand.u32 1, %s511_s30  ;;  %s1344_s30 = sshll.u32 %s1564_s24, 3 }
  0x2b   : > { %s513_s12 = sadd.s32 32767, %s512_s9  ;;  %p457_p0 = scmp.lt.s32.totalorder %s1344_s30, 15 }
  0x2c   : > { %527 = vst.msk [vmem:[#allocation2] sm:$0xf] %vm476_vm0, %v504_v39  ;;  %s514_s13 = sadd.s32 %s513_s12, %s508_s1  ;;  %s1346_s9 = sshll.u32 %s1905_s25, 5 }
  0x2d   : > { %s515_s10 = sand.u32 4294901760, %s514_s13  ;;  %s1917_s30 = smov (!%p457_p0, %s1344_s30), 15 }
  0x2e   : > { %1369 = vmatmul.msk.bf16.gmra.mxu2 %vm590_vm2, %v1731_v32  ;;  %s1915_s10 = smov (%p510_p13, %s515_s10), 2143289344  ;;  %s1345_s8 = sshll.u32 %s1917_s30, 1 }
  0x2f   : > { %1413 = vmatmul.msk.bf16.vlgmr.msrb.gmra.mxu3 %vm590_vm2, %v1714_v24  ;;  %s518_s15 = sshrl.u32 %s1915_s10, 16  ;;  %s461_s11 = sadd.s32 %s1346_s9, %s1345_s8 }
  0x30   : > { %s519_s21 = sshll.u32 %s518_s15, 16  ;;  %s1347_s12 = sshll.u32 %s461_s11, 2 }
  0x31   : > { %s520_s23 = sor.u32 %s519_s21, %s518_s15  ;;  %s1798_s10 = scalar_lea.vmem %s1884_s3, %s1347_s12 }
  0x32   : > { %v521_v47 = vstv %s520_s23  ;;  %v1460_v58 = vld [vmem:[%s1798_s10] sm:$0xff]   ;;  %v1491_v59 = vld [vmem:[%s1798_s10 + $0x8] sm:$0xff]   ;;  %v1492_v60 = vld [vmem:[%s1798_s10 + $0x10] sm:$0xff]   ;;  %s1350_s15 = sshll.u32 %s1679_s17, 3 }
  0x33   : > { %v1447_v42 = vld [vmem:[#allocation2] sm:$0xff]  ;;  %v524_v49 = vunpack.c.l.bf16 %v521_v47  ;;  %v1461_v61 = vunpack.c.l.bf16 %v1460_v58  ;;  %v1462_v62 = vunpack.c.h.bf16 %v1460_v58  ;;  %v1465_v63 = vunpack.c.l.bf16 %v1491_v59  ;;  %v1493_v1 = vld [vmem:[%s1798_s10 + $0x18] sm:$0xff]   ;;  %v1495_v11 = vld [vmem:[%s1798_s10 + $0x28] sm:$0xff]   ;;  %s1854_s22 = scalar_lea.vmem %s1888_s7, %s1350_s15 }
  0x34   : > { %1387 = vmatmul.msk.bf16.vlgmr.msra.gmra.mxu1 %vm590_vm2, %v1447_v42  ;;  %1417 = vmatmul.msk.bf16.vlgmr.msrb.gmra.mxu0 %vm590_vm2, %v1447_v42  ;;  %v1466_v0 = vunpack.c.h.bf16 %v1491_v59  ;;  %v1469_v2 = vunpack.c.l.bf16 %v1492_v60  ;;  %v1470_v3 = vunpack.c.h.bf16 %v1492_v60  ;;  %v1473_v4 = vunpack.c.l.bf16 %v1493_v1  ;;  %v1494_v10 = vld [vmem:[%s1798_s10 + $0x20] sm:$0xff]   ;;  %v1496_v12 = vld [vmem:[%s1798_s10 + $0x30] sm:$0xff]   ;;  %v1497_v17 = vld [vmem:[%s1798_s10 + $0x38] sm:$0xff]  }
  0x35   : > { %v525_v50 = vmul.f32 %v524_v49, %v523_v48  ;;  %1147 = vmatpush.bf16.msra.mxu1 %v1138_v55  ;;  %v1474_v5 = vunpack.c.h.bf16 %v1493_v1  ;;  %v1081_v6 = vadd.f32 %v1465_v63, %v1461_v61  ;;  %v1477_v13 = vunpack.c.l.bf16 %v1494_v10 }
  0x36   : > { %v1082_v7 = vadd.f32 %v1466_v0, %v1462_v62  ;;  %v1083_v8 = vadd.f32 %v1473_v4, %v1469_v2  ;;  %v1478_v14 = vunpack.c.h.bf16 %v1494_v10  ;;  %v1481_v15 = vunpack.c.l.bf16 %v1495_v11 }
  0x37   : > { %v526_v51 = vpack.c.bf16 %v525_v50, %v525_v50  ;;  %v1084_v9 = vadd.f32 %v1474_v5, %v1470_v3  ;;  %1089 = vst.msk [vmem:[#allocation3] sm:$0xff] %vm590_vm2, %v1081_v6  ;;  %v1482_v16 = vunpack.c.h.bf16 %v1495_v11  ;;  %v1485_v18 = vunpack.c.l.bf16 %v1496_v12 }
  0x38   : > { %1090 = vst.msk [vmem:[#allocation3 + $0x8] sm:$0xff] %vm590_vm2, %v1082_v7  ;;  %v1486_v19 = vunpack.c.h.bf16 %v1496_v12  ;;  %v1489_v20 = vunpack.c.l.bf16 %v1497_v17  ;;  %v1490_v23 = vunpack.c.h.bf16 %v1497_v17 }
  0x39   : > { %538 = vst.msk [vmem:[#allocation2 + $0x28] sm:$0xf] %vm476_vm0, %v526_v51  ;;  %v1086_v25 = vadd.f32 %v1482_v16, %v1478_v14 }
  0x3a   : > { %1091 = vst.msk [vmem:[#allocation3 + $0x10] sm:$0xff] %vm590_vm2, %v1083_v8  ;;  %v1088_v26 = vadd.f32 %v1490_v23, %v1486_v19 }
  0x3b   : > { %1092 = vst.msk [vmem:[#allocation3 + $0x18] sm:$0xff] %vm590_vm2, %v1084_v9 }
  0x3c   : > { %1094 = vst.msk [vmem:[#allocation3 + $0x28] sm:$0xff] %vm590_vm2, %v1086_v25 }
  0x3d   : > { %1096 = vst.msk [vmem:[#allocation3 + $0x38] sm:$0xff] %vm590_vm2, %v1088_v26 }
  0x3e   : > { %1407 = vmatmul.msk.bf16.vlgmr.msrb.gmra.mxu2 %vm590_vm2, %v1455_v43 }
  0x3f   : > { %1414 = vmatmul.msk.bf16.gmra.mxu3 %vm590_vm2, %v1707_v21  ;;  %v1097_v30 = vld [vmem:[#allocation3] ss:$2 sm:$0xff]  ;;  %v1105_v33 = vld [vmem:[#allocation3 + $0x1] ss:$2 sm:$0xff] }
  0x40   : > { %v1783_v57 = vld [vmem:[#allocation2 + $0x28] sm:$0xff]  ;;  %v1112_v36 = vadd.f32 %v1105_v33, %v1097_v30 }
  0x42   : > { %v1099_v31 = vld [vmem:[#allocation3 + $0x10] ss:$2 sm:$0xff]  ;;  %v1107_v34 = vld [vmem:[#allocation3 + $0x11] ss:$2 sm:$0xff]  ;;  %v1116_v38 = vpack.c.bf16 %v1112_v36, %v1112_v36 }
  0x43   : > { %v1113_v37 = vadd.f32 %v1107_v34, %v1099_v31 }
  0x44   : > { %1388 = vmatmul.msk.bf16.gmra.mxu1 %vm590_vm2, %v1448_v44  ;;  %1418 = vmatmul.msk.bf16.gmra.mxu0 %vm590_vm2, %v1448_v44  ;;  %v1125_v41 = vunpack.c.l.b16 %v1116_v38 }
  0x45   : > { %v1117_v39 = vpack.c.bf16 %v1113_v37, %v1113_v37 }
  0x4e   : > { %1408 = vmatmul.msk.bf16.gmra.mxu2 %vm590_vm2, %v1456_v45 }
  0x4f   : > { %1415 = vmatmul.msk.bf16.gmra.mxu3 %vm590_vm2, %v1731_v32 }
  0x54   : > { %1389 = vmatmul.msk.bf16.gmra.mxu1 %vm590_vm2, %v1449_v52  ;;  %1419 = vmatmul.msk.bf16.gmra.mxu0 %vm590_vm2, %v1449_v52 }
  0x5e   : > { %1409 = vmatmul.msk.bf16.gmra.mxu2 %vm590_vm2, %v1457_v54 }
  0x5f   : > { %1416 = vmatmul.msk.bf16.gmra.mxu3 %vm590_vm2, %v1710_v22 }
  0x64   : > { %1390 = vmatmul.msk.bf16.gmra.mxu1 %vm590_vm2, %v1777_v56  ;;  %1420 = vmatmul.msk.bf16.gmra.mxu0 %vm590_vm2, %v1777_v56 }
  0x6e   : > { %1410 = vmatmul.msk.bf16.gmra.mxu2 %vm590_vm2, %v1783_v57 }
  0x6f   : > { %1432 = vmatmul.msk.bf16.vlgmr.msra.gmra.mxu3 %vm590_vm2, %v1447_v42  ;;  %v1126_v42 = vunpack.c.l.b16 %v1117_v39 }
  0x74   : > { %1422 = vmatmul.msk.bf16.vlgmr.msrb.gmra.mxu1 %vm590_vm2, %v1455_v43  ;;  %1437 = vmatmul.msk.bf16.vlgmr.msra.gmra.mxu0 %vm590_vm2, %v1455_v43 }
  0x7e   : > { %1428 = vmatmul.msk.bf16.vlgmr.msra.gmra.mxu2 %vm590_vm2, %v1714_v24  ;;  %v1085_v24 = vadd.f32 %v1481_v15, %v1477_v13 }
  0x7f   : > { %1433 = vmatmul.msk.bf16.gmra.mxu3 %vm590_vm2, %v1448_v44 }
  0x80   : > { %1093 = vst.msk [vmem:[#allocation3 + $0x20] sm:$0xff] %vm590_vm2, %v1085_v24 }
  0x84   : > { %1423 = vmatmul.msk.bf16.gmra.mxu1 %vm590_vm2, %v1456_v45  ;;  %1438 = vmatmul.msk.bf16.gmra.mxu0 %vm590_vm2, %v1456_v45  ;;  %v1129_v45 = vpack.c.b16 %v1126_v42, %v1125_v41 }
  0x87   : > { %v1101_v46 = vld [vmem:[#allocation3 + $0x20] ss:$2 sm:$0xff]  ;;  %v1109_v50 = vld [vmem:[#allocation3 + $0x21] ss:$2 sm:$0xff] }
  0x88   : > { %v1114_v55 = vadd.f32 %v1109_v50, %v1101_v46 }
  0x8e   : > { %1429 = vmatmul.msk.bf16.gmra.mxu2 %vm590_vm2, %v1707_v21  ;;  %v1087_v21 = vadd.f32 %v1489_v20, %v1485_v18 }
  0x8f   : > { %1434 = vmatmul.msk.bf16.gmra.mxu3 %vm590_vm2, %v1449_v52 }
  0x90   : > { %1095 = vst.msk [vmem:[#allocation3 + $0x30] sm:$0xff] %vm590_vm2, %v1087_v21 }
  0x94   : > { %1424 = vmatmul.msk.bf16.gmra.mxu1 %vm590_vm2, %v1457_v54  ;;  %1439 = vmatmul.msk.bf16.gmra.mxu0 %vm590_vm2, %v1457_v54 }
  0x97   : > { %v1103_v49 = vld [vmem:[#allocation3 + $0x30] ss:$2 sm:$0xff]  ;;  %v1111_v51 = vld [vmem:[#allocation3 + $0x31] ss:$2 sm:$0xff] }
  0x9d   : > { %v616_v29 = vpop.f32.mrf.mxu0 }
  0x9e   : > { %1430 = vmatmul.msk.bf16.gmra.mxu2 %vm590_vm2, %v1731_v32 }
  0x9f   : > { %1435 = vmatmul.msk.bf16.gmra.mxu3 %vm590_vm2, %v1777_v56 }
  0xa1   : > { %v621_v27 = vpop.f32.mrf.mxu2 }
  0xa2   : > { %v1827_v28 = vpop.f32.mrf.mxu3 }
  0xa4   : > { %1425 = vmatmul.msk.bf16.gmra.mxu1 %vm590_vm2, %v1783_v57  ;;  %1440 = vmatmul.msk.bf16.gmra.mxu0 %vm590_vm2, %v1783_v57  ;;  %v1118_v57 = vpack.c.bf16 %v1114_v55, %v1114_v55 }
  0xa5   : > { %v618_v40 = vpop.f32.mrf.mxu0 }
  0xa6   : > { %v1127_v62 = vunpack.c.l.b16 %v1118_v57 }
  0xa9   : > { %v623_v35 = vpop.f32.mrf.mxu2 }
  0xaa   : > { %v633_v32 = vpop.f32.mrf.mxu3 }
  0xae   : > { %1431 = vmatmul.msk.bf16.gmra.mxu2 %vm590_vm2, %v1710_v22  ;;  %v1115_v22 = vadd.f32 %v1111_v51, %v1103_v49 }
  0xb0   : > { %v1119_v58 = vpack.c.bf16 %v1115_v22, %v1115_v22 }
  0xb1   : > { %v626_v43 = vpop.f32.mrf.mxu2  ;;  %v679_v47 = vpop.f32.mrf.mxu1 }
  0xb2   : > { %v788_v44 = vpop.f32.mrf.mxu3  ;;  %v816_v48 = vpop.f32.mrf.mxu0  ;;  %v680_v52 = vadd.f32 %v679_v47, %v616_v29  ;;  %v1128_v63 = vunpack.c.l.b16 %v1119_v58 }
  0xb3   : > { %v1835_v53 = vadd.f32 %v816_v48, %v788_v44 }
  0xb4   : > { %1441 = vmatmul.msk.bf16.vlgmr.msra.gmra.mxu1 %vm590_vm2, %v1129_v45  ;;  %v1130_v3 = vpack.c.b16 %v1128_v63, %v1127_v62 }
  0xb9   : > { %v628_v54 = vpop.f32.mrf.mxu2  ;;  %v681_v59 = vpop.f32.mrf.mxu1 }
  0xba   : > { %v790_v56 = vpop.f32.mrf.mxu3  ;;  %v818_v60 = vpop.f32.mrf.mxu0  ;;  %v682_v61 = vadd.f32 %v681_v59, %v618_v40 }
  0xc1   : > { %v743_v0 = vpop.f32.mrf.mxu2  ;;  %v684_v4 = vpop.f32.mrf.mxu1 }
  0xc2   : > { %v762_v1 = vadd.f32 %v743_v0, %v680_v52  ;;  %v792_v2 = vpop.f32.mrf.mxu3  ;;  %v820_v5 = vpop.f32.mrf.mxu0  ;;  %v685_v6 = vadd.f32 %v684_v4, %v621_v27  ;;  %v1541_v52 = vld [vmem:[%s1886_s5] ss:$0 sm:$0xff] }
  0xc3   : > { %v821_v7 = vadd.f32 %v820_v5, %v792_v2 }
  0xc4   : > { %1442 = vmatmul.msk.bf16.gmra.mxu1 %vm590_vm2, %v1130_v3 }
  0xc9   : > { %v745_v8 = vpop.f32.mrf.mxu2  ;;  %v686_v11 = vpop.f32.mrf.mxu1 }
  0xca   : > { %v763_v9 = vadd.f32 %v745_v8, %v682_v61  ;;  %v794_v10 = vpop.f32.mrf.mxu3  ;;  %v822_v12 = vpop.f32.mrf.mxu0  ;;  %v687_v13 = vadd.f32 %v686_v11, %v623_v35 }
  0xcc   : > { %v986_v17 = vrot.slane %v763_v9, 7 }
  0xd1   : > { %v748_v14 = vpop.f32.mrf.mxu2  ;;  %v689_v19 = vpop.f32.mrf.mxu1 }
  0xd2   : > { %v764_v15 = vadd.f32 %v748_v14, %v685_v6  ;;  %v796_v16 = vpop.f32.mrf.mxu3  ;;  %v824_v20 = vpop.f32.mrf.mxu0  ;;  %v690_v24 = vadd.f32 %v689_v19, %v626_v43 }
  0xd3   : > { %v825_v25 = vadd.f32 %v824_v20, %v796_v16 }
  0xd4   : > { %v987_v18 = vrot.slane %v764_v15, 7 }
  0xd6   : > { %v988_v23 = vsel %vm984_vm3, %v986_v17, %v987_v18 }
  0xd9   : > { %v750_v21 = vpop.f32.mrf.mxu2  ;;  %v691_v29 = vpop.f32.mrf.mxu1 }
  0xda   : > { %v765_v26 = vadd.f32 %v750_v21, %v687_v13  ;;  %v798_v27 = vpop.f32.mrf.mxu3  ;;  %v826_v30 = vpop.f32.mrf.mxu0  ;;  %v692_v31 = vadd.f32 %v691_v29, %v628_v54  ;;  %v985_v54 = vrot.slane %v762_v1, 7 }
  0xdc   : > { %v989_v36 = vrot.slane %v765_v26, 7  ;;  %v999_v59 = vsel %vm984_vm3, 0.0, %v985_v54 }
  0xe1   : > { %v753_v33 = vpop.f32.mrf.mxu2  ;;  %v694_v32 = vpop.f32.mrf.mxu1 }
  0xe2   : > { %v766_v34 = vadd.f32 %v753_v33, %v690_v24  ;;  %v800_v35 = vpop.f32.mrf.mxu3  ;;  %v828_v38 = vpop.f32.mrf.mxu0  ;;  %v695_v40 = vadd.f32 %v694_v32, %v1827_v28 }
  0xe3   : > { %v829_v41 = vadd.f32 %v828_v38, %v800_v35 }
  0xe4   : > { %v990_v37 = vrot.slane %v766_v34, 7 }
  0xe6   : > { %v991_v39 = vsel %vm984_vm3, %v989_v36, %v990_v37 }
  0xe9   : > { %v755_v42 = vpop.f32.mrf.mxu2  ;;  %v696_v45 = vpop.f32.mrf.mxu1 }
  0xea   : > { %v767_v43 = vadd.f32 %v755_v42, %v692_v31  ;;  %v802_v44 = vpop.f32.mrf.mxu3  ;;  %v830_v46 = vpop.f32.mrf.mxu0 }
  0xec   : > { %v992_v50 = vrot.slane %v767_v43, 7 }
  0xf1   : > { %v758_v47 = vpop.f32.mrf.mxu2  ;;  %v845_v55 = vpop.f32.mrf.mxu1 }
  0xf2   : > { %v768_v48 = vadd.f32 %v758_v47, %v695_v40  ;;  %v916_v49 = vpop.f32.mrf.mxu3  ;;  %v949_v22 = vpop.f32.mrf.mxu0  ;;  %v861_v56 = vadd.f32 %v845_v55, %v1835_v53 }
  0xf4   : > { %v993_v51 = vrot.slane %v768_v48, 7  ;;  %v1029_v57 = vadd.f32 %v1541_v52, %v861_v56 }
  0xf6   : > { %v994_v28 = vsel %vm984_vm3, %v992_v50, %v993_v51  ;;  %v1033_v60 = vadd.f32 %v1029_v57, %v999_v59 }
  0xf9   : > { %v760_v58 = vpop.f32.mrf.mxu2  ;;  %v847_v62 = vpop.f32.mrf.mxu1 }
  0xfa   : > { %v918_v61 = vpop.f32.mrf.mxu3  ;;  %v951_v63 = vpop.f32.mrf.mxu0 }
 0x101   : > { %v884_v0 = vpop.f32.mrf.mxu2  ;;  %v849_v2 = vpop.f32.mrf.mxu1 }
 0x102   : > { %v862_v3 = vadd.f32 %v849_v2, %v821_v7  ;;  %v921_v4 = vpop.f32.mrf.mxu3  ;;  %v954_v6 = vpop.f32.mrf.mxu0  ;;  %v917_v24 = vadd.f32 %v916_v49, %v884_v0 }
 0x104   : > { %v1030_v5 = vadd.f32 %v1541_v52, %v862_v3  ;;  %v969_v26 = vadd.f32 %v949_v22, %v917_v24 }
 0x106   : > { %v1034_v8 = vadd.f32 %v1030_v5, %v988_v23  ;;  %v1009_v34 = vrot.slane %v969_v26, 1 }
 0x109   : > { %v886_v1 = vpop.f32.mrf.mxu2  ;;  %v851_v9 = vpop.f32.mrf.mxu1 }
 0x10a   : > { %v923_v11 = vpop.f32.mrf.mxu3  ;;  %v956_v53 = vpop.f32.mrf.mxu0  ;;  %v919_v19 = vadd.f32 %v918_v61, %v886_v1 }
 0x10c   : > { %v970_v21 = vadd.f32 %v951_v63, %v919_v19 }
 0x10e   : > { %v1010_v29 = vrot.slane %v970_v21, 1 }
 0x110   : > { %v1011_v32 = vsel %vm1008_vm4, %v1009_v34, %v1010_v29 }
 0x111   : > { %v889_v10 = vpop.f32.mrf.mxu2  ;;  %v853_v12 = vpop.f32.mrf.mxu1  ;;  %v1037_v40 = vadd.f32 %v1033_v60, %v1011_v32 }
 0x112   : > { %v863_v13 = vadd.f32 %v853_v12, %v825_v25  ;;  %v926_v17 = vpop.f32.mrf.mxu3  ;;  %v959_v18 = vpop.f32.mrf.mxu0  ;;  %v922_v25 = vadd.f32 %v921_v4, %v889_v10 }
 0x114   : > { %v1031_v14 = vadd.f32 %v1541_v52, %v863_v13 }
 0x116   : > { %v1035_v16 = vadd.f32 %v1031_v14, %v991_v39  ;;  %v971_v39 = vadd.f32 %v954_v6, %v922_v25 }
 0x118   : > { %v1012_v46 = vrot.slane %v971_v39, 1 }
 0x119   : > { %v891_v15 = vpop.f32.mrf.mxu2  ;;  %v855_v20 = vpop.f32.mrf.mxu1 }
 0x11a   : > { %v928_v27 = vpop.f32.mrf.mxu3  ;;  %v924_v30 = vadd.f32 %v923_v11, %v891_v15  ;;  %v961_v33 = vpop.f32.mrf.mxu0 }
 0x11c   : > { %v972_v37 = vadd.f32 %v956_v53, %v924_v30 }
 0x11e   : > { %v1013_v42 = vrot.slane %v972_v37, 1 }
 0x120   : > { %v1014_v51 = vsel %vm1008_vm4, %v1012_v46, %v1013_v42 }
 0x121   : > { %v894_v7 = vpop.f32.mrf.mxu2  ;;  %v857_v23 = vpop.f32.mrf.mxu1  ;;  %v1038_v55 = vadd.f32 %v1034_v8, %v1014_v51 }
 0x122   : > { %v864_v31 = vadd.f32 %v857_v23, %v829_v41  ;;  %v931_v45 = vpop.f32.mrf.mxu3  ;;  %v927_v47 = vadd.f32 %v926_v17, %v894_v7  ;;  %v1041_v41 = vmul.f32 0.2, %v1037_v40  ;;  %v964_v48 = vpop.f32.mrf.mxu0 }
 0x123   : > { %v1042_v60 = vmul.f32 0.2, %v1038_v55 }
 0x124   : > { %v1032_v35 = vadd.f32 %v1541_v52, %v864_v31  ;;  %v973_v52 = vadd.f32 %v959_v18, %v927_v47  ;;  %v1045_v54 = vmax.f32 %v1037_v40, %v1041_v41 }
 0x125   : > { %v1046_v4 = vmax.f32 %v1038_v55, %v1042_v60 }
 0x126   : > { %v1036_v38 = vadd.f32 %v1032_v35, %v994_v28  ;;  %v1015_v58 = vrot.slane %v973_v52, 1 }
 0x129   : > { %v896_v36 = vpop.f32.mrf.mxu2  ;;  %v859_v43 = vpop.f32.mrf.mxu1 }
 0x12a   : > { %v929_v44 = vadd.f32 %v928_v27, %v896_v36  ;;  %v933_v59 = vpop.f32.mrf.mxu3  ;;  %v966_v2 = vpop.f32.mrf.mxu0 }
 0x12c   : > { %v974_v50 = vadd.f32 %v961_v33, %v929_v44 }
 0x12e   : > { %v1016_v22 = vrot.slane %v974_v50, 1 }
 0x130   : > { %v1017_v0 = vsel %vm1008_vm4, %v1015_v58, %v1016_v22 }
 0x131   : > { %v899_v49 = vpop.f32.mrf.mxu2  ;;  %v1149_v28 = vpop.f32.mrf.mxu1  ;;  %v1039_v5 = vadd.f32 %v1035_v16, %v1017_v0 }
 0x132   : > { %v932_v56 = vadd.f32 %v931_v45, %v899_v49  ;;  %v1159_v57 = vadd.f32 %v1149_v28, %v1045_v54 }
 0x133   : > { %v1043_v11 = vmul.f32 0.2, %v1039_v5 }
 0x134   : > { %1164 = vst.msk [vmem:[%s1854_s22] sm:$0xff] %vm1163_vm5, %v1159_v57  ;;  %v975_v62 = vadd.f32 %v964_v48, %v932_v56 }
 0x135   : > { %v1047_v12 = vmax.f32 %v1039_v5, %v1043_v11 }
 0x136   : > { %v1018_v1 = vrot.slane %v975_v62, 1 }
 0x139   : > { %v901_v61 = vpop.f32.mrf.mxu2  ;;  %v1151_v6 = vpop.f32.mrf.mxu1 }
 0x13a   : > { %v934_v63 = vadd.f32 %v933_v59, %v901_v61  ;;  %v1160_v9 = vadd.f32 %v1151_v6, %v1046_v4 }
 0x13c   : > { %v976_v3 = vadd.f32 %v966_v2, %v934_v63  ;;  %1165 = vst.msk [vmem:[%s1854_s22 + $0x8] sm:$0xff] %vm1163_vm5, %v1160_v9 }
 0x13e   : > { %v1019_v8 = vrot.slane %v976_v3, 1 }
 0x140   : > { %v1020_v10 = vsel %vm1008_vm4, %v1018_v1, %v1019_v8 }
 0x141   : > { %v1040_v53 = vadd.f32 %v1036_v38, %v1020_v10  ;;  %v1154_v13 = vpop.f32.mrf.mxu1 }
 0x142   : > { %v1161_v14 = vadd.f32 %v1154_v13, %v1047_v12 }
 0x143   : > { %v1044_v15 = vmul.f32 0.2, %v1040_v53 }
 0x144   : > { %1166 = vst.msk [vmem:[%s1854_s22 + $0x10] sm:$0xff] %vm1163_vm5, %v1161_v14 }
 0x145   : > { %v1048_v17 = vmax.f32 %v1040_v53, %v1044_v15 }
 0x149   : > { %v1156_v18 = vpop.f32.mrf.mxu1 }
 0x14a   : > { %v1162_v16 = vadd.f32 %v1156_v18, %v1048_v17 }
 0x14c   : > { %1167 = vst.msk [vmem:[%s1854_s22 + $0x18] sm:$0xff] %vm1163_vm5, %v1162_v16 }
 0x14d PF: > { %s17_s28 = sadd.s32 1, %s1580_s28   ;;  %s1893_s17 = sld [smem:[#allocation4_spill]] }
 0x14e   : > { %p14_p1 = scmp.ge.s32.totalorder %s17_s28, 6   ;;  %s1894_s24 = smov %s1572_s26 }
 0x14f   : > { %s1895_s25 = smov %s1576_s27  ;;  %s1896_s26 = smov %s1899_s29 }
 0x150   :  { %16 = sbr.rel (!%p14_p1) target bundleno = 3 (0x3), region = 99 }
 0x153   : > { %s1897_s27 = smov %s1893_s17 }

// kernel: resblock_forward.2
= control target key start
LH: loop header
LB: loop body
LE: loop exit
PB: predicated region body
PF: predicated region fallthrough
CT: control target
= control target key end

     0   :  { %s2564_s18 = smov 0   ;;  %s2566_s19 = smov 0   ;;  %s3301_s0 = inlined_call_operand.vmem [shape: bf16[2,16,16,4], index: 0, kind: input, shape index: {}, may-alias: {0,1,2}]   ;;  %s3302_s1 = inlined_call_operand.vmem [shape: bf16[2,16,16,4], index: 1, kind: input, shape index: {}, may-alias: {0,1,2}]   ;;  %s3303_s2 = inlined_call_operand.vmem [shape: bf16[2,16,16,4], index: 2, kind: input, shape index: {}, may-alias: {0,1,2}]   ;;  %s3304_s3 = inlined_call_operand.vmem [shape: bf16[3,12,4], index: 3, kind: input, shape index: {}]   ;;  %s3305_s4 = inlined_call_operand.vmem [shape: f32[1,4], index: 4, kind: input, shape index: {}]   ;;  %s3306_s5 = inlined_call_operand.vmem [shape: bf16[2,8,8,4], index: 5, kind: output, shape index: {}]  }
   0x1   :  { %s2568_s20 = smov 0   ;;  %s2570_s21 = smov 0  }
   0x2   :  { %s2572_s22 = smov 0  }
   0x3 LB: > { %s24_s23 = sadd.s32 1, %s2523_s20  ;;  %s27_s24 = sadd.s32 1, %s2527_s21  ;;  %s2531_s22 = sphi %s2572_s22, %s15_s22   ;;  %s2527_s21 = sphi %s2570_s21, %s3360_s21   ;;  %s2523_s20 = sphi %s2568_s20, %s3359_s20   ;;  %s2519_s19 = sphi %s2566_s19, %s3358_s19   ;;  %s2515_s18 = sphi %s2564_s18, %s3357_s18  }
   0x4   : > { %p25_p0 = scmp.ge.s32.totalorder %s24_s23, 2  ;;  %p2117_p1 = scmp.ge.s32.totalorder %s2531_s22, 1 }
   0x5   : > { %p273_p2 = scmp.lt.s32.totalorder %s2531_s22, 5 }
   0x6   : > { %s3362_s23 = smov (%p25_p0, %s24_s23), 0  ;;  %s3364_s24 = smov (!%p25_p0, %s27_s24), %s2527_s21 }
   0x7   : > { %p274_p3 = pnand %p2117_p1, %p273_p2  ;;  %p29_p4 = scmp.ge.s32.totalorder %s3364_s24, 2 }
   0x9   : > { %s3366_s24 = smov (%p29_p4, %s3364_s24), 0  ;;  %277 = sbr.rel (%p274_p3) target bundleno = 625 (0x271), region = 40 }
   0xe   : > { %v567_v0 = vld [vmem:[%s3304_s3] sm:$0xc]  ;;  %s2600_s27 = sshll.u32 %s2515_s18, 3  ;;  %p340_p5 = scmp.lt.s32.totalorder %s2519_s19, 1  ;;  %v2323_v2 = vld [vmem:[%s3304_s3 + $0x8] sm:$0xc] }
   0xf   : > { %v629_v1 = vunpack.c.l.b16 %v567_v0  ;;  %p356_p6 = scmp.lt.s32.totalorder %s2600_s27, 15  ;;  %vm392_vm0 = vcmask 27648   ;;  %v1107_v3 = vunpack.c.l.b16 %v2323_v2  ;;  %v910_v5 = vld [vmem:[%s3304_s3 + $0x4] sm:$0x3]  ;;  %vm669_vm1 = vcmask 1041408   ;;  %s2643_s26 = sadd.s32 4294967295, %s2600_s27 }
  0x10   : > { %s3368_s19 = smov (!%p340_p5, %s2519_s19), 1  ;;  %v2322_v7 = vld [vmem:[%s3304_s3 + $0x8] sm:$0x3]  ;;  %v2533_v8 = vmov 0   ;;  %v566_v10 = vld [vmem:[%s3304_s3] sm:$0x3] }
  0x11   : > { %v630_v4 = vpack.c.b16 %v629_v1, %v629_v1  ;;  %s357_s30 = scalar_select %p356_p6, %s2600_s27, 15  ;;  %v1108_v6 = vpack.c.b16 %v1107_v3, %v1107_v3  ;;  %394 = vst.msk [vmem:[#allocation2 + $0x14] sm:$0xf] %vm392_vm0, %v2533_v8  ;;  %v1008_v13 = vsel %vm669_vm1, %v910_v5, 0  ;;  %v1183_v15 = vsel %vm669_vm1, %v2322_v7, 0 }
  0x12   : > { %s2613_s8 = sshll.u32 %s3368_s19, 5  ;;  %393 = vst.msk [vmem:[#allocation2 + $0x8] sm:$0xf] %vm392_vm0, %v2533_v8  ;;  %v839_v16 = vsel %vm669_vm1, %v566_v10, 0  ;;  %p338_p7 = scmp.gt.s32.totalorder %s2643_s26, 0  ;;  %vm632_vm2 = vcmask 31744  }
  0x13   : > { %v631_v9 = vrot.slane %v630_v4, 2  ;;  %s2129_s11 = sshll.u32 %s357_s30, 1  ;;  %v1109_v11 = vrot.slane %v1108_v6, 2  ;;  %395 = vst.msk [vmem:[#allocation2 + $0x20] sm:$0xf] %vm392_vm0, %v2533_v8  ;;  %p2120_p8 = scmp.lt.s32.totalorder %s2643_s26, 15 }
  0x14   : > { %s360_s14 = sadd.s32 %s2129_s11, %s2613_s8  ;;  %396 = vst.msk [vmem:[#allocation2 + $0x2c] sm:$0xf] %vm392_vm0, %v2533_v8  ;;  %p405_p9 = scmp.gt.s32.totalorder %s2515_s18, 0  ;;  %v2362_v50 = vld [vmem:[%s3304_s3 + $0x10] sm:$0xc]  ;;  %vm1623_vm3 = vcmask 1040384  }
  0x15   : > { %v671_v12 = vsel %vm669_vm1, %v631_v9, 0  ;;  %s2131_s15 = sshll.u32 %s360_s14, 2  ;;  %v1111_v14 = vsel %vm669_vm1, %v1109_v11, 0  ;;  %397 = vst.msk [vmem:[#allocation2 + $0x38] sm:$0xf] %vm392_vm0, %v2533_v8  ;;  %s3370_s26 = smov (!%p338_p7, %s2643_s26), 0  ;;  %v1355_v53 = vunpack.c.l.b16 %v2362_v50 }
  0x16   : > { %680 = vmatpush.bf16.msra.mxu0 %v671_v12  ;;  %2448 = vmatpush.bf16.msra.mxu1 %v671_v12  ;;  %s2635_s25 = scalar_lea.vmem %s3302_s1, %s2131_s15  ;;  %s3372_s26 = smov (!%p2120_p8, %s3370_s26), 15  ;;  %398 = vst.msk [vmem:[#allocation2 + $0x44] sm:$0xf] %vm392_vm0, %v2533_v8  ;;  %v2361_v51 = vld [vmem:[%s3304_s3 + $0x10] sm:$0x3]  ;;  %vm1720_vm4 = vcmask 1046528  }
  0x17   : > { %2449 = vmatpush.bf16.msra.mxu2 %v671_v12  ;;  %2450 = vmatpush.bf16.msra.mxu3 %v671_v12  ;;  %v457_v17 = vld [vmem:[%s2635_s25] sm:$0xf]  ;;  %v458_v18 = vld [vmem:[%s2635_s25 + $0x4] sm:$0xf]  ;;  %v461_v19 = vld [vmem:[%s2635_s25 + $0x10] sm:$0xf]  ;;  %v1356_v58 = vpack.c.b16 %v1355_v53, %v1355_v53 }
  0x18   : > { %474 = vst.msk [vmem:[#allocation2 + $0xc] sm:$0xf] %vm392_vm0, %v457_v17  ;;  %v462_v20 = vld [vmem:[%s2635_s25 + $0x14] sm:$0xf]  ;;  %v465_v21 = vld [vmem:[%s2635_s25 + $0x20] sm:$0xf] }
  0x19   : > { %475 = vst.msk [vmem:[#allocation2 + $0x10] sm:$0xf] %vm392_vm0, %v458_v18  ;;  %v466_v22 = vld [vmem:[%s2635_s25 + $0x24] sm:$0xf]  ;;  %v469_v23 = vld [vmem:[%s2635_s25 + $0x30] sm:$0xf] }
  0x1a   : > { %1192 = vmatpush.bf16.msrb.mxu0 %v1183_v15  ;;  %848 = vmatpush.bf16.msrb.mxu1 %v839_v16  ;;  %478 = vst.msk [vmem:[#allocation2 + $0x24] sm:$0xf] %vm392_vm0, %v461_v19  ;;  %v470_v24 = vld [vmem:[%s2635_s25 + $0x34] sm:$0xf]  ;;  %v459_v25 = vld [vmem:[%s2635_s25 + $0x8] sm:$0xf] }
  0x1b   : > { %1017 = vmatpush.bf16.msrb.mxu2 %v1008_v13  ;;  %1120 = vmatpush.bf16.msrb.mxu3 %v1111_v14  ;;  %479 = vst.msk [vmem:[#allocation2 + $0x28] sm:$0xf] %vm392_vm0, %v462_v20  ;;  %s406_s28 = scalar_select %p405_p9, 1, 0  ;;  %v463_v28 = vld [vmem:[%s2635_s25 + $0x18] sm:$0xf] }
  0x1c   : > { %482 = vst.msk [vmem:[#allocation2 + $0x3c] sm:$0xf] %vm392_vm0, %v465_v21  ;;  %s2125_s29 = sshll.u32 %s3372_s26, 1  ;;  %v467_v30 = vld [vmem:[%s2635_s25 + $0x28] sm:$0xf]  ;;  %v1431_v54 = vsel %vm669_vm1, %v2361_v51, 0 }
  0x1d   : > { %483 = vst.msk [vmem:[#allocation2 + $0x40] sm:$0xf] %vm392_vm0, %v466_v22  ;;  %s346_s30 = sadd.s32 %s2613_s8, %s2125_s29  ;;  %s2678_s6 = scvt.s32.f32 %s406_s28  ;;  %v471_v31 = vld [vmem:[%s2635_s25 + $0x38] sm:$0xf]  ;;  %v460_v33 = vld [vmem:[%s2635_s25 + $0xc] sm:$0xf] }
  0x1e   : > { %486 = vst.msk [vmem:[#allocation2 + $0x54] sm:$0xf] %vm392_vm0, %v469_v23  ;;  %s2127_s7 = sshll.u32 %s346_s30, 2  ;;  %v464_v34 = vld [vmem:[%s2635_s25 + $0x1c] sm:$0xf]  ;;  %v1357_v59 = vrot.slane %v1356_v58, 2 }
  0x1f   : > { %487 = vst.msk [vmem:[#allocation2 + $0x58] sm:$0xf] %vm392_vm0, %v470_v24  ;;  %s410_s9 = sshrl.u32 %s2678_s6, 16  ;;  %p409_p10 = scmp.ne.f32.partialorder %s2678_s6, %s2678_s6  ;;  %v468_v35 = vld [vmem:[%s2635_s25 + $0x2c] sm:$0xf] }
  0x20   : > { %v2666_v26 = vld [vmem:[#allocation2 + $0xc] sm:$0xff]  ;;  %476 = vst.msk [vmem:[#allocation2 + $0x18] sm:$0xf] %vm392_vm0, %v459_v25  ;;  %s411_s10 = sand.u32 1, %s410_s9  ;;  %s348_s14 = scalar_lea.vmem %s3301_s0, %s2127_s7  ;;  %v472_v36 = vld [vmem:[%s2635_s25 + $0x3c] sm:$0xf] }
  0x21   : > { %2190 = vmatmul.msk.bf16.vlgmr.msra.gmra.mxu0 %vm632_vm2, %v2666_v26  ;;  %399 = vst.msk [vmem:[#allocation2 + $0x50] sm:$0xf] %vm392_vm0, %v2533_v8  ;;  %s412_s11 = sadd.s32 32767, %s411_s10  ;;  %v2441_v37 = vld [vmem:[%s348_s14] sm:$0xff]   ;;  %v2387_v52 = vld [vmem:[%s3304_s3 + $0x14] sm:$0x3] }
  0x22   : > { %v2673_v27 = vld [vmem:[#allocation2 + $0x24] sm:$0xff]  ;;  %400 = vst.msk [vmem:[#allocation2 + $0x5c] sm:$0xf] %vm392_vm0, %v2533_v8  ;;  %s413_s15 = sadd.s32 %s412_s11, %s2678_s6  ;;  %v2442_v39 = vunpack.c.l.bf16 %v2441_v37  ;;  %v2443_v40 = vunpack.c.h.bf16 %v2441_v37  ;;  %v1504_v55 = vsel %vm669_vm1, %v2387_v52, 0  ;;  %v2348_v56 = vld [vmem:[%s3304_s3 + $0xc] sm:$0x3] }
  0x23   : > { %2193 = vmatmul.msk.bf16.vlgmr.msra.gmra.mxu1 %vm632_vm2, %v2673_v27  ;;  %401 = vst.msk [vmem:[#allocation2 + $0x68] sm:$0xf] %vm392_vm0, %v2533_v8  ;;  %s414_s16 = sand.u32 4294901760, %s413_s15  ;;  %1513 = vmatpush.bf16.msra.mxu0 %v1504_v55  ;;  %v1256_v57 = vsel %vm669_vm1, %v2348_v56, 0  ;;  %v1359_v61 = vsel %vm669_vm1, %v1357_v59, 0  ;;  %v2782_v3 = vld [vmem:[#allocation2 + $0x8] sm:$0xff] }
  0x24   : > { %v2685_v29 = vld [vmem:[#allocation2 + $0x3c] sm:$0xff]  ;;  %402 = vst.msk [vmem:[#allocation2 + $0x74] sm:$0xf] %vm392_vm0, %v2533_v8  ;;  %s3374_s16 = smov (%p409_p10, %s414_s16), 2143289344  ;;  %1265 = vmatpush.bf16.msra.mxu1 %v1256_v57  ;;  %v2794_v5 = vld [vmem:[#allocation2 + $0x10] sm:$0xff]  ;;  %v2796_v6 = vld [vmem:[#allocation2 + $0x28] sm:$0xff] }
  0x25   : > { %2196 = vmatmul.msk.bf16.vlgmr.msra.gmra.mxu2 %vm632_vm2, %v2685_v29  ;;  %480 = vst.msk [vmem:[#allocation2 + $0x30] sm:$0xf] %vm392_vm0, %v463_v28  ;;  %s417_s17 = sshrl.u32 %s3374_s16, 16  ;;  %v2784_v4 = vld [vmem:[#allocation2 + $0x20] sm:$0xff]  ;;  %v2820_v10 = vld [vmem:[#allocation2 + $0x38] sm:$0xff]  ;;  %v2830_v11 = vld [vmem:[#allocation2 + $0x28] sm:$0xff] }
  0x26   : > { %v2696_v32 = vld [vmem:[#allocation2 + $0x54] sm:$0xff]  ;;  %484 = vst.msk [vmem:[#allocation2 + $0x48] sm:$0xf] %vm392_vm0, %v467_v30  ;;  %s418_s26 = sshll.u32 %s417_s17, 16  ;;  %1368 = vmatpush.bf16.msra.mxu2 %v1359_v61  ;;  %v2818_v9 = vld [vmem:[#allocation2 + $0x20] sm:$0xff]  ;;  %p431_p11 = scmp.lt.s32.totalorder %s2515_s18, 1 }
  0x27   : > { %2199 = vmatmul.msk.bf16.vlgmr.msra.gmra.mxu3 %vm632_vm2, %v2696_v32  ;;  %488 = vst.msk [vmem:[#allocation2 + $0x60] sm:$0xf] %vm392_vm0, %v471_v31  ;;  %v2720_v38 = vld [vmem:[#allocation2 + $0x14] sm:$0xff]  ;;  %s419_s28 = sor.u32 %s418_s26, %s417_s17  ;;  %v2837_v14 = vld [vmem:[#allocation2 + $0x40] sm:$0xff]  ;;  %s365_s14 = sadd.s32 8, %s2600_s27 }
  0x28   : > { %477 = vst.msk [vmem:[#allocation2 + $0x1c] sm:$0xf] %vm392_vm0, %v460_v33  ;;  %v420_v41 = vstv %s419_s28  ;;  %1440 = vmatpush.bf16.msra.mxu3 %v1431_v54  ;;  %s432_s12 = scalar_select %p431_p11, 1, 0  ;;  %v2892_v33 = vld [vmem:[#allocation2 + $0x38] sm:$0xff]  ;;  %v2901_v37 = vld [vmem:[#allocation2 + $0x50] sm:$0xff] }
  0x29   : > { %481 = vst.msk [vmem:[#allocation2 + $0x34] sm:$0xf] %vm392_vm0, %v464_v34  ;;  %v424_v43 = vunpack.c.l.bf16 %v420_v41  ;;  %p2860_p12 = scmp.lt.s32.totalorder %s365_s14, 15  ;;  %v2924_v53 = vld [vmem:[#allocation2 + $0x40] sm:$0xff]  ;;  %v2930_v58 = vld [vmem:[#allocation2 + $0x58] sm:$0xff] }
  0x2a   : > { %485 = vst.msk [vmem:[#allocation2 + $0x4c] sm:$0xf] %vm392_vm0, %v468_v35  ;;  %s433_s13 = scvt.s32.f32 %s432_s12 }
  0x2b   : > { %489 = vst.msk [vmem:[#allocation2 + $0x64] sm:$0xf] %vm392_vm0, %v472_v36  ;;  %v425_v45 = vmul.f32 %v2442_v39, %v424_v43  ;;  %v426_v46 = vmul.f32 %v2443_v40, %v424_v43  ;;  %s3376_s14 = smov (!%p2860_p12, %s365_s14), 15 }
  0x2c   : > { %v2722_v42 = vld [vmem:[#allocation2 + $0x2c] sm:$0xff]  ;;  %s436_s15 = sshrl.u32 %s433_s13, 16  ;;  %p435_p13 = scmp.ne.f32.partialorder %s433_s13, %s433_s13  ;;  %3330 = vst [vmem:[#allocation8_spill] sm:$0xff] %v2892_v33 }
  0x2d   : > { %v2726_v44 = vld [vmem:[#allocation2 + $0x44] sm:$0xff]  ;;  %v427_v48 = vpack.c.bf16 %v425_v45, %v425_v45  ;;  %v428_v49 = vpack.c.bf16 %v426_v46, %v426_v46  ;;  %s437_s17 = sand.u32 1, %s436_s15  ;;  %s3378_s14 = smov (!%p2860_p12, %s3376_s14), 15  ;;  %3331 = vst [vmem:[#allocation9_spill] sm:$0xff] %v2901_v37 }
  0x2e   : > { %3325 = vst [vmem:[#allocation4_spill] sm:$0xff] %v2726_v44  ;;  %v2730_v47 = vld [vmem:[#allocation2 + $0x5c] sm:$0xff]  ;;  %s438_s27 = sadd.s32 32767, %s437_s17  ;;  %s2136_s25 = sshll.u32 %s3378_s14, 1 }
  0x2f   : > { %3326 = vst [vmem:[#allocation5_spill] sm:$0xff] %v2730_v47  ;;  %v2753_v60 = vld [vmem:[#allocation2 + $0x1c] sm:$0xff]  ;;  %s439_s26 = sadd.s32 %s438_s27, %s433_s13  ;;  %s374_s29 = sadd.s32 %s2136_s25, %s2613_s8 }
  0x30   : > { %455 = vst.msk [vmem:[#allocation2] sm:$0xf] %vm392_vm0, %v427_v48  ;;  %v2756_v62 = vld [vmem:[#allocation2 + $0x34] sm:$0xff]  ;;  %s440_s28 = sand.u32 4294901760, %s439_s26  ;;  %s2138_s6 = sshll.u32 %s374_s29, 2 }
  0x31   : > { %2191 = vmatmul.msk.bf16.gmra.mxu0 %vm632_vm2, %v2720_v38  ;;  %456 = vst.msk [vmem:[#allocation2 + $0x4] sm:$0xf] %vm392_vm0, %v428_v49  ;;  %v2760_v63 = vld [vmem:[#allocation2 + $0x4c] sm:$0xff]  ;;  %v2772_v2 = vld [vmem:[#allocation2 + $0x18] sm:$0xff]  ;;  %s3380_s28 = smov (%p435_p13, %s440_s28), 2143289344  ;;  %s376_s8 = scalar_lea.vmem %s3303_s2, %s2138_s6 }
  0x32   : > { %3327 = vst [vmem:[#allocation6_spill] sm:$0xff] %v2760_v63  ;;  %v2764_v0 = vld [vmem:[#allocation2 + $0x64] sm:$0xff]  ;;  %v2806_v7 = vld [vmem:[#allocation2 + $0x18] sm:$0xff]  ;;  %v2808_v8 = vld [vmem:[#allocation2 + $0x30] sm:$0xff]  ;;  %s443_s30 = sshrl.u32 %s3380_s28, 16  ;;  %s2139_s14 = sshll.u32 %s2515_s18, 2 }
  0x33   : > { %2194 = vmatmul.msk.bf16.gmra.mxu1 %vm632_vm2, %v2722_v42  ;;  %3328 = vst [vmem:[#allocation7_spill] sm:$0xff] %v2764_v0  ;;  %v2856_v19 = vld [vmem:[#allocation2 + $0x30] sm:$0xff]  ;;  %v2868_v23 = vld [vmem:[#allocation2 + $0x48] sm:$0xff]  ;;  %s444_s7 = sshll.u32 %s443_s30, 16  ;;  %v2445_v41 = vld [vmem:[%s376_s8] sm:$0xff]   ;;  %p384_p0 = scmp.lt.s32.totalorder %s2139_s14, 7 }
  0x34   : > { %s445_s11 = sor.u32 %s444_s7, %s443_s30  ;;  %v2446_v48 = vunpack.c.l.bf16 %v2445_v41  ;;  %3334 = vst [vmem:[#allocation12_spill] sm:$0xff] %v2924_v53  ;;  %s2140_s15 = sshll.u32 %s3368_s19, 3 }
  0x35   : > { %2197 = vmatmul.msk.bf16.gmra.mxu2 %vm632_vm2, %v2726_v44  ;;  %v446_v43 = vstv %s445_s11  ;;  %3335 = vst [vmem:[#allocation13_spill] sm:$0xff] %v2930_v58  ;;  %s3382_s14 = smov (!%p384_p0, %s2139_s14), 7 }
  0x36   : > { %v450_v49 = vunpack.c.l.bf16 %v446_v43  ;;  %s387_s18 = sadd.s32 %s2140_s15, %s3382_s14 }
  0x37   : > { %2200 = vmatmul.msk.bf16.gmra.mxu3 %vm632_vm2, %v2730_v47  ;;  %s2141_s16 = sshll.u32 %s387_s18, 2 }
  0x38   : > { %v2770_v1 = vld [vmem:[#allocation2] sm:$0xff]  ;;  %v451_v51 = vmul.f32 %v2446_v48, %v450_v49  ;;  %s3222_s26 = scalar_lea.vmem %s3306_s5, %s2141_s16 }
  0x3a   : > { %v453_v52 = vpack.c.bf16 %v451_v51, %v451_v51  ;;  %v2447_v51 = vunpack.c.h.bf16 %v2445_v41  ;;  %v2949_v41 = vld [vmem:[#allocation2 + $0x60] sm:$0xff] }
  0x3c   : > { %491 = vst.msk [vmem:[#allocation2 + $0x6c] sm:$0xf] %vm392_vm0, %v453_v52 }
  0x41   : > { %2192 = vmatmul.msk.bf16.gmra.mxu0 %vm632_vm2, %v2753_v60 }
  0x43   : > { %2195 = vmatmul.msk.bf16.gmra.mxu1 %vm632_vm2, %v2756_v62 }
  0x45   : > { %2198 = vmatmul.msk.bf16.gmra.mxu2 %vm632_vm2, %v2760_v63 }
  0x47   : > { %2201 = vmatmul.msk.bf16.gmra.mxu3 %vm632_vm2, %v2764_v0 }
  0x51   : > { %2336 = vmatmul.msk.bf16.vlgmr.msrb.gmra.mxu0 %vm632_vm2, %v2770_v1 }
  0x53   : > { %2250 = vmatmul.msk.bf16.vlgmr.msrb.gmra.mxu1 %vm632_vm2, %v2770_v1 }
  0x55   : > { %2310 = vmatmul.msk.bf16.vlgmr.msrb.gmra.mxu2 %vm632_vm2, %v2772_v2 }
  0x57   : > { %2324 = vmatmul.msk.bf16.vlgmr.msrb.gmra.mxu3 %vm632_vm2, %v2666_v26 }
  0x61   : > { %2337 = vmatmul.msk.bf16.gmra.mxu0 %vm632_vm2, %v2782_v3 }
  0x63   : > { %2251 = vmatmul.msk.bf16.gmra.mxu1 %vm632_vm2, %v2782_v3 }
  0x65   : > { %2311 = vmatmul.msk.bf16.gmra.mxu2 %vm632_vm2, %v2784_v4 }
  0x67   : > { %2325 = vmatmul.msk.bf16.gmra.mxu3 %vm632_vm2, %v2720_v38 }
  0x71   : > { %2338 = vmatmul.msk.bf16.gmra.mxu0 %vm632_vm2, %v2794_v5 }
  0x73   : > { %2252 = vmatmul.msk.bf16.gmra.mxu1 %vm632_vm2, %v2794_v5 }
  0x75   : > { %2312 = vmatmul.msk.bf16.gmra.mxu2 %vm632_vm2, %v2796_v6 }
  0x77   : > { %2326 = vmatmul.msk.bf16.gmra.mxu3 %vm632_vm2, %v2753_v60 }
  0x81   : > { %2339 = vmatmul.msk.bf16.gmra.mxu0 %vm632_vm2, %v2806_v7 }
  0x83   : > { %2253 = vmatmul.msk.bf16.gmra.mxu1 %vm632_vm2, %v2806_v7 }
  0x85   : > { %2313 = vmatmul.msk.bf16.gmra.mxu2 %vm632_vm2, %v2808_v8 }
  0x87   : > { %2327 = vmatmul.msk.bf16.gmra.mxu3 %vm632_vm2, %v2673_v27 }
  0x91   : > { %2340 = vmatmul.msk.bf16.gmra.mxu0 %vm632_vm2, %v2818_v9 }
  0x93   : > { %2254 = vmatmul.msk.bf16.gmra.mxu1 %vm632_vm2, %v2818_v9 }
  0x95   : > { %2314 = vmatmul.msk.bf16.gmra.mxu2 %vm632_vm2, %v2820_v10 }
  0x97   : > { %2328 = vmatmul.msk.bf16.gmra.mxu3 %vm632_vm2, %v2722_v42 }
  0x9e   : > { %v2832_v12 = vpop.f32.mrf.mxu0 }
  0xa0   : > { %v2835_v13 = vpop.f32.mrf.mxu1 }
  0xa1   : > { %2341 = vmatmul.msk.bf16.gmra.mxu0 %vm632_vm2, %v2830_v11 }
  0xa3   : > { %2255 = vmatmul.msk.bf16.gmra.mxu1 %vm632_vm2, %v2830_v11 }
  0xa5   : > { %2315 = vmatmul.msk.bf16.gmra.mxu2 %vm632_vm2, %v2837_v14 }
  0xa6   : > { %v2845_v15 = vpop.f32.mrf.mxu0 }
  0xa7   : > { %2329 = vmatmul.msk.bf16.gmra.mxu3 %vm632_vm2, %v2756_v62 }
  0xa8   : > { %v2849_v16 = vpop.f32.mrf.mxu2  ;;  %v2851_v17 = vpop.f32.mrf.mxu1 }
  0xaa   : > { %v2853_v18 = vpop.f32.mrf.mxu3 }
  0xae   : > { %v2858_v20 = vpop.f32.mrf.mxu0 }
  0xb0   : > { %v2864_v21 = vpop.f32.mrf.mxu2  ;;  %v2866_v22 = vpop.f32.mrf.mxu1 }
  0xb1   : > { %2342 = vmatmul.msk.bf16.gmra.mxu0 %vm632_vm2, %v2856_v19 }
  0xb2   : > { %v2872_v24 = vpop.f32.mrf.mxu3 }
  0xb3   : > { %2256 = vmatmul.msk.bf16.gmra.mxu1 %vm632_vm2, %v2856_v19 }
  0xb5   : > { %2316 = vmatmul.msk.bf16.gmra.mxu2 %vm632_vm2, %v2868_v23 }
  0xb6   : > { %v2880_v25 = vpop.f32.mrf.mxu0 }
  0xb7   : > { %2330 = vmatmul.msk.bf16.gmra.mxu3 %vm632_vm2, %v2685_v29 }
  0xb8   : > { %v2886_v28 = vpop.f32.mrf.mxu2  ;;  %v2888_v30 = vpop.f32.mrf.mxu1 }
  0xba   : > { %v2890_v31 = vpop.f32.mrf.mxu3 }
  0xbe   : > { %v2894_v34 = vpop.f32.mrf.mxu0 }
  0xc0   : > { %v2897_v35 = vpop.f32.mrf.mxu2  ;;  %v2899_v36 = vpop.f32.mrf.mxu1 }
  0xc1   : > { %2343 = vmatmul.msk.bf16.gmra.mxu0 %vm632_vm2, %v2892_v33 }
  0xc2   : > { %v2905_v39 = vpop.f32.mrf.mxu3 }
  0xc3   : > { %3332 = vst [vmem:[#allocation10_spill] sm:$0xff] %v2905_v39  ;;  %2257 = vmatmul.msk.bf16.gmra.mxu1 %vm632_vm2, %v2892_v33  ;;  %v452_v33 = vmul.f32 %v2447_v51, %v450_v49 }
  0xc5   : > { %2317 = vmatmul.msk.bf16.gmra.mxu2 %vm632_vm2, %v2901_v37 }
  0xc6   : > { %v2914_v40 = vpop.f32.mrf.mxu0 }
  0xc7   : > { %2331 = vmatmul.msk.bf16.gmra.mxu3 %vm632_vm2, %v2726_v44 }
  0xc8   : > { %v2918_v45 = vpop.f32.mrf.mxu2  ;;  %v2920_v46 = vpop.f32.mrf.mxu1 }
  0xca   : > { %v2922_v50 = vpop.f32.mrf.mxu3 }
  0xcb   : > { %3333 = vst [vmem:[#allocation11_spill] sm:$0xff] %v2922_v50  ;;  %v454_v50 = vpack.c.bf16 %v452_v33, %v452_v33 }
  0xcd   : > { %492 = vst.msk [vmem:[#allocation2 + $0x70] sm:$0xf] %vm392_vm0, %v454_v50 }
  0xce   : > { %v1194_v54 = vpop.f32.mrf.mxu0 }
  0xd0   : > { %v2927_v55 = vpop.f32.mrf.mxu2  ;;  %v850_v56 = vpop.f32.mrf.mxu1 }
  0xd1   : > { %v851_v57 = vadd.f32 %v850_v56, %v2832_v12  ;;  %2344 = vmatmul.msk.bf16.gmra.mxu0 %vm632_vm2, %v2924_v53 }
  0xd2   : > { %v739_v59 = vpop.f32.mrf.mxu3 }
  0xd3   : > { %2258 = vmatmul.msk.bf16.gmra.mxu1 %vm632_vm2, %v2924_v53  ;;  %v2945_v53 = vld [vmem:[#allocation2 + $0x48] sm:$0xff] }
  0xd4   : > { %3336 = vst [vmem:[#allocation14_spill] sm:$0xff] %v2945_v53 }
  0xd5   : > { %2318 = vmatmul.msk.bf16.gmra.mxu2 %vm632_vm2, %v2930_v58 }
  0xd6   : > { %v1196_v61 = vpop.f32.mrf.mxu0 }
  0xd7   : > { %2332 = vmatmul.msk.bf16.gmra.mxu3 %vm632_vm2, %v2760_v63 }
  0xd8   : > { %v1019_v43 = vpop.f32.mrf.mxu2  ;;  %v852_v48 = vpop.f32.mrf.mxu1 }
  0xd9   : > { %v2940_v12 = vadd.f32 %v1019_v43, %v851_v57  ;;  %v853_v52 = vadd.f32 %v852_v48, %v2845_v15  ;;  %v2968_v43 = vld [vmem:[#allocation2 + $0x50] sm:$0xff] }
  0xda   : > { %v1122_v56 = vpop.f32.mrf.mxu3  ;;  %3337 = vst [vmem:[#allocation15_spill] sm:$0xff] %v2968_v43 }
  0xdb   : > { %v2943_v59 = vadd.f32 %v1194_v54, %v1122_v56  ;;  %v3315_v49 = vrot.slane %v2940_v12, 7 }
  0xde   : > { %v1199_v44 = vpop.f32.mrf.mxu0 }
  0xe0   : > { %v1021_v58 = vpop.f32.mrf.mxu2  ;;  %v855_v37 = vpop.f32.mrf.mxu1 }
  0xe1   : > { %v1080_v63 = vadd.f32 %v1021_v58, %v853_v52  ;;  %v856_v39 = vadd.f32 %v855_v37, %v2858_v20  ;;  %2345 = vmatmul.msk.bf16.gmra.mxu0 %vm632_vm2, %v2945_v53 }
  0xe2   : > { %v1124_v15 = vpop.f32.mrf.mxu3 }
  0xe3   : > { %v1625_v54 = vrot.slane %v1080_v63, 7  ;;  %v2954_v33 = vadd.f32 %v1196_v61, %v1124_v15  ;;  %2259 = vmatmul.msk.bf16.gmra.mxu1 %vm632_vm2, %v2945_v53 }
  0xe5   : > { %2319 = vmatmul.msk.bf16.gmra.mxu2 %vm632_vm2, %v2949_v41  ;;  %v2963_v44 = vsel %vm1623_vm3, %v3315_v49, %v1625_v54  ;;  %v2971_v54 = vld [vmem:[#allocation2 + $0x68] sm:$0xff] }
  0xe6   : > { %v1201_v20 = vpop.f32.mrf.mxu0  ;;  %3338 = vst [vmem:[#allocation16_spill] sm:$0xff] %v2971_v54 }
  0xe7   : > { %2333 = vmatmul.msk.bf16.gmra.mxu3 %vm632_vm2, %v2696_v32 }
  0xe8   : > { %v1024_v37 = vpop.f32.mrf.mxu2  ;;  %v857_v63 = vpop.f32.mrf.mxu1 }
  0xe9   : > { %v1081_v50 = vadd.f32 %v1024_v37, %v856_v39  ;;  %v858_v57 = vadd.f32 %v857_v63, %v2880_v25 }
  0xea   : > { %v1127_v58 = vpop.f32.mrf.mxu3 }
  0xeb   : > { %v1627_v61 = vrot.slane %v1081_v50, 7 }
  0xee   : > { %v1204_v48 = vpop.f32.mrf.mxu0 }
  0xf0   : > { %v1026_v51 = vpop.f32.mrf.mxu2  ;;  %v860_v52 = vpop.f32.mrf.mxu1 }
  0xf1   : > { %v1082_v56 = vadd.f32 %v1026_v51, %v858_v57  ;;  %v861_v15 = vadd.f32 %v860_v52, %v2894_v34  ;;  %2346 = vmatmul.msk.bf16.gmra.mxu0 %vm632_vm2, %v2968_v43  ;;  %v2989_v51 = vld [vmem:[#allocation2 + $0x58] sm:$0xff] }
  0xf2   : > { %v1129_v49 = vpop.f32.mrf.mxu3  ;;  %3339 = vst [vmem:[#allocation17_spill] sm:$0xff] %v2989_v51 }
  0xf3   : > { %v1629_v53 = vrot.slane %v1082_v56, 7  ;;  %v2975_v39 = vadd.f32 %v1201_v20, %v1129_v49  ;;  %2260 = vmatmul.msk.bf16.gmra.mxu1 %vm632_vm2, %v2968_v43 }
  0xf5   : > { %2320 = vmatmul.msk.bf16.gmra.mxu2 %vm632_vm2, %v2971_v54  ;;  %v2982_v25 = vsel %vm1623_vm3, %v1627_v61, %v1629_v53  ;;  %v2994_v54 = vld [vmem:[#allocation2 + $0x70] sm:$0xff] }
  0xf6   : > { %v1206_v37 = vpop.f32.mrf.mxu0  ;;  %3340 = vst [vmem:[#allocation18_spill] sm:$0xff] %v2994_v54 }
  0xf7   : > { %2334 = vmatmul.msk.bf16.gmra.mxu3 %vm632_vm2, %v2730_v47 }
  0xf8   : > { %v1029_v34 = vpop.f32.mrf.mxu2  ;;  %v862_v63 = vpop.f32.mrf.mxu1 }
  0xf9   : > { %v1083_v50 = vadd.f32 %v1029_v34, %v861_v15  ;;  %v863_v57 = vadd.f32 %v862_v63, %v2914_v40 }
  0xfa   : > { %v1132_v49 = vpop.f32.mrf.mxu3 }
  0xfb   : > { %v1631_v20 = vrot.slane %v1083_v50, 7  ;;  %v2987_v58 = vadd.f32 %v1204_v48, %v1132_v49 }
  0xfd   : > { %v2992_v52 = vsel %vm1623_vm3, %v1629_v53, %v1631_v20 }
  0xfe   : > { %v1209_v61 = vpop.f32.mrf.mxu0 }
 0x100   : > { %v1031_v56 = vpop.f32.mrf.mxu2  ;;  %v865_v37 = vpop.f32.mrf.mxu1 }
 0x101   : > { %v1084_v43 = vadd.f32 %v1031_v56, %v863_v57  ;;  %2347 = vmatmul.msk.bf16.gmra.mxu0 %vm632_vm2, %v2989_v51  ;;  %v866_v53 = vadd.f32 %v865_v37, %v2835_v13 }
 0x102   : > { %v1134_v15 = vpop.f32.mrf.mxu3 }
 0x103   : > { %v1633_v40 = vrot.slane %v1084_v43, 7  ;;  %2261 = vmatmul.msk.bf16.gmra.mxu1 %vm632_vm2, %v2989_v51 }
 0x105   : > { %2321 = vmatmul.msk.bf16.gmra.mxu2 %vm632_vm2, %v2994_v54 }
 0x106   : > { %v1211_v48 = vpop.f32.mrf.mxu0 }
 0x107   : > { %2335 = vmatmul.msk.bf16.gmra.mxu3 %vm632_vm2, %v2764_v0 }
 0x108   : > { %v1034_v34 = vpop.f32.mrf.mxu2  ;;  %v867_v63 = vpop.f32.mrf.mxu1 }
 0x109   : > { %v1085_v50 = vadd.f32 %v1034_v34, %v866_v53  ;;  %v868_v15 = vadd.f32 %v867_v63, %v2851_v17 }
 0x10a   : > { %v1137_v57 = vpop.f32.mrf.mxu3 }
 0x10b   : > { %v1635_v49 = vrot.slane %v1085_v50, 7  ;;  %v3005_v20 = vadd.f32 %v1209_v61, %v1137_v57 }
 0x10d   : > { %v3008_v43 = vsel %vm1623_vm3, %v1633_v40, %v1635_v49 }
 0x10e   : > { %v1214_v56 = vpop.f32.mrf.mxu0 }
 0x110   : > { %v1036_v51 = vpop.f32.mrf.mxu2  ;;  %v870_v54 = vpop.f32.mrf.mxu1 }
 0x111   : > { %v1086_v47 = vadd.f32 %v1036_v51, %v868_v15  ;;  %2388 = vmatmul.msk.bf16.vlgmr.msra.gmra.mxu0 %vm632_vm2, %v2772_v2  ;;  %v871_v40 = vadd.f32 %v870_v54, %v2866_v22 }
 0x112   : > { %v1139_v13 = vpop.f32.mrf.mxu3 }
 0x113   : > { %v1637_v37 = vrot.slane %v1086_v47, 7  ;;  %v3013_v0 = vadd.f32 %v1211_v48, %v1139_v13  ;;  %2349 = vmatmul.msk.bf16.vlgmr.msra.gmra.mxu1 %vm632_vm2, %v2772_v2 }
 0x115   : > { %2363 = vmatmul.msk.bf16.vlgmr.msra.gmra.mxu2 %vm632_vm2, %v2666_v26  ;;  %v3020_v61 = vsel %vm1623_vm3, %v1635_v49, %v1637_v37 }
 0x116   : > { %v1216_v17 = vpop.f32.mrf.mxu0 }
 0x117   : > { %2375 = vmatmul.msk.bf16.vlgmr.msra.gmra.mxu3 %vm632_vm2, %v2770_v1 }
 0x118   : > { %v1039_v51 = vpop.f32.mrf.mxu2  ;;  %v872_v53 = vpop.f32.mrf.mxu1 }
 0x119   : > { %v1087_v47 = vadd.f32 %v1039_v51, %v871_v40  ;;  %v873_v2 = vadd.f32 %v872_v53, %v2888_v30 }
 0x11a   : > { %v1142_v48 = vpop.f32.mrf.mxu3 }
 0x11b   : > { %v1639_v34 = vrot.slane %v1087_v47, 7 }
 0x11e   : > { %v1219_v63 = vpop.f32.mrf.mxu0 }
 0x120   : > { %v1041_v50 = vpop.f32.mrf.mxu2  ;;  %v875_v57 = vpop.f32.mrf.mxu1 }
 0x121   : > { %v1088_v26 = vadd.f32 %v1041_v50, %v873_v2  ;;  %2389 = vmatmul.msk.bf16.gmra.mxu0 %vm632_vm2, %v2784_v4  ;;  %v876_v54 = vadd.f32 %v875_v57, %v2899_v36 }
 0x122   : > { %v1144_v49 = vpop.f32.mrf.mxu3 }
 0x123   : > { %v1641_v56 = vrot.slane %v1088_v26, 7  ;;  %v3028_v22 = vadd.f32 %v1216_v17, %v1144_v49  ;;  %2350 = vmatmul.msk.bf16.gmra.mxu1 %vm632_vm2, %v2784_v4 }
 0x125   : > { %2364 = vmatmul.msk.bf16.gmra.mxu2 %vm632_vm2, %v2720_v38  ;;  %v3035_v1 = vsel %vm1623_vm3, %v1639_v34, %v1641_v56 }
 0x126   : > { %v1221_v30 = vpop.f32.mrf.mxu0 }
 0x127   : > { %2376 = vmatmul.msk.bf16.gmra.mxu3 %vm632_vm2, %v2782_v3 }
 0x128   : > { %v1044_v15 = vpop.f32.mrf.mxu2  ;;  %v877_v13 = vpop.f32.mrf.mxu1 }
 0x129   : > { %v1089_v37 = vadd.f32 %v1044_v15, %v876_v54  ;;  %v878_v53 = vadd.f32 %v877_v13, %v2920_v46 }
 0x12a   : > { %v1147_v17 = vpop.f32.mrf.mxu3 }
 0x12b   : > { %v1643_v40 = vrot.slane %v1089_v37, 7  ;;  %v3040_v51 = vadd.f32 %v1219_v63, %v1147_v17 }
 0x12d   : > { %v3043_v4 = vsel %vm1623_vm3, %v1641_v56, %v1643_v40 }
 0x12e   : > { %v1224_v38 = vpop.f32.mrf.mxu0 }
 0x130   : > { %v1046_v47 = vpop.f32.mrf.mxu2  ;;  %v880_v48 = vpop.f32.mrf.mxu1 }
 0x131   : > { %v1090_v34 = vadd.f32 %v1046_v47, %v878_v53  ;;  %2390 = vmatmul.msk.bf16.gmra.mxu0 %vm632_vm2, %v2796_v6  ;;  %v881_v2 = vadd.f32 %v880_v48, %v2849_v16 }
 0x132   : > { %v1149_v3 = vpop.f32.mrf.mxu3 }
 0x133   : > { %v1645_v36 = vrot.slane %v1090_v34, 7  ;;  %2351 = vmatmul.msk.bf16.gmra.mxu1 %vm632_vm2, %v2796_v6 }
 0x135   : > { %2365 = vmatmul.msk.bf16.gmra.mxu2 %vm632_vm2, %v2753_v60 }
 0x136   : > { %v1226_v63 = vpop.f32.mrf.mxu0 }
 0x137   : > { %2377 = vmatmul.msk.bf16.gmra.mxu3 %vm632_vm2, %v2794_v5 }
 0x138   : > { %v1049_v46 = vpop.f32.mrf.mxu2  ;;  %v882_v50 = vpop.f32.mrf.mxu1 }
 0x139   : > { %v1091_v57 = vadd.f32 %v1049_v46, %v881_v2  ;;  %v883_v54 = vadd.f32 %v882_v50, %v2864_v21 }
 0x13a   : > { %v1152_v26 = vpop.f32.mrf.mxu3 }
 0x13b   : > { %v1647_v49 = vrot.slane %v1091_v57, 7  ;;  %v3055_v56 = vadd.f32 %v1224_v38, %v1152_v26 }
 0x13d   : > { %v3058_v30 = vsel %vm1623_vm3, %v1645_v36, %v1647_v49 }
 0x13e   : > { %v1229_v6 = vpop.f32.mrf.mxu0 }
 0x140   : > { %v1051_v60 = vpop.f32.mrf.mxu2  ;;  %v885_v15 = vpop.f32.mrf.mxu1 }
 0x141   : > { %v1092_v13 = vadd.f32 %v1051_v60, %v883_v54  ;;  %2391 = vmatmul.msk.bf16.gmra.mxu0 %vm632_vm2, %v2808_v8  ;;  %v886_v40 = vadd.f32 %v885_v15, %v2886_v28 }
 0x142   : > { %v1154_v5 = vpop.f32.mrf.mxu3 }
 0x143   : > { %v1649_v16 = vrot.slane %v1092_v13, 7  ;;  %v3063_v37 = vadd.f32 %v1226_v63, %v1154_v5  ;;  %2352 = vmatmul.msk.bf16.gmra.mxu1 %vm632_vm2, %v2808_v8 }
 0x145   : > { %2366 = vmatmul.msk.bf16.gmra.mxu2 %vm632_vm2, %v2673_v27  ;;  %v3070_v17 = vsel %vm1623_vm3, %v1647_v49, %v1649_v16 }
 0x146   : > { %v1231_v21 = vpop.f32.mrf.mxu0 }
 0x147   : > { %2378 = vmatmul.msk.bf16.gmra.mxu3 %vm632_vm2, %v2806_v7 }
 0x148   : > { %v1054_v38 = vpop.f32.mrf.mxu2  ;;  %v887_v53 = vpop.f32.mrf.mxu1 }
 0x149   : > { %v1093_v47 = vadd.f32 %v1054_v38, %v886_v40  ;;  %v888_v8 = vadd.f32 %v887_v53, %v2897_v35 }
 0x14a   : > { %v1157_v48 = vpop.f32.mrf.mxu3 }
 0x14b   : > { %v1651_v34 = vrot.slane %v1093_v47, 7 }
 0x14e   : > { %v1234_v3 = vpop.f32.mrf.mxu0 }
 0x150   : > { %v1056_v36 = vpop.f32.mrf.mxu2  ;;  %v890_v63 = vpop.f32.mrf.mxu1 }
 0x151   : > { %v1094_v27 = vadd.f32 %v1056_v36, %v888_v8  ;;  %2392 = vmatmul.msk.bf16.gmra.mxu0 %vm632_vm2, %v2820_v10  ;;  %v891_v50 = vadd.f32 %v890_v63, %v2918_v45 }
 0x152   : > { %v1159_v2 = vpop.f32.mrf.mxu3 }
 0x153   : > { %v1653_v46 = vrot.slane %v1094_v27, 7  ;;  %v3078_v28 = vadd.f32 %v1231_v21, %v1159_v2  ;;  %2353 = vmatmul.msk.bf16.gmra.mxu1 %vm632_vm2, %v2820_v10 }
 0x155   : > { %2367 = vmatmul.msk.bf16.gmra.mxu2 %vm632_vm2, %v2722_v42  ;;  %v3085_v7 = vsel %vm1623_vm3, %v1651_v34, %v1653_v46 }
 0x156   : > { %v1236_v35 = vpop.f32.mrf.mxu0 }
 0x157   : > { %2379 = vmatmul.msk.bf16.gmra.mxu3 %vm632_vm2, %v2818_v9 }
 0x158   : > { %v1059_v57 = vpop.f32.mrf.mxu2  ;;  %v892_v26 = vpop.f32.mrf.mxu1 }
 0x159   : > { %v1095_v49 = vadd.f32 %v1059_v57, %v891_v50  ;;  %v893_v15 = vadd.f32 %v892_v26, %v2927_v55 }
 0x15a   : > { %v1162_v6 = vpop.f32.mrf.mxu3 }
 0x15b   : > { %v1655_v54 = vrot.slane %v1095_v49, 7  ;;  %v3090_v60 = vadd.f32 %v1234_v3, %v1162_v6 }
 0x15d   : > { %v3093_v10 = vsel %vm1623_vm3, %v1653_v46, %v1655_v54  ;;  %v3341_v54 = vld [vmem:[#allocation10_spill] sm:$0xff] }
 0x15e   : > { %v1239_v42 = vpop.f32.mrf.mxu0 }
 0x160   : > { %v1061_v13 = vpop.f32.mrf.mxu2  ;;  %v895_v5 = vpop.f32.mrf.mxu1 }
 0x161   : > { %v1096_v16 = vadd.f32 %v1061_v13, %v893_v15  ;;  %2393 = vmatmul.msk.bf16.gmra.mxu0 %vm632_vm2, %v2837_v14  ;;  %v896_v40 = vadd.f32 %v895_v5, %v2853_v18  ;;  %v3342_v13 = vld [vmem:[#allocation9_spill] sm:$0xff] }
 0x162   : > { %v1164_v9 = vpop.f32.mrf.mxu3 }
 0x163   : > { %v1657_v45 = vrot.slane %v1096_v16, 7  ;;  %2354 = vmatmul.msk.bf16.gmra.mxu1 %vm632_vm2, %v2837_v14 }
 0x165   : > { %2368 = vmatmul.msk.bf16.gmra.mxu2 %vm632_vm2, %v2756_v62 }
 0x166   : > { %v1241_v21 = vpop.f32.mrf.mxu0 }
 0x167   : > { %2380 = vmatmul.msk.bf16.gmra.mxu3 %vm632_vm2, %v2830_v11 }
 0x168   : > { %v1064_v55 = vpop.f32.mrf.mxu2  ;;  %v897_v38 = vpop.f32.mrf.mxu1 }
 0x169   : > { %v1097_v53 = vadd.f32 %v1064_v55, %v896_v40  ;;  %v898_v8 = vadd.f32 %v897_v38, %v2872_v24  ;;  %v3345_v55 = vld [vmem:[#allocation8_spill] sm:$0xff] }
 0x16a   : > { %v1167_v47 = vpop.f32.mrf.mxu3 }
 0x16b   : > { %v1659_v48 = vrot.slane %v1097_v53, 7  ;;  %v3105_v34 = vadd.f32 %v1239_v42, %v1167_v47 }
 0x16d   : > { %v3108_v3 = vsel %vm1623_vm3, %v1657_v45, %v1659_v48 }
 0x16e   : > { %v1244_v14 = vpop.f32.mrf.mxu0 }
 0x170   : > { %v1066_v62 = vpop.f32.mrf.mxu2  ;;  %v900_v36 = vpop.f32.mrf.mxu1 }
 0x171   : > { %v1098_v63 = vadd.f32 %v1066_v62, %v898_v8  ;;  %2394 = vmatmul.msk.bf16.gmra.mxu0 %vm632_vm2, %v2868_v23  ;;  %v901_v46 = vadd.f32 %v900_v36, %v2890_v31 }
 0x172   : > { %v1169_v11 = vpop.f32.mrf.mxu3 }
 0x173   : > { %v1661_v18 = vrot.slane %v1098_v63, 7  ;;  %v3113_v27 = vadd.f32 %v1241_v21, %v1169_v11  ;;  %2355 = vmatmul.msk.bf16.gmra.mxu1 %vm632_vm2, %v2868_v23  ;;  %v3344_v21 = vld [vmem:[#allocation11_spill] sm:$0xff]  ;;  %v3148_v63 = vld [vmem:[%s3305_s4] ss:$0 sm:$0xff] }
 0x175   : > { %2369 = vmatmul.msk.bf16.gmra.mxu2 %vm632_vm2, %v2685_v29  ;;  %v3120_v2 = vsel %vm1623_vm3, %v1659_v48, %v1661_v18 }
 0x176   : > { %v1246_v24 = vpop.f32.mrf.mxu0 }
 0x177   : > { %2381 = vmatmul.msk.bf16.gmra.mxu3 %vm632_vm2, %v2856_v19  ;;  %v3343_v19 = vld [vmem:[#allocation4_spill] sm:$0xff] }
 0x178   : > { %v1069_v35 = vpop.f32.mrf.mxu2  ;;  %v902_v50 = vpop.f32.mrf.mxu1 }
 0x179   : > { %v1099_v57 = vadd.f32 %v1069_v35, %v901_v46  ;;  %v903_v23 = vadd.f32 %v902_v50, %v3341_v54  ;;  %v3346_v46 = vld [vmem:[#allocation13_spill] sm:$0xff] }
 0x17a   : > { %v1172_v26 = vpop.f32.mrf.mxu3 }
 0x17b   : > { %v1663_v49 = vrot.slane %v1099_v57, 7  ;;  %v3347_v57 = vrot.slane %v2940_v12, 7 }
 0x17d   : > { %v1695_v26 = vsel %vm1623_vm3, 0.0, %v3347_v57  ;;  %v3352_v57 = vld [vmem:[#allocation5_spill] sm:$0xff] }
 0x17e   : > { %v1249_v6 = vpop.f32.mrf.mxu0 }
 0x180   : > { %v1071_v42 = vpop.f32.mrf.mxu2  ;;  %v905_v15 = vpop.f32.mrf.mxu1 }
 0x181   : > { %v1100_v29 = vadd.f32 %v1071_v42, %v903_v23  ;;  %2395 = vmatmul.msk.bf16.gmra.mxu0 %vm632_vm2, %v3342_v13  ;;  %v906_v40 = vadd.f32 %v905_v15, %v3344_v21  ;;  %v3349_v23 = vld [vmem:[#allocation12_spill] sm:$0xff]  ;;  %v3350_v21 = vld [vmem:[#allocation14_spill] sm:$0xff] }
 0x182   : > { %v1174_v5 = vpop.f32.mrf.mxu3 }
 0x183   : > { %v1665_v16 = vrot.slane %v1100_v29, 7  ;;  %v3128_v31 = vadd.f32 %v1246_v24, %v1174_v5  ;;  %2356 = vmatmul.msk.bf16.gmra.mxu1 %vm632_vm2, %v3342_v13 }
 0x185   : > { %2370 = vmatmul.msk.bf16.gmra.mxu2 %vm632_vm2, %v3343_v19  ;;  %v3135_v9 = vsel %vm1623_vm3, %v1663_v49, %v1665_v16 }
 0x186   : > { %v1251_v45 = vpop.f32.mrf.mxu0 }
 0x187   : > { %2382 = vmatmul.msk.bf16.gmra.mxu3 %vm632_vm2, %v3345_v55 }
 0x188   : > { %v1074_v38 = vpop.f32.mrf.mxu2  ;;  %v907_v53 = vpop.f32.mrf.mxu1 }
 0x189   : > { %v1101_v47 = vadd.f32 %v1074_v38, %v906_v40 }
 0x18a   : > { %v1177_v48 = vpop.f32.mrf.mxu3 }
 0x18b   : > { %v1667_v14 = vrot.slane %v1101_v47, 7  ;;  %v3140_v8 = vadd.f32 %v1249_v6, %v1177_v48  ;;  %v3348_v6 = vld [vmem:[#allocation6_spill] sm:$0xff] }
 0x18d   : > { %v3143_v62 = vsel %vm1623_vm3, %v1665_v16, %v1667_v14 }
 0x18e   : > { %v1515_v36 = vpop.f32.mrf.mxu0 }
 0x190   : > { %v1076_v11 = vpop.f32.mrf.mxu2  ;;  %v1267_v18 = vpop.f32.mrf.mxu1 }
 0x191   : > { %v1327_v24 = vadd.f32 %v1267_v18, %v2943_v59  ;;  %2396 = vmatmul.msk.bf16.gmra.mxu0 %vm632_vm2, %v3346_v46 }
 0x192   : > { %v1179_v35 = vpop.f32.mrf.mxu3 }
 0x193   : > { %v1797_v50 = vadd.f32 %v3148_v63, %v1327_v24  ;;  %2357 = vmatmul.msk.bf16.gmra.mxu1 %vm632_vm2, %v3346_v46  ;;  %v3351_v24 = vld [vmem:[#allocation16_spill] sm:$0xff] }
 0x195   : > { %v1821_v49 = vadd.f32 %v1797_v50, %v1695_v26  ;;  %2371 = vmatmul.msk.bf16.gmra.mxu2 %vm632_vm2, %v3348_v6 }
 0x196   : > { %v1517_v54 = vpop.f32.mrf.mxu0 }
 0x197   : > { %2383 = vmatmul.msk.bf16.gmra.mxu3 %vm632_vm2, %v3349_v23 }
 0x198   : > { %v1370_v59 = vpop.f32.mrf.mxu2  ;;  %v1269_v42 = vpop.f32.mrf.mxu1 }
 0x199   : > { %v1328_v15 = vadd.f32 %v1269_v42, %v2954_v33 }
 0x19a   : > { %v1442_v29 = vpop.f32.mrf.mxu3 }
 0x19b   : > { %v1798_v13 = vadd.f32 %v3148_v63, %v1328_v15  ;;  %v1443_v11 = vadd.f32 %v1442_v29, %v1370_v59  ;;  %v3353_v59 = vld [vmem:[#allocation15_spill] sm:$0xff] }
 0x19d   : > { %v3166_v5 = vadd.f32 %v1798_v13, %v2963_v44 }
 0x19e   : > { %v1520_v12 = vpop.f32.mrf.mxu0 }
 0x1a0   : > { %v1372_v16 = vpop.f32.mrf.mxu2  ;;  %v1272_v19 = vpop.f32.mrf.mxu1 }
 0x1a1   : > { %2397 = vmatmul.msk.bf16.gmra.mxu0 %vm632_vm2, %v2949_v41 }
 0x1a2   : > { %v1444_v45 = vpop.f32.mrf.mxu3 }
 0x1a3   : > { %2358 = vmatmul.msk.bf16.gmra.mxu1 %vm632_vm2, %v2949_v41  ;;  %v1445_v48 = vadd.f32 %v1444_v45, %v1372_v16 }
 0x1a5   : > { %2372 = vmatmul.msk.bf16.gmra.mxu2 %vm632_vm2, %v2696_v32  ;;  %v1576_v46 = vadd.f32 %v1517_v54, %v1445_v48 }
 0x1a6   : > { %v1522_v33 = vpop.f32.mrf.mxu0 }
 0x1a7   : > { %2384 = vmatmul.msk.bf16.gmra.mxu3 %vm632_vm2, %v3350_v21  ;;  %v1722_v26 = vrot.slane %v1576_v46, 1 }
 0x1a8   : > { %v1375_v40 = vpop.f32.mrf.mxu2  ;;  %v1274_v44 = vpop.f32.mrf.mxu1 }
 0x1a9   : > { %v1330_v55 = vadd.f32 %v1274_v44, %v2975_v39  ;;  %v1575_v39 = vadd.f32 %v1515_v36, %v1443_v11 }
 0x1aa   : > { %v1447_v38 = vpop.f32.mrf.mxu3 }
 0x1ab   : > { %v1800_v53 = vadd.f32 %v3148_v63, %v1330_v55  ;;  %v1721_v54 = vrot.slane %v1575_v39, 1 }
 0x1ad   : > { %v1824_v47 = vadd.f32 %v1800_v53, %v2982_v25  ;;  %v1723_v29 = vsel %vm1720_vm4, %v1721_v54, %v1722_v26 }
 0x1ae   : > { %v1525_v14 = vpop.f32.mrf.mxu0  ;;  %v1845_v45 = vadd.f32 %v1821_v49, %v1723_v29 }
 0x1b0   : > { %v1377_v41 = vpop.f32.mrf.mxu2  ;;  %v1277_v18 = vpop.f32.mrf.mxu1 }
 0x1b1   : > { %v1331_v32 = vadd.f32 %v1277_v18, %v2987_v58  ;;  %2398 = vmatmul.msk.bf16.gmra.mxu0 %vm632_vm2, %v3351_v24  ;;  %v1448_v58 = vadd.f32 %v1447_v38, %v1375_v40  ;;  %v1869_v18 = vmul.f32 0.2, %v1845_v45 }
 0x1b2   : > { %v1449_v35 = vpop.f32.mrf.mxu3 }
 0x1b3   : > { %v1801_v50 = vadd.f32 %v3148_v63, %v1331_v32  ;;  %2359 = vmatmul.msk.bf16.gmra.mxu1 %vm632_vm2, %v3351_v24  ;;  %v1450_v23 = vadd.f32 %v1449_v35, %v1377_v41  ;;  %v1577_v36 = vadd.f32 %v1520_v12, %v1448_v58  ;;  %v3354_v41 = vld [vmem:[#allocation18_spill] sm:$0xff]  ;;  %v3356_v58 = vld [vmem:[#allocation17_spill] sm:$0xff] }
 0x1b5   : > { %v1825_v25 = vadd.f32 %v1801_v50, %v2992_v52  ;;  %2373 = vmatmul.msk.bf16.gmra.mxu2 %vm632_vm2, %v3352_v57  ;;  %v1578_v16 = vadd.f32 %v1522_v33, %v1450_v23  ;;  %v1724_v44 = vrot.slane %v1577_v36, 1  ;;  %v1893_v50 = vmax.f32 %v1845_v45, %v1869_v18 }
 0x1b6   : > { %v1527_v6 = vpop.f32.mrf.mxu0 }
 0x1b7   : > { %2385 = vmatmul.msk.bf16.gmra.mxu3 %vm632_vm2, %v3353_v59  ;;  %v1726_v55 = vrot.slane %v1578_v16, 1  ;;  %v1725_v33 = vsel %vm1720_vm4, %v1722_v26, %v1724_v44 }
 0x1b8   : > { %v1380_v42 = vpop.f32.mrf.mxu2  ;;  %v1279_v15 = vpop.f32.mrf.mxu1 }
 0x1ba   : > { %v1452_v13 = vpop.f32.mrf.mxu3 }
 0x1bb   : > { %v1453_v52 = vadd.f32 %v1452_v13, %v1380_v42 }
 0x1bd   : > { %v1579_v19 = vadd.f32 %v1525_v14, %v1453_v52 }
 0x1be   : > { %v1530_v21 = vpop.f32.mrf.mxu0 }
 0x1bf   : > { %v1728_v53 = vrot.slane %v1579_v19, 1 }
 0x1c0   : > { %v1382_v40 = vpop.f32.mrf.mxu2  ;;  %v1282_v38 = vpop.f32.mrf.mxu1 }
 0x1c1   : > { %v1729_v48 = vsel %vm1720_vm4, %v1726_v55, %v1728_v53  ;;  %v1333_v11 = vadd.f32 %v1282_v38, %v3005_v20  ;;  %2399 = vmatmul.msk.bf16.gmra.mxu0 %vm632_vm2, %v3354_v41  ;;  %v3355_v20 = vld [vmem:[#allocation7_spill] sm:$0xff] }
 0x1c2   : > { %v1848_v32 = vadd.f32 %v1824_v47, %v1729_v48  ;;  %v1454_v12 = vpop.f32.mrf.mxu3  ;;  %v1846_v47 = vadd.f32 %v3166_v5, %v1725_v33 }
 0x1c3   : > { %v1455_v14 = vadd.f32 %v1454_v12, %v1382_v40  ;;  %v1803_v49 = vadd.f32 %v3148_v63, %v1333_v11  ;;  %2360 = vmatmul.msk.bf16.gmra.mxu1 %vm632_vm2, %v3354_v41 }
 0x1c4   : > { %v1872_v24 = vmul.f32 0.2, %v1848_v32  ;;  %v1870_v42 = vmul.f32 0.2, %v1846_v47 }
 0x1c5   : > { %v1580_v46 = vadd.f32 %v1527_v6, %v1455_v14  ;;  %v3200_v35 = vadd.f32 %v1803_v49, %v3008_v43  ;;  %2374 = vmatmul.msk.bf16.gmra.mxu2 %vm632_vm2, %v3355_v20 }
 0x1c6   : > { %v1896_v39 = vmax.f32 %v1848_v32, %v1872_v24  ;;  %v1532_v57 = vpop.f32.mrf.mxu0  ;;  %v1894_v19 = vmax.f32 %v1846_v47, %v1870_v42 }
 0x1c7   : > { %v1730_v26 = vrot.slane %v1580_v46, 1  ;;  %2386 = vmatmul.msk.bf16.gmra.mxu3 %vm632_vm2, %v3356_v58 }
 0x1c8   : > { %v1917_v23 = vadd.f32 %v1896_v39, %v1893_v50  ;;  %v1385_v59 = vpop.f32.mrf.mxu2  ;;  %v1284_v54 = vpop.f32.mrf.mxu1 }
 0x1c9   : > { %v1731_v6 = vsel %vm1720_vm4, %v1728_v53, %v1730_v26  ;;  %v1334_v43 = vadd.f32 %v1284_v54, %v3013_v0 }
 0x1ca   : > { %1929 = vst.msk [vmem:[#allocation3] sm:$0xff] %vm632_vm2, %v1917_v23  ;;  %v1849_v15 = vadd.f32 %v1825_v25, %v1731_v6  ;;  %v1457_v29 = vpop.f32.mrf.mxu3 }
 0x1cb   : > { %v1458_v5 = vadd.f32 %v1457_v29, %v1385_v59  ;;  %v1804_v13 = vadd.f32 %v3148_v63, %v1334_v43 }
 0x1cc   : > { %v1873_v36 = vmul.f32 0.2, %v1849_v15 }
 0x1cd   : > { %v1581_v16 = vadd.f32 %v1530_v21, %v1458_v5  ;;  %v3213_v52 = vadd.f32 %v1804_v13, %v3020_v61 }
 0x1ce   : > { %v1897_v45 = vmax.f32 %v1849_v15, %v1873_v36  ;;  %v1535_v44 = vpop.f32.mrf.mxu0 }
 0x1cf   : > { %v1732_v0 = vrot.slane %v1581_v16, 1 }
 0x1d0   : > { %v1918_v55 = vadd.f32 %v1897_v45, %v1894_v19  ;;  %v1387_v53 = vpop.f32.mrf.mxu2  ;;  %v1287_v40 = vpop.f32.mrf.mxu1 }
 0x1d2   : > { %1930 = vst.msk [vmem:[#allocation3 + $0x8] sm:$0xff] %vm632_vm2, %v1918_v55  ;;  %v1459_v25 = vpop.f32.mrf.mxu3 }
 0x1d3   : > { %v1460_v24 = vadd.f32 %v1459_v25, %v1387_v53 }
 0x1d5   : > { %v1582_v47 = vadd.f32 %v1532_v57, %v1460_v24 }
 0x1d6   : > { %v1537_v38 = vpop.f32.mrf.mxu0 }
 0x1d7   : > { %v1734_v23 = vrot.slane %v1582_v47, 1 }
 0x1d8   : > { %v1390_v48 = vpop.f32.mrf.mxu2  ;;  %v1289_v21 = vpop.f32.mrf.mxu1 }
 0x1d9   : > { %v1941_v11 = vld [vmem:[#allocation3] ss:$2 sm:$0xff]  ;;  %v1949_v61 = vld [vmem:[#allocation3 + $0x1] ss:$2 sm:$0xff]  ;;  %v1336_v41 = vadd.f32 %v1289_v21, %v3028_v22  ;;  %v1735_v42 = vsel %vm1720_vm4, %v1732_v0, %v1734_v23 }
 0x1da   : > { %v1956_v18 = vadd.f32 %v1949_v61, %v1941_v11  ;;  %v1462_v32 = vpop.f32.mrf.mxu3 }
 0x1db   : > { %v1806_v12 = vadd.f32 %v3148_v63, %v1336_v41  ;;  %v1463_v54 = vadd.f32 %v1462_v32, %v1390_v48 }
 0x1dc   : > { %v1960_v33 = vmul.f32 0.25, %v1956_v18 }
 0x1dd   : > { %v1830_v14 = vadd.f32 %v1806_v12, %v3035_v1  ;;  %v1583_v29 = vadd.f32 %v1535_v44, %v1463_v54 }
 0x1de   : > { %v1964_v49 = vpack.c.bf16 %v1960_v33, %v1960_v33  ;;  %v1540_v46 = vpop.f32.mrf.mxu0 }
 0x1df   : > { %v1736_v16 = vrot.slane %v1583_v29, 1 }
 0x1e0   : > { %1968 = vst.msk [vmem:[%s3222_s26] sm:$0xf] %vm392_vm0, %v1964_v49  ;;  %v1392_v22 = vpop.f32.mrf.mxu2  ;;  %v1292_v20 = vpop.f32.mrf.mxu1 }
 0x1e1   : > { %v1337_v50 = vadd.f32 %v1292_v20, %v3040_v51  ;;  %v1851_v51 = vadd.f32 %v3200_v35, %v1735_v42  ;;  %v1737_v44 = vsel %vm1720_vm4, %v1734_v23, %v1736_v16 }
 0x1e2   : > { %v1464_v39 = vpop.f32.mrf.mxu3  ;;  %v1852_v18 = vadd.f32 %v3213_v52, %v1737_v44 }
 0x1e3   : > { %v1807_v26 = vadd.f32 %v3148_v63, %v1337_v50  ;;  %v1465_v6 = vadd.f32 %v1464_v39, %v1392_v22  ;;  %v1875_v25 = vmul.f32 0.2, %v1851_v51 }
 0x1e4   : > { %v1876_v22 = vmul.f32 0.2, %v1852_v18 }
 0x1e5   : > { %v1831_v58 = vadd.f32 %v1807_v26, %v3043_v4  ;;  %v1584_v5 = vadd.f32 %v1537_v38, %v1465_v6  ;;  %v1899_v41 = vmax.f32 %v1851_v51, %v1875_v25 }
 0x1e6   : > { %v1542_v59 = vpop.f32.mrf.mxu0  ;;  %v1900_v23 = vmax.f32 %v1852_v18, %v1876_v22 }
 0x1e7   : > { %v1738_v19 = vrot.slane %v1584_v5, 1 }
 0x1e8   : > { %v1395_v1 = vpop.f32.mrf.mxu2  ;;  %v1294_v43 = vpop.f32.mrf.mxu1 }
 0x1ea   : > { %v1467_v15 = vpop.f32.mrf.mxu3 }
 0x1eb   : > { %v1468_v13 = vadd.f32 %v1467_v15, %v1395_v1 }
 0x1ed   : > { %v1585_v36 = vadd.f32 %v1540_v46, %v1468_v13 }
 0x1ee   : > { %v1545_v57 = vpop.f32.mrf.mxu0 }
 0x1ef   : > { %v1740_v45 = vrot.slane %v1585_v36, 1 }
 0x1f0   : > { %v1397_v4 = vpop.f32.mrf.mxu2  ;;  %v1297_v55 = vpop.f32.mrf.mxu1 }
 0x1f1   : > { %v1741_v53 = vsel %vm1720_vm4, %v1738_v19, %v1740_v45  ;;  %v1339_v40 = vadd.f32 %v1297_v55, %v3055_v56 }
 0x1f2   : > { %v1854_v48 = vadd.f32 %v1830_v14, %v1741_v53  ;;  %v1469_v0 = vpop.f32.mrf.mxu3 }
 0x1f3   : > { %v1470_v38 = vadd.f32 %v1469_v0, %v1397_v4  ;;  %v1809_v21 = vadd.f32 %v3148_v63, %v1339_v40 }
 0x1f4   : > { %v1878_v11 = vmul.f32 0.2, %v1854_v48 }
 0x1f5   : > { %v1586_v35 = vadd.f32 %v1542_v59, %v1470_v38  ;;  %v3237_v61 = vadd.f32 %v1809_v21, %v3058_v30 }
 0x1f6   : > { %v1902_v32 = vmax.f32 %v1854_v48, %v1878_v11  ;;  %v1547_v12 = vpop.f32.mrf.mxu0 }
 0x1f7   : > { %v1742_v33 = vrot.slane %v1586_v35, 1 }
 0x1f8   : > { %v1920_v56 = vadd.f32 %v1902_v32, %v1899_v41  ;;  %v1400_v49 = vpop.f32.mrf.mxu2  ;;  %v1299_v14 = vpop.f32.mrf.mxu1 }
 0x1f9   : > { %v1743_v24 = vsel %vm1720_vm4, %v1740_v45, %v1742_v33  ;;  %v1340_v46 = vadd.f32 %v1299_v14, %v3063_v37 }
 0x1fa   : > { %1932 = vst.msk [vmem:[#allocation3 + $0x18] sm:$0xff] %vm632_vm2, %v1920_v56  ;;  %v1855_v20 = vadd.f32 %v1831_v58, %v1743_v24  ;;  %v1472_v50 = vpop.f32.mrf.mxu3 }
 0x1fb   : > { %v1473_v30 = vadd.f32 %v1472_v50, %v1400_v49  ;;  %v1810_v47 = vadd.f32 %v3148_v63, %v1340_v46 }
 0x1fc   : > { %v1879_v39 = vmul.f32 0.2, %v1855_v20 }
 0x1fd   : > { %v1587_v52 = vadd.f32 %v1545_v57, %v1473_v30  ;;  %v3245_v26 = vadd.f32 %v1810_v47, %v3070_v17 }
 0x1fe   : > { %v1903_v59 = vmax.f32 %v1855_v20, %v1879_v39  ;;  %v1550_v54 = vpop.f32.mrf.mxu0 }
 0x1ff   : > { %v1744_v6 = vrot.slane %v1587_v52, 1 }
 0x200   : > { %v1921_v1 = vadd.f32 %v1903_v59, %v1900_v23  ;;  %v1402_v43 = vpop.f32.mrf.mxu2  ;;  %v1302_v37 = vpop.f32.mrf.mxu1 }
 0x202   : > { %1933 = vst.msk [vmem:[#allocation3 + $0x20] sm:$0xff] %vm632_vm2, %v1921_v1  ;;  %v1474_v58 = vpop.f32.mrf.mxu3 }
 0x203   : > { %v1475_v4 = vadd.f32 %v1474_v58, %v1402_v43 }
 0x205   : > { %v1588_v48 = vadd.f32 %v1547_v12, %v1475_v4 }
 0x206   : > { %v1552_v42 = vpop.f32.mrf.mxu0 }
 0x207   : > { %v1746_v38 = vrot.slane %v1588_v48, 1 }
 0x208   : > { %v1405_v15 = vpop.f32.mrf.mxu2  ;;  %v1304_v29 = vpop.f32.mrf.mxu1 }
 0x209   : > { %v1943_v5 = vld [vmem:[#allocation3 + $0x18] ss:$2 sm:$0xff]  ;;  %v1951_v13 = vld [vmem:[#allocation3 + $0x19] ss:$2 sm:$0xff]  ;;  %v1342_v36 = vadd.f32 %v1304_v29, %v3078_v28  ;;  %v1747_v18 = vsel %vm1720_vm4, %v1744_v6, %v1746_v38 }
 0x20a   : > { %v1957_v17 = vadd.f32 %v1951_v13, %v1943_v5  ;;  %v1477_v51 = vpop.f32.mrf.mxu3 }
 0x20b   : > { %v1812_v57 = vadd.f32 %v3148_v63, %v1342_v36  ;;  %v1478_v21 = vadd.f32 %v1477_v51, %v1405_v15 }
 0x20c   : > { %v1961_v16 = vmul.f32 0.25, %v1957_v17 }
 0x20d   : > { %v1836_v19 = vadd.f32 %v1812_v57, %v3085_v7  ;;  %v1589_v33 = vadd.f32 %v1550_v54, %v1478_v21 }
 0x20e   : > { %v1965_v45 = vpack.c.bf16 %v1961_v16, %v1961_v16  ;;  %v1555_v55 = vpop.f32.mrf.mxu0 }
 0x20f   : > { %v1748_v12 = vrot.slane %v1589_v33, 1 }
 0x210   : > { %1969 = vst.msk [vmem:[%s3222_s26 + $0x4] sm:$0xf] %vm392_vm0, %v1965_v45  ;;  %v1407_v53 = vpop.f32.mrf.mxu2  ;;  %v1307_v40 = vpop.f32.mrf.mxu1 }
 0x211   : > { %v1343_v25 = vadd.f32 %v1307_v40, %v3090_v60  ;;  %v1857_v60 = vadd.f32 %v3237_v61, %v1747_v18  ;;  %v1749_v23 = vsel %vm1720_vm4, %v1746_v38, %v1748_v12 }
 0x212   : > { %v1479_v0 = vpop.f32.mrf.mxu3  ;;  %v1858_v37 = vadd.f32 %v3245_v26, %v1749_v23 }
 0x213   : > { %v1813_v28 = vadd.f32 %v3148_v63, %v1343_v25  ;;  %v1480_v11 = vadd.f32 %v1479_v0, %v1407_v53  ;;  %v1881_v47 = vmul.f32 0.2, %v1857_v60 }
 0x214   : > { %v1882_v36 = vmul.f32 0.2, %v1858_v37 }
 0x215   : > { %v1837_v44 = vadd.f32 %v1813_v28, %v3093_v10  ;;  %v1590_v56 = vadd.f32 %v1552_v42, %v1480_v11  ;;  %v1905_v43 = vmax.f32 %v1857_v60, %v1881_v47 }
 0x216   : > { %v1557_v35 = vpop.f32.mrf.mxu0  ;;  %v1906_v4 = vmax.f32 %v1858_v37, %v1882_v36 }
 0x217   : > { %v1750_v24 = vrot.slane %v1590_v56, 1 }
 0x218   : > { %v1410_v7 = vpop.f32.mrf.mxu2  ;;  %v1309_v41 = vpop.f32.mrf.mxu1 }
 0x21a   : > { %v1482_v32 = vpop.f32.mrf.mxu3 }
 0x21b   : > { %v1483_v49 = vadd.f32 %v1482_v32, %v1410_v7 }
 0x21d   : > { %v1591_v14 = vadd.f32 %v1555_v55, %v1483_v49 }
 0x21e   : > { %v1560_v30 = vpop.f32.mrf.mxu0 }
 0x21f   : > { %v1752_v46 = vrot.slane %v1591_v14, 1 }
 0x220   : > { %v1412_v22 = vpop.f32.mrf.mxu2  ;;  %v1312_v10 = vpop.f32.mrf.mxu1 }
 0x221   : > { %v1753_v20 = vsel %vm1720_vm4, %v1750_v24, %v1752_v46  ;;  %v1345_v50 = vadd.f32 %v1312_v10, %v3105_v34 }
 0x222   : > { %v1860_v39 = vadd.f32 %v1836_v19, %v1753_v20  ;;  %v1484_v52 = vpop.f32.mrf.mxu3 }
 0x223   : > { %v1485_v59 = vadd.f32 %v1484_v52, %v1412_v22  ;;  %v1815_v54 = vadd.f32 %v3148_v63, %v1345_v50 }
 0x224   : > { %v1884_v6 = vmul.f32 0.2, %v1860_v39 }
 0x225   : > { %v1592_v61 = vadd.f32 %v1557_v35, %v1485_v59  ;;  %v1839_v1 = vadd.f32 %v1815_v54, %v3108_v3 }
 0x226   : > { %v1908_v58 = vmax.f32 %v1860_v39, %v1884_v6  ;;  %v1562_v16 = vpop.f32.mrf.mxu0 }
 0x227   : > { %v1754_v42 = vrot.slane %v1592_v61, 1 }
 0x228   : > { %v1923_v15 = vadd.f32 %v1908_v58, %v1905_v43  ;;  %v1415_v34 = vpop.f32.mrf.mxu2  ;;  %v1314_v29 = vpop.f32.mrf.mxu1 }
 0x229   : > { %v1755_v5 = vsel %vm1720_vm4, %v1752_v46, %v1754_v42  ;;  %v1346_v13 = vadd.f32 %v1314_v29, %v3113_v27 }
 0x22a   : > { %1935 = vst.msk [vmem:[#allocation3 + $0x30] sm:$0xff] %vm632_vm2, %v1923_v15  ;;  %v1861_v17 = vadd.f32 %v1837_v44, %v1755_v5  ;;  %v1487_v51 = vpop.f32.mrf.mxu3 }
 0x22b   : > { %v1488_v57 = vadd.f32 %v1487_v51, %v1415_v34  ;;  %v1816_v3 = vadd.f32 %v3148_v63, %v1346_v13 }
 0x22c   : > { %v1885_v19 = vmul.f32 0.2, %v1861_v17 }
 0x22d   : > { %v1593_v26 = vadd.f32 %v1560_v30, %v1488_v57  ;;  %v1840_v45 = vadd.f32 %v1816_v3, %v3120_v2 }
 0x22e   : > { %v1909_v55 = vmax.f32 %v1861_v17, %v1885_v19  ;;  %v1565_v0 = vpop.f32.mrf.mxu0 }
 0x22f   : > { %v1756_v53 = vrot.slane %v1593_v26, 1 }
 0x230   : > { %v1924_v40 = vadd.f32 %v1909_v55, %v1906_v4  ;;  %v1417_v25 = vpop.f32.mrf.mxu2  ;;  %v1317_v48 = vpop.f32.mrf.mxu1 }
 0x232   : > { %1936 = vst.msk [vmem:[#allocation3 + $0x38] sm:$0xff] %vm632_vm2, %v1924_v40  ;;  %v1489_v27 = vpop.f32.mrf.mxu3 }
 0x233   : > { %v1490_v33 = vadd.f32 %v1489_v27, %v1417_v25 }
 0x235   : > { %v1594_v12 = vadd.f32 %v1562_v16, %v1490_v33 }
 0x236   : > { %v1567_v56 = vpop.f32.mrf.mxu0 }
 0x237   : > { %v1758_v22 = vrot.slane %v1594_v12, 1 }
 0x238   : > { %v1420_v28 = vpop.f32.mrf.mxu2  ;;  %v1319_v44 = vpop.f32.mrf.mxu1 }
 0x239   : > { %v1945_v38 = vld [vmem:[#allocation3 + $0x30] ss:$2 sm:$0xff]  ;;  %v1953_v21 = vld [vmem:[#allocation3 + $0x31] ss:$2 sm:$0xff]  ;;  %v1348_v11 = vadd.f32 %v1319_v44, %v3128_v31  ;;  %v1759_v30 = vsel %vm1720_vm4, %v1756_v53, %v1758_v22 }
 0x23a   : > { %v1958_v35 = vadd.f32 %v1953_v21, %v1945_v38  ;;  %v1492_v7 = vpop.f32.mrf.mxu3 }
 0x23b   : > { %v1818_v2 = vadd.f32 %v3148_v63, %v1348_v11  ;;  %v1493_v10 = vadd.f32 %v1492_v7, %v1420_v28 }
 0x23c   : > { %v1962_v41 = vmul.f32 0.25, %v1958_v35 }
 0x23d   : > { %v1842_v18 = vadd.f32 %v1818_v2, %v3135_v9  ;;  %v1595_v52 = vadd.f32 %v1565_v0, %v1493_v10 }
 0x23e   : > { %v1966_v32 = vpack.c.bf16 %v1962_v41, %v1962_v41  ;;  %v1570_v47 = vpop.f32.mrf.mxu0 }
 0x23f   : > { %v1760_v6 = vrot.slane %v1595_v52, 1 }
 0x240   : > { %1970 = vst.msk [vmem:[%s3222_s26 + $0x8] sm:$0xf] %vm392_vm0, %v1966_v32  ;;  %v1422_v49 = vpop.f32.mrf.mxu2  ;;  %v1322_v14 = vpop.f32.mrf.mxu1 }
 0x241   : > { %v1349_v60 = vadd.f32 %v1322_v14, %v3140_v8  ;;  %v1863_v8 = vadd.f32 %v1839_v1, %v1759_v30  ;;  %v1761_v15 = vsel %vm1720_vm4, %v1758_v22, %v1760_v6 }
 0x242   : > { %v1494_v24 = vpop.f32.mrf.mxu3  ;;  %v1864_v17 = vadd.f32 %v1840_v45, %v1761_v15 }
 0x243   : > { %v1819_v31 = vadd.f32 %v3148_v63, %v1349_v60  ;;  %v1495_v20 = vadd.f32 %v1494_v24, %v1422_v49  ;;  %v1887_v37 = vmul.f32 0.2, %v1863_v8 }
 0x244   : > { %v1888_v16 = vmul.f32 0.2, %v1864_v17 }
 0x245   : > { %v1843_v46 = vadd.f32 %v1819_v31, %v3143_v62  ;;  %v1596_v23 = vadd.f32 %v1567_v56, %v1495_v20  ;;  %v1911_v36 = vmax.f32 %v1863_v8, %v1887_v37 }
 0x246   : > { %v1572_v5 = vpop.f32.mrf.mxu0  ;;  %v1912_v4 = vmax.f32 %v1864_v17, %v1888_v16 }
 0x247   : > { %v1762_v61 = vrot.slane %v1596_v23, 1 }
 0x248   : > { %v1425_v50 = vpop.f32.mrf.mxu2  ;;  %v1324_v9 = vpop.f32.mrf.mxu1 }
 0x24a   : > { %v1497_v39 = vpop.f32.mrf.mxu3 }
 0x24b   : > { %v1498_v59 = vadd.f32 %v1497_v39, %v1425_v50 }
 0x24d   : > { %v1597_v54 = vadd.f32 %v1570_v47, %v1498_v59 }
 0x24f   : > { %v1764_v43 = vrot.slane %v1597_v54, 1 }
 0x250   : > { %v1427_v63 = vpop.f32.mrf.mxu2 }
 0x251   : > { %v1765_v62 = vsel %vm1720_vm4, %v1762_v61, %v1764_v43 }
 0x252   : > { %v1866_v58 = vadd.f32 %v1842_v18, %v1765_v62  ;;  %v1499_v42 = vpop.f32.mrf.mxu3 }
 0x253   : > { %v1500_v34 = vadd.f32 %v1499_v42, %v1427_v63 }
 0x254   : > { %v1890_v29 = vmul.f32 0.2, %v1866_v58 }
 0x255   : > { %v1598_v13 = vadd.f32 %v1572_v5, %v1500_v34 }
 0x256   : > { %v1914_v51 = vmax.f32 %v1866_v58, %v1890_v29 }
 0x257   : > { %v1766_v57 = vrot.slane %v1598_v13, 1 }
 0x258   : > { %v1926_v1 = vadd.f32 %v1914_v51, %v1911_v36 }
 0x259   : > { %v1767_v3 = vsel %vm1720_vm4, %v1764_v43, %v1766_v57 }
 0x25a   : > { %1938 = vst.msk [vmem:[#allocation3 + $0x48] sm:$0xff] %vm632_vm2, %v1926_v1  ;;  %v1867_v19 = vadd.f32 %v1843_v46, %v1767_v3 }
 0x25c   : > { %v1891_v26 = vmul.f32 0.2, %v1867_v19 }
 0x25e   : > { %v1915_v55 = vmax.f32 %v1867_v19, %v1891_v26 }
 0x260   : > { %v1927_v53 = vadd.f32 %v1915_v55, %v1912_v4 }
 0x262   : > { %1939 = vst.msk [vmem:[#allocation3 + $0x50] sm:$0xff] %vm632_vm2, %v1927_v53 }
 0x269   : > { %v1947_v40 = vld [vmem:[#allocation3 + $0x48] ss:$2 sm:$0xff]  ;;  %v1955_v25 = vld [vmem:[#allocation3 + $0x49] ss:$2 sm:$0xff] }
 0x26a   : > { %v1959_v48 = vadd.f32 %v1955_v25, %v1947_v40 }
 0x26c   : > { %v1963_v45 = vmul.f32 0.25, %v1959_v48 }
 0x26e   : > { %v1967_v27 = vpack.c.bf16 %v1963_v45, %v1963_v45 }
 0x270   : > { %1971 = vst.msk [vmem:[%s3222_s26 + $0xc] sm:$0xf] %vm392_vm0, %v1967_v27 }
 0x271 PF: > { %s15_s22 = sadd.s32 1, %s2531_s22   ;;  %s3357_s18 = smov %s2523_s20 }
 0x272   : > { %p12_p1 = scmp.ge.s32.totalorder %s15_s22, 6   ;;  %s3358_s19 = smov %s2527_s21 }
 0x273   : > { %s3359_s20 = smov %s3362_s23  ;;  %s3360_s21 = smov %s3366_s24 }
 0x274   :  { %14 = sbr.rel (!%p12_p1) target bundleno = 3 (0x3), region = 88 }

</bundles_post_ra>
